<compile_context>
chip_gen: v7x
topology: tpu7x:2x2x1
jax: 0.10.0
libtpu: 0.0.40
codegen_flags: <defaults>
</compile_context>

<pallas_src>
import jax
import jax.numpy as jnp
from jax import lax
from jax.experimental import pallas as pl
from jax.experimental.pallas import tpu as pltpu

HIDDEN = 512
FEAT_CHANNELS = 64       # channels after the conv trunk
INTER_CHANNELS = 32      # NONLocalBlock2D(64): inter_channels = 64 // 2

CONV_ROW_TILE = 1024                 # rows per grid step in the conv matmul
HEAD_TK = 4096                       # feat (K) tile for the head layer-1 matmul
_VMEM_LIMIT = 48 * 1024 * 1024       # explicit scoped-VMEM budget (fits v7x 64MiB)


def _round_up(x, m):
    return ((x + m - 1) // m) * m


def _head_tk(feat):
    return min(HEAD_TK, _round_up(feat, 128))


# ---------------------------------------------------------------------------
# Pallas kernels
# ---------------------------------------------------------------------------

def _mm_bias_act_kernel(apply_relu: bool):
    """One row-tile of  y = x @ w + b  (optional ReLU).
    bf16 MXU inputs, f32 accumulate, bias/ReLU in f32, store in o_ref.dtype."""
    def kernel(x_ref, w_ref, b_ref, o_ref):
        y = jnp.dot(x_ref[...].astype(jnp.bfloat16), w_ref[...],
                    preferred_element_type=jnp.float32)
        y = y + b_ref[...]
        if apply_relu:
            y = jnp.maximum(y, 0.0)
        o_ref[...] = y.astype(o_ref.dtype)
    return kernel


def _nonlocal_kernel(x_ref, wtpg_ref, btpg_ref, ww_ref, bw_ref, o_ref):
    """Non-local block for one batch element.  x_ref block: (1, HW, C) bf16.

    theta/phi/g are produced by ONE fused (C, 3*IC) matmul; the two attention
    matmuls run in bf16 with f32 accumulation; residual path is f32."""
    x = x_ref[0]                                                   # (HW, C) bf16
    ic = ww_ref.shape[0]
    tpg = jnp.dot(x, wtpg_ref[...],
                  preferred_element_type=jnp.float32) + btpg_ref[...]   # (HW, 3*IC)
    theta = tpg[:, :ic].astype(jnp.bfloat16)
    phi = tpg[:, ic:2 * ic].astype(jnp.bfloat16)
    g = tpg[:, 2 * ic:3 * ic].astype(jnp.bfloat16)
    # f[i, j] = theta_i . phi_j   (contract inter-channel axis, no transpose)
    f = lax.dot_general(theta, phi, (((1,), (1,)), ((), ())),
                        preferred_element_type=jnp.float32)        # (HW, HW)
    f = (f * (1.0 / x.shape[0])).astype(jnp.bfloat16)              # f / N, bf16
    y = jnp.dot(f, g, preferred_element_type=jnp.float32)          # (HW, IC)
    wy = jnp.dot(y.astype(jnp.bfloat16), ww_ref[...],
                 preferred_element_type=jnp.float32) + bw_ref[...]
    o_ref[0] = wy + x.astype(jnp.float32)                          # residual


def _head_kernel(num_actions: int, dueling: bool):
    """K-tiled head.  Grid axis = feat tiles (reduction, "arbitrary").
    Layer-1 partial products accumulate into a f32 VMEM scratch; at the last
    K step: bias + ReLU + layer-2 matmul (+ dueling combine).  The whole batch
    lives in one block, so advantage.mean() (scalar over batch AND actions,
    torch semantics) stays correct."""
    def kernel(x_ref, w1_ref, b1_ref, w2_ref, b2_ref, o_ref, acc_ref):
        k = pl.program_id(0)

        @pl.when(k == 0)
        def _():
            acc_ref[...] = jnp.zeros_like(acc_ref)

        acc_ref[...] += jnp.dot(x_ref[...].astype(jnp.bfloat16), w1_ref[...],
                                preferred_element_type=jnp.float32)

        @pl.when(k == pl.num_programs(0) - 1)
        def _():
            h = jnp.maximum(acc_ref[...] + b1_ref[...], 0.0)
            out = jnp.dot(h.astype(jnp.bfloat16), w2_ref[...],
                          preferred_element_type=jnp.float32) + b2_ref[...]
            if dueling:
                adv = out[:, :num_actions]
                val = out[:, num_actions:num_actions + 1]
                adv_mean = jnp.sum(adv) * (1.0 / (adv.shape[0] * adv.shape[1]))
                o_ref[...] = val + adv - adv_mean
            else:
                o_ref[...] = out
    return kernel


# ---------------------------------------------------------------------------
# Wrappers (layout plumbing + pallas_call plumbing)
# ---------------------------------------------------------------------------

def _matmul_bias_relu(p2d, w, b, out_dtype, apply_relu=True):
    """(R, K) @ (K, N) + b (+ReLU).  Rows tiled over a parallel grid; weight /
    bias BlockSpecs have a constant index_map so they stay VMEM-resident."""
    r, k = p2d.shape
    n = w.shape[1]
    tile = min(CONV_ROW_TILE, _round_up(r, 8))
    rp = _round_up(r, tile)
    if rp != r:
        p2d = jnp.pad(p2d, ((0, rp - r), (0, 0)))
    out = pl.pallas_call(
        _mm_bias_act_kernel(apply_relu),
        out_shape=jax.ShapeDtypeStruct((rp, n), out_dtype),
        grid_spec=pltpu.PrefetchScalarGridSpec(
            num_scalar_prefetch=0,
            grid=(rp // tile,),
            in_specs=[
                pl.BlockSpec((tile, k), lambda i: (i, 0)),
                pl.BlockSpec((k, n), lambda i: (0, 0)),     # resident weight
                pl.BlockSpec((1, n), lambda i: (0, 0)),     # resident bias
            ],
            out_specs=pl.BlockSpec((tile, n), lambda i: (i, 0)),
        ),
        compiler_params=pltpu.CompilerParams(
            dimension_semantics=("parallel",),
            vmem_limit_bytes=_VMEM_LIMIT),
    )(p2d, w, b.reshape(1, -1))
    return out[:r]


def _im2col_nhwc(x, kh, kw, stride):
    """NHWC patch extraction (layout plumbing, stays in the XLA wrapper).
    Row layout of the result: (i, j, c_in) — matches the bf16 weight matrices."""
    bsz, h, w, c = x.shape
    oh = (h - kh) // stride + 1
    ow = (w - kw) // stride + 1
    cols = []
    for i in range(kh):
        for j in range(kw):
            cols.append(x[:, i:i + stride * (oh - 1) + 1:stride,
                             j:j + stride * (ow - 1) + 1:stride, :])
    p = jnp.stack(cols, axis=3)                       # (B, OH, OW, kh*kw, C)
    return p.reshape(bsz * oh * ow, kh * kw * c), oh, ow


def conv2d_relu(x_nhwc, w_mat_bf16, b, stride, kh, kw, out_dtype=jnp.bfloat16):
    """VALID Conv2d + ReLU as im2col + Pallas matmul (NHWC in / NHWC out)."""
    bsz = x_nhwc.shape[0]
    patches, oh, ow = _im2col_nhwc(x_nhwc, kh, kw, stride)
    y2d = _matmul_bias_relu(patches, w_mat_bf16, b, out_dtype, apply_relu=True)
    return y2d.reshape(bsz, oh, ow, -1)


def nonlocal_block(h_nhwc, p):
    """NONLocalBlock2D(64, sub_sample=False, bn_layer=False) on (B,H,W,C) bf16,
    returns (B, HW, C) f32 (feature layout is kept flat for the heads)."""
    bsz, hh, ww, c = h_nhwc.shape
    hw = hh * ww
    ic = INTER_CHANNELS
    x_feat = h_nhwc.reshape(bsz, hw, c)               # free reshape in NHWC
    return pl.pallas_call(
        _nonlocal_kernel,
        out_shape=jax.ShapeDtypeStruct((bsz, hw, c), jnp.float32),
        grid_spec=pltpu.PrefetchScalarGridSpec(
            num_scalar_prefetch=0,
            grid=(bsz,),
            in_specs=[
                pl.BlockSpec((1, hw, c), lambda b: (b, 0, 0)),
                pl.BlockSpec((c, 3 * ic), lambda b: (0, 0)),
                pl.BlockSpec((1, 3 * ic), lambda b: (0, 0)),
                pl.BlockSpec((ic, c), lambda b: (0, 0)),
                pl.BlockSpec((1, c), lambda b: (0, 0)),
            ],
            out_specs=pl.BlockSpec((1, hw, c), lambda b: (b, 0, 0)),
        ),
        compiler_params=pltpu.CompilerParams(
            dimension_semantics=("parallel",),
            vmem_limit_bytes=_VMEM_LIMIT),
    )(x_feat,
      p["w_tpg_bf16"], p["b_tpg"].reshape(1, -1),
      p["w_w_bf16"], p["b_w"].reshape(1, -1))


def dueling_heads(x_flat, p, add_dueling: bool):
    bsz, feat = x_flat.shape
    num_actions = p["ba2"].shape[0]
    if add_dueling:
        w1, b1 = p["w_h1_duel"], p["b_h1_duel"]
        w2, b2 = p["w_h2_duel"], p["b_h2_duel"]
    else:
        # value-head weights are never passed -> never DMA'd.
        w1, b1 = p["w_a1_bf16"], p["ba1"]
        w2, b2 = p["w_a2_bf16"], p["ba2"]

    feat_pad = w1.shape[0]
    tk = _head_tk(feat)
    assert feat_pad % tk == 0
    nk = feat_pad // tk
    if feat_pad != feat:
        x_flat = jnp.pad(x_flat, ((0, 0), (0, feat_pad - feat)))
    nh = w1.shape[1]
    n2 = w2.shape[1]

    return pl.pallas_call(
        _head_kernel(num_actions, add_dueling),
        out_shape=jax.ShapeDtypeStruct((bsz, num_actions), jnp.float32),
        grid_spec=pltpu.PrefetchScalarGridSpec(
            num_scalar_prefetch=0,
            grid=(nk,),
            in_specs=[
                pl.BlockSpec((bsz, tk), lambda k: (0, k)),    # activations slab
                pl.BlockSpec((tk, nh), lambda k: (k, 0)),     # streamed w1 slab
                pl.BlockSpec((1, nh), lambda k: (0, 0)),      # resident bias 1
                pl.BlockSpec((nh, n2), lambda k: (0, 0)),     # resident w2
                pl.BlockSpec((1, n2), lambda k: (0, 0)),      # resident bias 2
            ],
            out_specs=pl.BlockSpec((bsz, num_actions), lambda k: (0, 0)),
            scratch_shapes=[pltpu.VMEM((bsz, nh), jnp.float32)],
        ),
        compiler_params=pltpu.CompilerParams(
            dimension_semantics=("arbitrary",),
            vmem_limit_bytes=_VMEM_LIMIT),
    )(x_flat, w1, b1.reshape(1, -1), w2, b2.reshape(1, -1))


def attention_dueling_dqn_forward(x, params, add_dueling: bool):
    """x: (B, C_in, H, W) f32  ->  (B, num_actions) f32."""
    x_nhwc = x.transpose(0, 2, 3, 1)                  # single layout change
    h = conv2d_relu(x_nhwc, params["w_conv1_mat"], params["b_conv1"], 4, 8, 8)
    h = conv2d_relu(h, params["w_conv2_mat"], params["b_conv2"], 2, 4, 4)
    h = conv2d_relu(h, params["w_conv3_mat"], params["b_conv3"], 1, 3, 3)
    z = nonlocal_block(h, params)                     # (B, HW, C) f32
    # Flatten in HWC order; head weights were row-permuted at init to match
    # torch's CHW-major reshape(b, -1).
    x_flat = z.reshape(z.shape[0], -1)
    return dueling_heads(x_flat, params, add_dueling)


forward = jax.jit(attention_dueling_dqn_forward, static_argnames=("add_dueling",))


# ---------------------------------------------------------------------------
# Parameters (synthetic torch-like init)  +  pure-JAX reference
# ---------------------------------------------------------------------------

def init_params(key, im_shape, num_outputs):
    c_in, h, w = im_shape
    ks = jax.random.split(key, 24)
    it = iter(ks)

    def unif(k, shape, fan_in):
        bound = float(fan_in) ** -0.5
        return jax.random.uniform(k, shape, jnp.float32, -bound, bound)

    def conv(kw, kb, c_out, c_inn, ksz):
        fan = c_inn * ksz * ksz
        return unif(kw, (c_out, c_inn, ksz, ksz), fan), unif(kb, (c_out,), fan)

    def lin(kw, kb, fan_in, fan_out):
        return unif(kw, (fan_in, fan_out), fan_in), unif(kb, (fan_out,), fan_in)

    p = {}
    p["w_conv1"], p["b_conv1"] = conv(next(it), next(it), 32, c_in, 8)
    p["w_conv2"], p["b_conv2"] = conv(next(it), next(it), 64, 32, 4)
    p["w_conv3"], p["b_conv3"] = conv(next(it), next(it), 64, 64, 3)

    def to_mat(wc):   # torch OIHW -> (kh*kw*Cin, Cout) bf16, row order (i, j, c)
        c_out, c_inn, kh_, kw_ = wc.shape
        return (wc.transpose(2, 3, 1, 0)
                  .reshape(kh_ * kw_ * c_inn, c_out).astype(jnp.bfloat16))

    p["w_conv1_mat"] = to_mat(p["w_conv1"])
    p["w_conv2_mat"] = to_mat(p["w_conv2"])
    p["w_conv3_mat"] = to_mat(p["w_conv3"])

    def osz(s, k, st):
        return (s - k) // st + 1
    h3 = osz(osz(osz(h, 8, 4), 4, 2), 3, 1)
    w3 = osz(osz(osz(w, 8, 4), 4, 2), 3, 1)
    feat = FEAT_CHANNELS * h3 * w3

    # non-local 1x1 convs, stored (in, out) so the kernel computes x @ W.
    # NOTE: torch zero-inits the W projection (bn_layer=False); random init here
    # so the attention path is actually exercised by the numeric check.
    p["w_theta"], p["b_theta"] = lin(next(it), next(it), FEAT_CHANNELS, INTER_CHANNELS)
    p["w_phi"], p["b_phi"] = lin(next(it), next(it), FEAT_CHANNELS, INTER_CHANNELS)
    p["w_g"], p["b_g"] = lin(next(it), next(it), FEAT_CHANNELS, INTER_CHANNELS)
    p["w_w"], p["b_w"] = lin(next(it), next(it), INTER_CHANNELS, FEAT_CHANNELS)

    # fused [theta | phi | g] weight: one (64, 96) MXU pass instead of 3x N=32.
    p["w_tpg_bf16"] = jnp.concatenate(
        [p["w_theta"], p["w_phi"], p["w_g"]], axis=1).astype(jnp.bfloat16)
    p["b_tpg"] = jnp.concatenate([p["b_theta"], p["b_phi"], p["b_g"]], axis=0)
    p["w_w_bf16"] = p["w_w"].astype(jnp.bfloat16)

    wa1, ba1 = lin(next(it), next(it), feat, HIDDEN)
    wa2, ba2 = lin(next(it), next(it), HIDDEN, num_outputs)
    wv1, bv1 = lin(next(it), next(it), feat, HIDDEN)
    wv2, bv2 = lin(next(it), next(it), HIDDEN, 1)
    p.update(dict(wa1=wa1, ba1=ba1, wa2=wa2, ba2=ba2,
                  wv1=wv1, bv1=bv1, wv2=wv2, bv2=bv2))

    # --- head weights: fold the torch CHW-major flatten into the row order
    # (activations stay NHWC end-to-end), pad feat up to a multiple of the
    # head K tile, fuse [advantage | value] into one wide layer, store bf16. ---
    c_idx = jnp.arange(FEAT_CHANNELS)
    h_idx = jnp.arange(h3)
    w_idx = jnp.arange(w3)
    perm = (c_idx[None, None, :] * (h3 * w3)
            + h_idx[:, None, None] * w3
            + w_idx[None, :, None]).reshape(-1)       # HWC row j -> CHW row idx
    tk = _head_tk(feat)
    feat_pad = _round_up(feat, tk)

    def head_w1(wm):
        wm = wm[perm]
        return jnp.pad(wm, ((0, feat_pad - feat), (0, 0)))

    wa1_hwc = head_w1(wa1)
    wv1_hwc = head_w1(wv1)
    p["w_h1_duel"] = jnp.concatenate([wa1_hwc, wv1_hwc], axis=1).astype(jnp.bfloat16)
    p["b_h1_duel"] = jnp.concatenate([ba1, bv1], axis=0)
    w2 = jnp.zeros((2 * HIDDEN, num_outputs + 1), jnp.float32)
    w2 = w2.at[:HIDDEN, :num_outputs].set(wa2)
    w2 = w2.at[HIDDEN:, num_outputs:].set(wv2)
    p["w_h2_duel"] = w2.astype(jnp.bfloat16)
    p["b_h2_duel"] = jnp.concatenate([ba2, bv2], axis=0)
    p["w_a1_bf16"] = wa1_hwc.astype(jnp.bfloat16)
    p["w_a2_bf16"] = wa2.astype(jnp.bfloat16)
    return p


def _ref_forward(x, p, add_dueling):
    """Pure-JAX reference mirroring the kernel's documented precision choices
    (bf16 operands, f32 accumulation) so the check is tight."""
    def conv_relu(xx, w, b, s):
        y = lax.conv_general_dilated(
            xx.astype(jnp.bfloat16), w.astype(jnp.bfloat16), (s, s), "VALID",
            dimension_numbers=("NCHW", "OIHW", "NCHW"),
            preferred_element_type=jnp.float32)
        return jnp.maximum(y + b.reshape(1, -1, 1, 1), 0.0).astype(jnp.bfloat16)

    h = conv_relu(x, p["w_conv1"], p["b_conv1"], 4)
    h = conv_relu(h, p["w_conv2"], p["b_conv2"], 2)
    h = conv_relu(h, p["w_conv3"], p["b_conv3"], 1)

    bsz, c, hh, ww = h.shape
    hw = hh * ww
    xf = h.reshape(bsz, c, hw).transpose(0, 2, 1)                 # (B, HW, C) bf16

    def mm(a, wgt):
        return jnp.einsum("bpc,ci->bpi", a, wgt.astype(jnp.bfloat16),
                          preferred_element_type=jnp.float32)

    theta = mm(xf, p["w_theta"]) + p["b_theta"]
    phi = mm(xf, p["w_phi"]) + p["b_phi"]
    g = mm(xf, p["w_g"]) + p["b_g"]
    f = jnp.einsum("bpi,bqi->bpq", theta.astype(jnp.bfloat16),
                   phi.astype(jnp.bfloat16),
                   preferred_element_type=jnp.float32) / hw
    y = jnp.einsum("bpq,bqi->bpi", f.astype(jnp.bfloat16), g.astype(jnp.bfloat16),
                   preferred_element_type=jnp.float32)
    wy = jnp.einsum("bpi,ic->bpc", y.astype(jnp.bfloat16),
                    p["w_w"].astype(jnp.bfloat16),
                    preferred_element_type=jnp.float32) + p["b_w"]
    z = wy + xf.astype(jnp.float32)                               # (B, HW, C)

    # torch flatten is C-major: (B, C, H, W) -> (B, C*H*W)
    x_flat = z.transpose(0, 2, 1).reshape(bsz, -1)
    xb = x_flat.astype(jnp.bfloat16)
    h_a = jnp.maximum(jnp.dot(xb, p["wa1"].astype(jnp.bfloat16),
                              preferred_element_type=jnp.float32) + p["ba1"], 0.0)
    adv = jnp.dot(h_a.astype(jnp.bfloat16), p["wa2"].astype(jnp.bfloat16),
                  preferred_element_type=jnp.float32) + p["ba2"]
    if not add_dueling:
        return adv
    h_v = jnp.maximum(jnp.dot(xb, p["wv1"].astype(jnp.bfloat16),
                              preferred_element_type=jnp.float32) + p["bv1"], 0.0)
    val = jnp.dot(h_v.astype(jnp.bfloat16), p["wv2"].astype(jnp.bfloat16),
                  preferred_element_type=jnp.float32) + p["bv2"]
    return val + adv - jnp.mean(adv)


if __name__ == "__main__":
    key = jax.random.PRNGKey(0)
    k_x, k_p = jax.random.split(key)

    batch = 2
    im_shape = (4, 60, 60)        # small stand-in for [4, 150, 600]
    num_outputs = 5

    x = jax.random.normal(k_x, (batch,) + im_shape, jnp.float32)
    params = init_params(k_p, im_shape, num_outputs)

    # dueling path: value + advantage - advantage.mean()
    out_duel = jax.block_until_ready(forward(x, params, add_dueling=True))
    ref_duel = _ref_forward(x, params, True)
    assert out_duel.shape == (batch, num_outputs)
    assert jnp.allclose(out_duel, ref_duel, atol=3e-2, rtol=5e-2), \
        float(jnp.max(jnp.abs(out_duel - ref_duel)))

    # non-dueling path: advantage head only (no value-head weights passed)
    out_plain = jax.block_until_ready(forward(x, params, add_dueling=False))
    ref_plain = _ref_forward(x, params, False)
    assert out_plain.shape == (batch, num_outputs)
    assert jnp.allclose(out_plain, ref_plain, atol=3e-2, rtol=5e-2), \
        float(jnp.max(jnp.abs(out_plain - ref_plain)))

    print("KERNEL_OK")
</pallas_src>

<mosaic_0001>
module attributes {stable_mosaic.version = 11 : i64} {
  func.func @kernel(%arg0: i32, %arg1: memref<392x256xf32, #tpu.memory_space<vmem>>, %arg2: memref<256x32xbf16, #tpu.memory_space<vmem>>, %arg3: memref<1x32xf32, #tpu.memory_space<vmem>>, %arg4: memref<392x32xbf16, #tpu.memory_space<vmem>>) attributes {dimension_semantics = [#tpu.dimension_semantics<parallel>], iteration_bounds = array<i64: 1>, scalar_prefetch = 0 : i64, scratch_operands = 0 : i64, tpu.core_type = #tpu.core_type<tc>, window_params = [{transform_indices = @transform_0, window_bounds = array<i64: 392, 256>}, {pipeline_mode = #tpu.pipeline_mode<synchronous>, transform_indices = @transform_1, window_bounds = array<i64: 256, 32>}, {pipeline_mode = #tpu.pipeline_mode<synchronous>, transform_indices = @transform_2, window_bounds = array<i64: 1, 32>}, {transform_indices = @transform_3, window_bounds = array<i64: 392, 32>}]} {
    %c0 = arith.constant 0 : index
    %c0_0 = arith.constant 0 : index
    %0 = vector.load %arg1[%c0, %c0_0] : memref<392x256xf32, #tpu.memory_space<vmem>>, vector<392x256xf32>
    %1 = arith.truncf %0 : vector<392x256xf32> to vector<392x256xbf16>
    %c0_1 = arith.constant 0 : index
    %c0_2 = arith.constant 0 : index
    %2 = vector.load %arg2[%c0_1, %c0_2] : memref<256x32xbf16, #tpu.memory_space<vmem>>, vector<256x32xbf16>
    %cst = arith.constant dense<0.000000e+00> : vector<392x32xf32>
    %3 = tpu.matmul %1, %2, %cst {dimension_numbers = #tpu.dot_dimension_numbers<[1], [0], [0], [1], [0, 0, 1, 1], [], []>} : vector<392x256xbf16>, vector<256x32xbf16>, vector<392x32xf32> -> vector<392x32xf32>
    %c0_3 = arith.constant 0 : index
    %c0_4 = arith.constant 0 : index
    %4 = vector.load %arg3[%c0_3, %c0_4] : memref<1x32xf32, #tpu.memory_space<vmem>>, vector<1x32xf32>
    %5 = vector.broadcast %4 : vector<1x32xf32> to vector<392x32xf32>
    %6 = arith.addf %3, %5 : vector<392x32xf32>
    %cst_5 = arith.constant 0.000000e+00 : f32
    %7 = vector.broadcast %cst_5 : f32 to vector<392x32xf32>
    %8 = arith.maximumf %6, %7 : vector<392x32xf32>
    %9 = arith.truncf %8 : vector<392x32xf32> to vector<392x32xbf16>
    %c0_6 = arith.constant 0 : index
    %c0_7 = arith.constant 0 : index
    %10 = vector.load %arg4[%c0_6, %c0_7] : memref<392x32xbf16, #tpu.memory_space<vmem>>, vector<392x32xbf16>
    tpu.vector_store %arg4[%c0_6, %c0_7], %9 {strides = array<i32>} : memref<392x32xbf16, #tpu.memory_space<vmem>>, vector<392x32xbf16>,
    return
  }
  func.func @transform_0(%arg0: i32) -> (i32, i32) {
    %c0_i32 = arith.constant 0 : i32
    %c0_i32_0 = arith.constant 0 : i32
    return %arg0, %c0_i32 : i32, i32
  }
  func.func @transform_1(%arg0: i32) -> (i32, i32) {
    %c0_i32 = arith.constant 0 : i32
    %c0_i32_0 = arith.constant 0 : i32
    %c0_i32_1 = arith.constant 0 : i32
    return %c0_i32, %c0_i32_0 : i32, i32
  }
  func.func @transform_2(%arg0: i32) -> (i32, i32) {
    %c0_i32 = arith.constant 0 : i32
    %c0_i32_0 = arith.constant 0 : i32
    %c0_i32_1 = arith.constant 0 : i32
    return %c0_i32, %c0_i32_0 : i32, i32
  }
  func.func @transform_3(%arg0: i32) -> (i32, i32) {
    %c0_i32 = arith.constant 0 : i32
    %c0_i32_0 = arith.constant 0 : i32
    return %arg0, %c0_i32 : i32, i32
  }
}

module attributes {stable_mosaic.version = 11 : i64} {
  func.func @kernel(%arg0: i32, %arg1: memref<72x512xbf16, #tpu.memory_space<vmem>>, %arg2: memref<512x64xbf16, #tpu.memory_space<vmem>>, %arg3: memref<1x64xf32, #tpu.memory_space<vmem>>, %arg4: memref<72x64xbf16, #tpu.memory_space<vmem>>) attributes {dimension_semantics = [#tpu.dimension_semantics<parallel>], iteration_bounds = array<i64: 1>, scalar_prefetch = 0 : i64, scratch_operands = 0 : i64, tpu.core_type = #tpu.core_type<tc>, window_params = [{transform_indices = @transform_0, window_bounds = array<i64: 72, 512>}, {pipeline_mode = #tpu.pipeline_mode<synchronous>, transform_indices = @transform_1, window_bounds = array<i64: 512, 64>}, {pipeline_mode = #tpu.pipeline_mode<synchronous>, transform_indices = @transform_2, window_bounds = array<i64: 1, 64>}, {transform_indices = @transform_3, window_bounds = array<i64: 72, 64>}]} {
    %c0 = arith.constant 0 : index
    %c0_0 = arith.constant 0 : index
    %0 = vector.load %arg1[%c0, %c0_0] : memref<72x512xbf16, #tpu.memory_space<vmem>>, vector<72x512xbf16>
    %c0_1 = arith.constant 0 : index
    %c0_2 = arith.constant 0 : index
    %1 = vector.load %arg2[%c0_1, %c0_2] : memref<512x64xbf16, #tpu.memory_space<vmem>>, vector<512x64xbf16>
    %cst = arith.constant dense<0.000000e+00> : vector<72x64xf32>
    %2 = tpu.matmul %0, %1, %cst {dimension_numbers = #tpu.dot_dimension_numbers<[1], [0], [0], [1], [0, 0, 1, 1], [], []>} : vector<72x512xbf16>, vector<512x64xbf16>, vector<72x64xf32> -> vector<72x64xf32>
    %c0_3 = arith.constant 0 : index
    %c0_4 = arith.constant 0 : index
    %3 = vector.load %arg3[%c0_3, %c0_4] : memref<1x64xf32, #tpu.memory_space<vmem>>, vector<1x64xf32>
    %4 = vector.broadcast %3 : vector<1x64xf32> to vector<72x64xf32>
    %5 = arith.addf %2, %4 : vector<72x64xf32>
    %cst_5 = arith.constant 0.000000e+00 : f32
    %6 = vector.broadcast %cst_5 : f32 to vector<72x64xf32>
    %7 = arith.maximumf %5, %6 : vector<72x64xf32>
    %8 = arith.truncf %7 : vector<72x64xf32> to vector<72x64xbf16>
    %c0_6 = arith.constant 0 : index
    %c0_7 = arith.constant 0 : index
    %9 = vector.load %arg4[%c0_6, %c0_7] : memref<72x64xbf16, #tpu.memory_space<vmem>>, vector<72x64xbf16>
    tpu.vector_store %arg4[%c0_6, %c0_7], %8 {strides = array<i32>} : memref<72x64xbf16, #tpu.memory_space<vmem>>, vector<72x64xbf16>,
    return
  }
  func.func @transform_0(%arg0: i32) -> (i32, i32) {
    %c0_i32 = arith.constant 0 : i32
    %c0_i32_0 = arith.constant 0 : i32
    return %arg0, %c0_i32 : i32, i32
  }
  func.func @transform_1(%arg0: i32) -> (i32, i32) {
    %c0_i32 = arith.constant 0 : i32
    %c0_i32_0 = arith.constant 0 : i32
    %c0_i32_1 = arith.constant 0 : i32
    return %c0_i32, %c0_i32_0 : i32, i32
  }
  func.func @transform_2(%arg0: i32) -> (i32, i32) {
    %c0_i32 = arith.constant 0 : i32
    %c0_i32_0 = arith.constant 0 : i32
    %c0_i32_1 = arith.constant 0 : i32
    return %c0_i32, %c0_i32_0 : i32, i32
  }
  func.func @transform_3(%arg0: i32) -> (i32, i32) {
    %c0_i32 = arith.constant 0 : i32
    %c0_i32_0 = arith.constant 0 : i32
    return %arg0, %c0_i32 : i32, i32
  }
}

module attributes {stable_mosaic.version = 11 : i64} {
  func.func @kernel(%arg0: i32, %arg1: memref<32x576xbf16, #tpu.memory_space<vmem>>, %arg2: memref<576x64xbf16, #tpu.memory_space<vmem>>, %arg3: memref<1x64xf32, #tpu.memory_space<vmem>>, %arg4: memref<32x64xbf16, #tpu.memory_space<vmem>>) attributes {dimension_semantics = [#tpu.dimension_semantics<parallel>], iteration_bounds = array<i64: 1>, scalar_prefetch = 0 : i64, scratch_operands = 0 : i64, tpu.core_type = #tpu.core_type<tc>, window_params = [{transform_indices = @transform_0, window_bounds = array<i64: 32, 576>}, {pipeline_mode = #tpu.pipeline_mode<synchronous>, transform_indices = @transform_1, window_bounds = array<i64: 576, 64>}, {pipeline_mode = #tpu.pipeline_mode<synchronous>, transform_indices = @transform_2, window_bounds = array<i64: 1, 64>}, {transform_indices = @transform_3, window_bounds = array<i64: 32, 64>}]} {
    %c0 = arith.constant 0 : index
    %c0_0 = arith.constant 0 : index
    %0 = vector.load %arg1[%c0, %c0_0] : memref<32x576xbf16, #tpu.memory_space<vmem>>, vector<32x576xbf16>
    %c0_1 = arith.constant 0 : index
    %c0_2 = arith.constant 0 : index
    %1 = vector.load %arg2[%c0_1, %c0_2] : memref<576x64xbf16, #tpu.memory_space<vmem>>, vector<576x64xbf16>
    %cst = arith.constant dense<0.000000e+00> : vector<32x64xf32>
    %2 = tpu.matmul %0, %1, %cst {dimension_numbers = #tpu.dot_dimension_numbers<[1], [0], [0], [1], [0, 0, 1, 1], [], []>} : vector<32x576xbf16>, vector<576x64xbf16>, vector<32x64xf32> -> vector<32x64xf32>
    %c0_3 = arith.constant 0 : index
    %c0_4 = arith.constant 0 : index
    %3 = vector.load %arg3[%c0_3, %c0_4] : memref<1x64xf32, #tpu.memory_space<vmem>>, vector<1x64xf32>
    %4 = vector.broadcast %3 : vector<1x64xf32> to vector<32x64xf32>
    %5 = arith.addf %2, %4 : vector<32x64xf32>
    %cst_5 = arith.constant 0.000000e+00 : f32
    %6 = vector.broadcast %cst_5 : f32 to vector<32x64xf32>
    %7 = arith.maximumf %5, %6 : vector<32x64xf32>
    %8 = arith.truncf %7 : vector<32x64xf32> to vector<32x64xbf16>
    %c0_6 = arith.constant 0 : index
    %c0_7 = arith.constant 0 : index
    %9 = vector.load %arg4[%c0_6, %c0_7] : memref<32x64xbf16, #tpu.memory_space<vmem>>, vector<32x64xbf16>
    tpu.vector_store %arg4[%c0_6, %c0_7], %8 {strides = array<i32>} : memref<32x64xbf16, #tpu.memory_space<vmem>>, vector<32x64xbf16>,
    return
  }
  func.func @transform_0(%arg0: i32) -> (i32, i32) {
    %c0_i32 = arith.constant 0 : i32
    %c0_i32_0 = arith.constant 0 : i32
    return %arg0, %c0_i32 : i32, i32
  }
  func.func @transform_1(%arg0: i32) -> (i32, i32) {
    %c0_i32 = arith.constant 0 : i32
    %c0_i32_0 = arith.constant 0 : i32
    %c0_i32_1 = arith.constant 0 : i32
    return %c0_i32, %c0_i32_0 : i32, i32
  }
  func.func @transform_2(%arg0: i32) -> (i32, i32) {
    %c0_i32 = arith.constant 0 : i32
    %c0_i32_0 = arith.constant 0 : i32
    %c0_i32_1 = arith.constant 0 : i32
    return %c0_i32, %c0_i32_0 : i32, i32
  }
  func.func @transform_3(%arg0: i32) -> (i32, i32) {
    %c0_i32 = arith.constant 0 : i32
    %c0_i32_0 = arith.constant 0 : i32
    return %arg0, %c0_i32 : i32, i32
  }
}

module attributes {stable_mosaic.version = 11 : i64} {
  func.func @_nonlocal_kernel(%arg0: i32, %arg1: memref<1x16x64xbf16, #tpu.memory_space<vmem>>, %arg2: memref<64x96xbf16, #tpu.memory_space<vmem>>, %arg3: memref<1x96xf32, #tpu.memory_space<vmem>>, %arg4: memref<32x64xbf16, #tpu.memory_space<vmem>>, %arg5: memref<1x64xf32, #tpu.memory_space<vmem>>, %arg6: memref<1x16x64xf32, #tpu.memory_space<vmem>>) attributes {dimension_semantics = [#tpu.dimension_semantics<parallel>], iteration_bounds = array<i64: 2>, scalar_prefetch = 0 : i64, scratch_operands = 0 : i64, tpu.core_type = #tpu.core_type<tc>, window_params = [{transform_indices = @transform_0, window_bounds = array<i64: 1, 16, 64>}, {pipeline_mode = #tpu.pipeline_mode<synchronous>, transform_indices = @transform_1, window_bounds = array<i64: 64, 96>}, {pipeline_mode = #tpu.pipeline_mode<synchronous>, transform_indices = @transform_2, window_bounds = array<i64: 1, 96>}, {pipeline_mode = #tpu.pipeline_mode<synchronous>, transform_indices = @transform_3, window_bounds = array<i64: 32, 64>}, {pipeline_mode = #tpu.pipeline_mode<synchronous>, transform_indices = @transform_4, window_bounds = array<i64: 1, 64>}, {transform_indices = @transform_5, window_bounds = array<i64: 1, 16, 64>}]} {
    %c0 = arith.constant 0 : index
    %c0_0 = arith.constant 0 : index
    %c0_1 = arith.constant 0 : index
    %0 = vector.load %arg1[%c0, %c0_0, %c0_1] : memref<1x16x64xbf16, #tpu.memory_space<vmem>>, vector<1x16x64xbf16>
    %1 = vector.shape_cast %0 : vector<1x16x64xbf16> to vector<16x64xbf16>
    %c0_2 = arith.constant 0 : index
    %c0_3 = arith.constant 0 : index
    %2 = vector.load %arg2[%c0_2, %c0_3] : memref<64x96xbf16, #tpu.memory_space<vmem>>, vector<64x96xbf16>
    %cst = arith.constant dense<0.000000e+00> : vector<16x96xf32>
    %3 = tpu.matmul %1, %2, %cst {dimension_numbers = #tpu.dot_dimension_numbers<[1], [0], [0], [1], [0, 0, 1, 1], [], []>} : vector<16x64xbf16>, vector<64x96xbf16>, vector<16x96xf32> -> vector<16x96xf32>
    %c0_4 = arith.constant 0 : index
    %c0_5 = arith.constant 0 : index
    %4 = vector.load %arg3[%c0_4, %c0_5] : memref<1x96xf32, #tpu.memory_space<vmem>>, vector<1x96xf32>
    %5 = vector.broadcast %4 : vector<1x96xf32> to vector<16x96xf32>
    %6 = arith.addf %3, %5 : vector<16x96xf32>
    %7 = vector.extract_strided_slice %6 {offsets = [0, 0], sizes = [16, 32], strides = [1, 1]} : vector<16x96xf32> to vector<16x32xf32>
    %8 = arith.truncf %7 : vector<16x32xf32> to vector<16x32xbf16>
    %9 = vector.extract_strided_slice %6 {offsets = [0, 32], sizes = [16, 32], strides = [1, 1]} : vector<16x96xf32> to vector<16x32xf32>
    %10 = arith.truncf %9 : vector<16x32xf32> to vector<16x32xbf16>
    %11 = vector.extract_strided_slice %6 {offsets = [0, 64], sizes = [16, 32], strides = [1, 1]} : vector<16x96xf32> to vector<16x32xf32>
    %12 = arith.truncf %11 : vector<16x32xf32> to vector<16x32xbf16>
    %cst_6 = arith.constant dense<0.000000e+00> : vector<16x16xf32>
    %13 = tpu.matmul %8, %10, %cst_6 {dimension_numbers = #tpu.dot_dimension_numbers<[1], [1], [0], [0], [0, 0, 1, 0], [], []>} : vector<16x32xbf16>, vector<16x32xbf16>, vector<16x16xf32> -> vector<16x16xf32>
    %cst_7 = arith.constant 6.250000e-02 : f32
    %14 = vector.broadcast %cst_7 : f32 to vector<16x16xf32>
    %15 = arith.mulf %13, %14 : vector<16x16xf32>
    %16 = arith.truncf %15 : vector<16x16xf32> to vector<16x16xbf16>
    %cst_8 = arith.constant dense<0.000000e+00> : vector<16x32xf32>
    %17 = tpu.matmul %16, %12, %cst_8 {dimension_numbers = #tpu.dot_dimension_numbers<[1], [0], [0], [1], [0, 0, 1, 1], [], []>} : vector<16x16xbf16>, vector<16x32xbf16>, vector<16x32xf32> -> vector<16x32xf32>
    %18 = arith.truncf %17 : vector<16x32xf32> to vector<16x32xbf16>
    %c0_9 = arith.constant 0 : index
    %c0_10 = arith.constant 0 : index
    %19 = vector.load %arg4[%c0_9, %c0_10] : memref<32x64xbf16, #tpu.memory_space<vmem>>, vector<32x64xbf16>
    %cst_11 = arith.constant dense<0.000000e+00> : vector<16x64xf32>
    %20 = tpu.matmul %18, %19, %cst_11 {dimension_numbers = #tpu.dot_dimension_numbers<[1], [0], [0], [1], [0, 0, 1, 1], [], []>} : vector<16x32xbf16>, vector<32x64xbf16>, vector<16x64xf32> -> vector<16x64xf32>
    %c0_12 = arith.constant 0 : index
    %c0_13 = arith.constant 0 : index
    %21 = vector.load %arg5[%c0_12, %c0_13] : memref<1x64xf32, #tpu.memory_space<vmem>>, vector<1x64xf32>
    %22 = vector.broadcast %21 : vector<1x64xf32> to vector<16x64xf32>
    %23 = arith.addf %20, %22 : vector<16x64xf32>
    %24 = arith.extf %1 : vector<16x64xbf16> to vector<16x64xf32>
    %25 = arith.addf %23, %24 : vector<16x64xf32>
    %c0_14 = arith.constant 0 : index
    %c0_15 = arith.constant 0 : index
    %c0_16 = arith.constant 0 : index
    %26 = vector.load %arg6[%c0_14, %c0_15, %c0_16] : memref<1x16x64xf32, #tpu.memory_space<vmem>>, vector<1x16x64xf32>
    %27 = vector.shape_cast %26 : vector<1x16x64xf32> to vector<16x64xf32>
    %28 = vector.shape_cast %25 : vector<16x64xf32> to vector<1x16x64xf32>
    tpu.vector_store %arg6[%c0_14, %c0_15, %c0_16], %28 {strides = array<i32>} : memref<1x16x64xf32, #tpu.memory_space<vmem>>, vector<1x16x64xf32>,
    return
  }
  func.func @transform_0(%arg0: i32) -> (i32, i32, i32) {
    %c0_i32 = arith.constant 0 : i32
    %c0_i32_0 = arith.constant 0 : i32
    %c0_i32_1 = arith.constant 0 : i32
    return %arg0, %c0_i32, %c0_i32_0 : i32, i32, i32
  }
  func.func @transform_1(%arg0: i32) -> (i32, i32) {
    %c0_i32 = arith.constant 0 : i32
    %c0_i32_0 = arith.constant 0 : i32
    %c0_i32_1 = arith.constant 0 : i32
    return %c0_i32, %c0_i32_0 : i32, i32
  }
  func.func @transform_2(%arg0: i32) -> (i32, i32) {
    %c0_i32 = arith.constant 0 : i32
    %c0_i32_0 = arith.constant 0 : i32
    %c0_i32_1 = arith.constant 0 : i32
    return %c0_i32, %c0_i32_0 : i32, i32
  }
  func.func @transform_3(%arg0: i32) -> (i32, i32) {
    %c0_i32 = arith.constant 0 : i32
    %c0_i32_0 = arith.constant 0 : i32
    %c0_i32_1 = arith.constant 0 : i32
    return %c0_i32, %c0_i32_0 : i32, i32
  }
  func.func @transform_4(%arg0: i32) -> (i32, i32) {
    %c0_i32 = arith.constant 0 : i32
    %c0_i32_0 = arith.constant 0 : i32
    %c0_i32_1 = arith.constant 0 : i32
    return %c0_i32, %c0_i32_0 : i32, i32
  }
  func.func @transform_5(%arg0: i32) -> (i32, i32, i32) {
    %c0_i32 = arith.constant 0 : i32
    %c0_i32_0 = arith.constant 0 : i32
    %c0_i32_1 = arith.constant 0 : i32
    return %arg0, %c0_i32, %c0_i32_0 : i32, i32, i32
  }
}

module attributes {stable_mosaic.version = 11 : i64} {
  func.func @kernel(%arg0: i32, %arg1: memref<2x1024xf32, #tpu.memory_space<vmem>>, %arg2: memref<1024x1024xbf16, #tpu.memory_space<vmem>>, %arg3: memref<1x1024xf32, #tpu.memory_space<vmem>>, %arg4: memref<1024x6xbf16, #tpu.memory_space<vmem>>, %arg5: memref<1x6xf32, #tpu.memory_space<vmem>>, %arg6: memref<2x5xf32, #tpu.memory_space<vmem>>, %arg7: memref<2x1024xf32, #tpu.memory_space<vmem>>) attributes {dimension_semantics = [#tpu.dimension_semantics<arbitrary>], iteration_bounds = array<i64: 1>, scalar_prefetch = 0 : i64, scratch_operands = 1 : i64, tpu.core_type = #tpu.core_type<tc>, window_params = [{transform_indices = @transform_0, window_bounds = array<i64: 2, 1024>}, {transform_indices = @transform_1, window_bounds = array<i64: 1024, 1024>}, {pipeline_mode = #tpu.pipeline_mode<synchronous>, transform_indices = @transform_2, window_bounds = array<i64: 1, 1024>}, {pipeline_mode = #tpu.pipeline_mode<synchronous>, transform_indices = @transform_3, window_bounds = array<i64: 1024, 6>}, {pipeline_mode = #tpu.pipeline_mode<synchronous>, transform_indices = @transform_4, window_bounds = array<i64: 1, 6>}, {pipeline_mode = #tpu.pipeline_mode<synchronous>, transform_indices = @transform_5, window_bounds = array<i64: 2, 5>}]} {
    %c0_i32 = arith.constant 0 : i32
    %0 = arith.cmpi eq, %arg0, %c0_i32 : i32
    %1 = arith.extui %0 : i1 to i32
    %c0_i32_0 = arith.constant 0 : i32
    %2 = arith.cmpi ne, %1, %c0_i32_0 : i32
    scf.if %2 {
      %cst_10 = arith.constant 0.000000e+00 : f32
      %13 = vector.broadcast %cst_10 : f32 to vector<2x1024xf32>
      %c0_11 = arith.constant 0 : index
      %c0_12 = arith.constant 0 : index
      %14 = vector.load %arg7[%c0_11, %c0_12] : memref<2x1024xf32, #tpu.memory_space<vmem>>, vector<2x1024xf32>
      tpu.vector_store %arg7[%c0_11, %c0_12], %13 {strides = array<i32>} : memref<2x1024xf32, #tpu.memory_space<vmem>>, vector<2x1024xf32>,
    } else {
    }
    %c0 = arith.constant 0 : index
    %c0_1 = arith.constant 0 : index
    %3 = vector.load %arg7[%c0, %c0_1] : memref<2x1024xf32, #tpu.memory_space<vmem>>, vector<2x1024xf32>
    %c0_2 = arith.constant 0 : index
    %c0_3 = arith.constant 0 : index
    %4 = vector.load %arg1[%c0_2, %c0_3] : memref<2x1024xf32, #tpu.memory_space<vmem>>, vector<2x1024xf32>
    %5 = arith.truncf %4 : vector<2x1024xf32> to vector<2x1024xbf16>
    %c0_4 = arith.constant 0 : index
    %c0_5 = arith.constant 0 : index
    %6 = vector.load %arg2[%c0_4, %c0_5] : memref<1024x1024xbf16, #tpu.memory_space<vmem>>, vector<1024x1024xbf16>
    %cst = arith.constant dense<0.000000e+00> : vector<2x1024xf32>
    %7 = tpu.matmul %5, %6, %cst {dimension_numbers = #tpu.dot_dimension_numbers<[1], [0], [0], [1], [0, 0, 1, 1], [], []>} : vector<2x1024xbf16>, vector<1024x1024xbf16>, vector<2x1024xf32> -> vector<2x1024xf32>
    %8 = arith.addf %3, %7 : vector<2x1024xf32>
    %c0_6 = arith.constant 0 : index
    %c0_7 = arith.constant 0 : index
    %9 = vector.load %arg7[%c0_6, %c0_7] : memref<2x1024xf32, #tpu.memory_space<vmem>>, vector<2x1024xf32>
    tpu.vector_store %arg7[%c0_6, %c0_7], %8 {strides = array<i32>} : memref<2x1024xf32, #tpu.memory_space<vmem>>, vector<2x1024xf32>,
    %c0_i32_8 = arith.constant 0 : i32
    %10 = arith.cmpi eq, %arg0, %c0_i32_8 : i32
    %11 = arith.extui %10 : i1 to i32
    %c0_i32_9 = arith.constant 0 : i32
    %12 = arith.cmpi ne, %11, %c0_i32_9 : i32
    scf.if %12 {
      %c0_10 = arith.constant 0 : index
      %c0_11 = arith.constant 0 : index
      %13 = vector.load %arg7[%c0_10, %c0_11] : memref<2x1024xf32, #tpu.memory_space<vmem>>, vector<2x1024xf32>
      %c0_12 = arith.constant 0 : index
      %c0_13 = arith.constant 0 : index
      %14 = vector.load %arg3[%c0_12, %c0_13] : memref<1x1024xf32, #tpu.memory_space<vmem>>, vector<1x1024xf32>
      %15 = vector.broadcast %14 : vector<1x1024xf32> to vector<2x1024xf32>
      %16 = arith.addf %13, %15 : vector<2x1024xf32>
      %cst_14 = arith.constant 0.000000e+00 : f32
      %17 = vector.broadcast %cst_14 : f32 to vector<2x1024xf32>
      %18 = arith.maximumf %16, %17 : vector<2x1024xf32>
      %19 = arith.truncf %18 : vector<2x1024xf32> to vector<2x1024xbf16>
      %c0_15 = arith.constant 0 : index
      %c0_16 = arith.constant 0 : index
      %20 = vector.load %arg4[%c0_15, %c0_16] : memref<1024x6xbf16, #tpu.memory_space<vmem>>, vector<1024x6xbf16>
      %cst_17 = arith.constant dense<0.000000e+00> : vector<2x6xf32>
      %21 = tpu.matmul %19, %20, %cst_17 {dimension_numbers = #tpu.dot_dimension_numbers<[1], [0], [0], [1], [0, 0, 1, 1], [], []>} : vector<2x1024xbf16>, vector<1024x6xbf16>, vector<2x6xf32> -> vector<2x6xf32>
      %c0_18 = arith.constant 0 : index
      %c0_19 = arith.constant 0 : index
      %22 = vector.load %arg5[%c0_18, %c0_19] : memref<1x6xf32, #tpu.memory_space<vmem>>, vector<1x6xf32>
      %23 = vector.broadcast %22 : vector<1x6xf32> to vector<2x6xf32>
      %24 = arith.addf %21, %23 : vector<2x6xf32>
      %25 = vector.extract_strided_slice %24 {offsets = [0, 0], sizes = [2, 5], strides = [1, 1]} : vector<2x6xf32> to vector<2x5xf32>
      %26 = vector.extract_strided_slice %24 {offsets = [0, 5], sizes = [2, 1], strides = [1, 1]} : vector<2x6xf32> to vector<2x1xf32>
      %27 = vector.shape_cast %25 : vector<2x5xf32> to vector<1x2x5xf32>
      %cst_20 = arith.constant dense<0.000000e+00> : vector<1xf32>
      %28 = vector.multi_reduction <add>, %27, %cst_20 [1, 2] : vector<1x2x5xf32> to vector<1xf32>
      %29 = vector.shape_cast %28 : vector<1xf32> to vector<1x1x1xf32>
      %30 = vector.extract %29[0, 0, 0] : f32 from vector<1x1x1xf32>
      %cst_21 = arith.constant 1.000000e-01 : f32
      %31 = arith.mulf %30, %cst_21 : f32
      %32 = vector.broadcast %26 : vector<2x1xf32> to vector<2x5xf32>
      %33 = arith.addf %32, %25 : vector<2x5xf32>
      %34 = vector.broadcast %31 : f32 to vector<2x5xf32>
      %35 = arith.subf %33, %34 : vector<2x5xf32>
      %c0_22 = arith.constant 0 : index
      %c0_23 = arith.constant 0 : index
      %36 = vector.load %arg6[%c0_22, %c0_23] : memref<2x5xf32, #tpu.memory_space<vmem>>, vector<2x5xf32>
      tpu.vector_store %arg6[%c0_22, %c0_23], %35 {strides = array<i32>} : memref<2x5xf32, #tpu.memory_space<vmem>>, vector<2x5xf32>,
    } else {
    }
    return
  }
  func.func @transform_0(%arg0: i32) -> (i32, i32) {
    %c0_i32 = arith.constant 0 : i32
    %c0_i32_0 = arith.constant 0 : i32
    return %c0_i32, %arg0 : i32, i32
  }
  func.func @transform_1(%arg0: i32) -> (i32, i32) {
    %c0_i32 = arith.constant 0 : i32
    %c0_i32_0 = arith.constant 0 : i32
    return %arg0, %c0_i32 : i32, i32
  }
  func.func @transform_2(%arg0: i32) -> (i32, i32) {
    %c0_i32 = arith.constant 0 : i32
    %c0_i32_0 = arith.constant 0 : i32
    %c0_i32_1 = arith.constant 0 : i32
    return %c0_i32, %c0_i32_0 : i32, i32
  }
  func.func @transform_3(%arg0: i32) -> (i32, i32) {
    %c0_i32 = arith.constant 0 : i32
    %c0_i32_0 = arith.constant 0 : i32
    %c0_i32_1 = arith.constant 0 : i32
    return %c0_i32, %c0_i32_0 : i32, i32
  }
  func.func @transform_4(%arg0: i32) -> (i32, i32) {
    %c0_i32 = arith.constant 0 : i32
    %c0_i32_0 = arith.constant 0 : i32
    %c0_i32_1 = arith.constant 0 : i32
    return %c0_i32, %c0_i32_0 : i32, i32
  }
  func.func @transform_5(%arg0: i32) -> (i32, i32) {
    %c0_i32 = arith.constant 0 : i32
    %c0_i32_0 = arith.constant 0 : i32
    %c0_i32_1 = arith.constant 0 : i32
    return %c0_i32, %c0_i32_0 : i32, i32
  }
}

</mosaic_0001>

<bundles_post_ra>
// kernel: attention_dueling_dqn_forward.5
= control target key start
LH: loop header
LB: loop body
LE: loop exit
PB: predicated region body
PF: predicated region fallthrough
CT: control target
= control target key end

     0   :  { %v994_v0 = vmov 0   ;;  %vm776_vm0 = vcmask 257024   ;;  %s1639_s1 = inlined_call_operand.vmem [shape: bf16[256,32], index: 1, kind: input, shape index: {}]   ;;  %s1640_s0 = inlined_call_operand.vmem [shape: f32[392,256], index: 0, kind: input, shape index: {}]   ;;  %s1641_s2 = inlined_call_operand.vmem [shape: f32[1,32], index: 2, kind: input, shape index: {}]   ;;  %s1642_s3 = inlined_call_operand.vmem [shape: bf16[392,32], index: 3, kind: output, shape index: {}]  }
   0x1   :  { %298 = vmatprep.subr.bf16.mxu0 %v994_v0  ;;  %v978_v1 = vld [vmem:[%s1639_s1] sm:$0xff]   ;;  %945 = vmatprep.subr.bf16.mxu1 %v994_v0  ;;  %v979_v2 = vld [vmem:[%s1639_s1 + $0x8] sm:$0xff]   ;;  %v980_v3 = vld [vmem:[%s1639_s1 + $0x10] sm:$0xff]  }
   0x2   :  { %299 = vmatpush1.bf16.msra.mxu0 %v978_v1  ;;  %961 = vmatpush1.bf16.msra.mxu1 %v978_v1  ;;  %v981_v4 = vld [vmem:[%s1639_s1 + $0x18] sm:$0xff]   ;;  %v982_v5 = vld [vmem:[%s1639_s1 + $0x20] sm:$0xff]   ;;  %v16_v6 = vld [vmem:[%s1640_s0 + $0x8] sm:$0xff] }
   0x3   :  { %300 = vmatprep.subr.bf16.mxu0 %v994_v0  ;;  %946 = vmatprep.subr.bf16.mxu1 %v994_v0  ;;  %v18_v7 = vld [vmem:[%s1640_s0 + $0x18] sm:$0xff]  ;;  %v68_v9 = vld [vmem:[%s1640_s0 + $0x1a8] sm:$0xff]  ;;  %v984_v13 = vld [vmem:[%s1639_s1 + $0x30] sm:$0xff]  }
   0x4   :  { %v114_v8 = vpack.c.bf16 %v18_v7, %v16_v6  ;;  %v70_v10 = vld [vmem:[%s1640_s0 + $0x1b8] sm:$0xff]  ;;  %v983_v11 = vld [vmem:[%s1639_s1 + $0x28] sm:$0xff]   ;;  %v986_v15 = vld [vmem:[%s1639_s1 + $0x40] sm:$0xff]  }
   0x5   :  { %v140_v12 = vpack.c.bf16 %v70_v10, %v68_v9  ;;  %v985_v14 = vld [vmem:[%s1639_s1 + $0x38] sm:$0xff]   ;;  %v987_v16 = vld [vmem:[%s1639_s1 + $0x48] sm:$0xff]   ;;  %v988_v17 = vld [vmem:[%s1639_s1 + $0x50] sm:$0xff]  }
   0x6   :  { %301 = vmatpush1.bf16.msra.mxu0 %v979_v2  ;;  %962 = vmatpush1.bf16.msra.mxu1 %v979_v2  ;;  %v989_v18 = vld [vmem:[%s1639_s1 + $0x58] sm:$0xff]   ;;  %v990_v19 = vld [vmem:[%s1639_s1 + $0x60] sm:$0xff]   ;;  %v991_v20 = vld [vmem:[%s1639_s1 + $0x68] sm:$0xff]  }
   0x7   :  { %302 = vmatprep.subr.bf16.mxu0 %v994_v0  ;;  %947 = vmatprep.subr.bf16.mxu1 %v994_v0  ;;  %v992_v21 = vld [vmem:[%s1639_s1 + $0x70] sm:$0xff]   ;;  %v993_v22 = vld [vmem:[%s1639_s1 + $0x78] sm:$0xff]   ;;  %v15_v23 = vld [vmem:[%s1640_s0] sm:$0xff] }
   0x8   :  { %330 = vmatprep.mubr.bf16.mxu0 %v114_v8  ;;  %434 = vmatprep.mubr.bf16.mxu1 %v140_v12  ;;  %v17_v24 = vld [vmem:[%s1640_s0 + $0x10] sm:$0xff]  ;;  %v20_v25 = vld [vmem:[%s1640_s0 + $0x28] sm:$0xff]  ;;  %v67_v26 = vld [vmem:[%s1640_s0 + $0x1a0] sm:$0xff] }
   0x9   :  { %v69_v27 = vld [vmem:[%s1640_s0 + $0x1b0] sm:$0xff]  ;;  %v22_v28 = vld [vmem:[%s1640_s0 + $0x38] sm:$0xff]  ;;  %v72_v29 = vld [vmem:[%s1640_s0 + $0x1c8] sm:$0xff]  ;;  %v113_v31 = vpack.c.bf16 %v17_v24, %v15_v23 }
   0xa   :  { %303 = vmatpush1.bf16.msra.mxu0 %v980_v3  ;;  %963 = vmatpush1.bf16.msra.mxu1 %v980_v3  ;;  %v74_v30 = vld [vmem:[%s1640_s0 + $0x1d8] sm:$0xff]  ;;  %v139_v32 = vpack.c.bf16 %v69_v27, %v67_v26  ;;  %v116_v33 = vpack.c.bf16 %v22_v28, %v20_v25  ;;  %v19_v35 = vld [vmem:[%s1640_s0 + $0x20] sm:$0xff]  ;;  %v21_v36 = vld [vmem:[%s1640_s0 + $0x30] sm:$0xff] }
   0xb   :  { %304 = vmatprep.subr.bf16.mxu0 %v994_v0  ;;  %948 = vmatprep.subr.bf16.mxu1 %v994_v0  ;;  %v142_v34 = vpack.c.bf16 %v74_v30, %v72_v29  ;;  %v24_v37 = vld [vmem:[%s1640_s0 + $0x48] sm:$0xff]  ;;  %v71_v38 = vld [vmem:[%s1640_s0 + $0x1c0] sm:$0xff]  ;;  %v73_v39 = vld [vmem:[%s1640_s0 + $0x1d0] sm:$0xff]  ;;  %v115_v43 = vpack.c.bf16 %v21_v36, %v19_v35 }
   0xc   :  { %v26_v40 = vld [vmem:[%s1640_s0 + $0x58] sm:$0xff]  ;;  %v76_v41 = vld [vmem:[%s1640_s0 + $0x1e8] sm:$0xff]  ;;  %v141_v44 = vpack.c.bf16 %v73_v39, %v71_v38  ;;  %v23_v47 = vld [vmem:[%s1640_s0 + $0x40] sm:$0xff] }
   0xd   :  { %v78_v42 = vld [vmem:[%s1640_s0 + $0x1f8] sm:$0xff]  ;;  %v118_v45 = vpack.c.bf16 %v26_v40, %v24_v37  ;;  %v25_v48 = vld [vmem:[%s1640_s0 + $0x50] sm:$0xff]  ;;  %v28_v49 = vld [vmem:[%s1640_s0 + $0x68] sm:$0xff] }
   0xe   :  { %305 = vmatpush1.bf16.msra.mxu0 %v981_v4  ;;  %964 = vmatpush1.bf16.msra.mxu1 %v981_v4  ;;  %v144_v46 = vpack.c.bf16 %v78_v42, %v76_v41  ;;  %v75_v50 = vld [vmem:[%s1640_s0 + $0x1e0] sm:$0xff]  ;;  %v77_v51 = vld [vmem:[%s1640_s0 + $0x1f0] sm:$0xff]  ;;  %v30_v52 = vld [vmem:[%s1640_s0 + $0x78] sm:$0xff]  ;;  %v117_v55 = vpack.c.bf16 %v25_v48, %v23_v47 }
   0xf   :  { %306 = vmatprep.subr.bf16.mxu0 %v994_v0  ;;  %949 = vmatprep.subr.bf16.mxu1 %v994_v0  ;;  %v80_v53 = vld [vmem:[%s1640_s0 + $0x208] sm:$0xff]  ;;  %v82_v54 = vld [vmem:[%s1640_s0 + $0x218] sm:$0xff]  ;;  %v143_v56 = vpack.c.bf16 %v77_v51, %v75_v50  ;;  %v120_v57 = vpack.c.bf16 %v30_v52, %v28_v49  ;;  %v27_v59 = vld [vmem:[%s1640_s0 + $0x60] sm:$0xff] }
  0x10   :  { %v146_v58 = vpack.c.bf16 %v82_v54, %v80_v53  ;;  %v29_v60 = vld [vmem:[%s1640_s0 + $0x70] sm:$0xff]  ;;  %v32_v61 = vld [vmem:[%s1640_s0 + $0x88] sm:$0xff]  ;;  %v79_v62 = vld [vmem:[%s1640_s0 + $0x200] sm:$0xff] }
  0x11   :  { %v81_v63 = vld [vmem:[%s1640_s0 + $0x210] sm:$0xff]  ;;  %v84_v1 = vld [vmem:[%s1640_s0 + $0x228] sm:$0xff]  ;;  %v86_v2 = vld [vmem:[%s1640_s0 + $0x238] sm:$0xff]  ;;  %v119_v3 = vpack.c.bf16 %v29_v60, %v27_v59 }
  0x12   :  { %307 = vmatpush1.bf16.msra.mxu0 %v982_v5  ;;  %965 = vmatpush1.bf16.msra.mxu1 %v982_v5  ;;  %v145_v4 = vpack.c.bf16 %v81_v63, %v79_v62  ;;  %v148_v6 = vpack.c.bf16 %v86_v2, %v84_v1  ;;  %v31_v7 = vld [vmem:[%s1640_s0 + $0x80] sm:$0xff]  ;;  %v33_v8 = vld [vmem:[%s1640_s0 + $0x90] sm:$0xff]  ;;  %v36_v9 = vld [vmem:[%s1640_s0 + $0xa8] sm:$0xff] }
  0x13   :  { %308 = vmatprep.subr.bf16.mxu0 %v994_v0  ;;  %950 = vmatprep.subr.bf16.mxu1 %v994_v0  ;;  %v83_v10 = vld [vmem:[%s1640_s0 + $0x220] sm:$0xff]  ;;  %v38_v12 = vld [vmem:[%s1640_s0 + $0xb8] sm:$0xff]  ;;  %v89_v23 = vld [vmem:[%s1640_s0 + $0x250] sm:$0xff] }
  0x14   :  { %v42_v24 = vld [vmem:[%s1640_s0 + $0xd8] sm:$0xff]  ;;  %v92_v25 = vld [vmem:[%s1640_s0 + $0x268] sm:$0xff]  ;;  %v93_v35 = vld [vmem:[%s1640_s0 + $0x270] sm:$0xff] }
  0x15   :  { %v94_v26 = vld [vmem:[%s1640_s0 + $0x278] sm:$0xff]  ;;  %v96_v37 = vld [vmem:[%s1640_s0 + $0x288] sm:$0xff]  ;;  %v97_v47 = vld [vmem:[%s1640_s0 + $0x290] sm:$0xff] }
  0x16   :  { %309 = vmatpush1.bf16.msra.mxu0 %v983_v11  ;;  %966 = vmatpush1.bf16.msra.mxu1 %v983_v11  ;;  %v85_v11 = vld [vmem:[%s1640_s0 + $0x230] sm:$0xff]  ;;  %v152_v30 = vpack.c.bf16 %v94_v26, %v92_v25  ;;  %v46_v36 = vld [vmem:[%s1640_s0 + $0xf8] sm:$0xff]  ;;  %v100_v49 = vld [vmem:[%s1640_s0 + $0x2a8] sm:$0xff] }
  0x17   :  { %310 = vmatprep.subr.bf16.mxu0 %v994_v0  ;;  %951 = vmatprep.subr.bf16.mxu1 %v994_v0  ;;  %v98_v38 = vld [vmem:[%s1640_s0 + $0x298] sm:$0xff]  ;;  %v101_v59 = vld [vmem:[%s1640_s0 + $0x2b0] sm:$0xff]  ;;  %v59_v26 = vld [vmem:[%s1640_s0 + $0x160] sm:$0xff] }
  0x18   :  { %v154_v42 = vpack.c.bf16 %v98_v38, %v96_v37  ;;  %v50_v48 = vld [vmem:[%s1640_s0 + $0x118] sm:$0xff]  ;;  %v1392_v37 = vld [vmem:[%s1641_s2] ss:$0 sm:$0xff] }
  0x19   :  { %v102_v50 = vld [vmem:[%s1640_s0 + $0x2b8] sm:$0xff] }
  0x1a   :  { %311 = vmatpush1.bf16.msra.mxu0 %v984_v13  ;;  %967 = vmatpush1.bf16.msra.mxu1 %v984_v13  ;;  %v88_v13 = vld [vmem:[%s1640_s0 + $0x248] sm:$0xff]  ;;  %v156_v54 = vpack.c.bf16 %v102_v50, %v100_v49  ;;  %v54_v60 = vld [vmem:[%s1640_s0 + $0x138] sm:$0xff] }
  0x1b   :  { %312 = vmatprep.subr.bf16.mxu0 %v994_v0  ;;  %952 = vmatprep.subr.bf16.mxu1 %v994_v0  ;;  %v106_v62 = vld [vmem:[%s1640_s0 + $0x2d8] sm:$0xff] }
  0x1e   :  { %313 = vmatpush1.bf16.msra.mxu0 %v985_v14  ;;  %968 = vmatpush1.bf16.msra.mxu1 %v985_v14  ;;  %v90_v14 = vld [vmem:[%s1640_s0 + $0x258] sm:$0xff] }
  0x1f   :  { %314 = vmatprep.subr.bf16.mxu0 %v994_v0  ;;  %953 = vmatprep.subr.bf16.mxu1 %v994_v0 }
  0x22   :  { %315 = vmatpush1.bf16.msra.mxu0 %v986_v15  ;;  %969 = vmatpush1.bf16.msra.mxu1 %v986_v15  ;;  %v121_v15 = vpack.c.bf16 %v33_v8, %v31_v7  ;;  %v105_v7 = vld [vmem:[%s1640_s0 + $0x2d0] sm:$0xff]  ;;  %v58_v8 = vld [vmem:[%s1640_s0 + $0x158] sm:$0xff] }
  0x23   :  { %316 = vmatprep.subr.bf16.mxu0 %v994_v0  ;;  %954 = vmatprep.subr.bf16.mxu1 %v994_v0 }
  0x26   :  { %317 = vmatpush1.bf16.msra.mxu0 %v987_v16  ;;  %970 = vmatpush1.bf16.msra.mxu1 %v987_v16  ;;  %v147_v16 = vpack.c.bf16 %v85_v11, %v83_v10  ;;  %v110_v10 = vld [vmem:[%s1640_s0 + $0x2f8] sm:$0xff] }
  0x27   :  { %318 = vmatprep.subr.bf16.mxu0 %v994_v0  ;;  %955 = vmatprep.subr.bf16.mxu1 %v994_v0 }
  0x2a   :  { %319 = vmatpush1.bf16.msra.mxu0 %v988_v17  ;;  %971 = vmatpush1.bf16.msra.mxu1 %v988_v17  ;;  %v124_v17 = vpack.c.bf16 %v38_v12, %v36_v9  ;;  %v108_v9 = vld [vmem:[%s1640_s0 + $0x2e8] sm:$0xff] }
  0x2b   :  { %320 = vmatprep.subr.bf16.mxu0 %v994_v0  ;;  %956 = vmatprep.subr.bf16.mxu1 %v994_v0 }
  0x2e   :  { %321 = vmatpush1.bf16.msra.mxu0 %v989_v18  ;;  %972 = vmatpush1.bf16.msra.mxu1 %v989_v18  ;;  %v150_v18 = vpack.c.bf16 %v90_v14, %v88_v13  ;;  %v160_v14 = vpack.c.bf16 %v110_v10, %v108_v9 }
  0x2f   :  { %322 = vmatprep.subr.bf16.mxu0 %v994_v0  ;;  %957 = vmatprep.subr.bf16.mxu1 %v994_v0 }
  0x32   :  { %323 = vmatpush1.bf16.msra.mxu0 %v990_v19  ;;  %973 = vmatpush1.bf16.msra.mxu1 %v990_v19  ;;  %v35_v19 = vld [vmem:[%s1640_s0 + $0xa0] sm:$0xff] }
  0x33   :  { %324 = vmatprep.subr.bf16.mxu0 %v994_v0  ;;  %958 = vmatprep.subr.bf16.mxu1 %v994_v0 }
  0x36   :  { %325 = vmatpush1.bf16.msra.mxu0 %v991_v20  ;;  %974 = vmatpush1.bf16.msra.mxu1 %v991_v20  ;;  %v37_v20 = vld [vmem:[%s1640_s0 + $0xb0] sm:$0xff] }
  0x37   :  { %326 = vmatprep.subr.bf16.mxu0 %v994_v0  ;;  %959 = vmatprep.subr.bf16.mxu1 %v994_v0  ;;  %v123_v27 = vpack.c.bf16 %v37_v20, %v35_v19  ;;  %v60_v19 = vld [vmem:[%s1640_s0 + $0x168] sm:$0xff]  ;;  %v62_v20 = vld [vmem:[%s1640_s0 + $0x178] sm:$0xff] }
  0x3a   :  { %327 = vmatpush1.bf16.msra.mxu0 %v992_v21  ;;  %975 = vmatpush1.bf16.msra.mxu1 %v992_v21  ;;  %v40_v21 = vld [vmem:[%s1640_s0 + $0xc8] sm:$0xff] }
  0x3b   :  { %328 = vmatprep.subr.bf16.mxu0 %v994_v0  ;;  %960 = vmatprep.subr.bf16.mxu1 %v994_v0  ;;  %v34_v0 = vld [vmem:[%s1640_s0 + $0x98] sm:$0xff]  ;;  %v126_v29 = vpack.c.bf16 %v42_v24, %v40_v21  ;;  %v112_v21 = vld [vmem:[%s1640_s0 + $0x308] sm:$0xff]  ;;  %v136_v24 = vpack.c.bf16 %v62_v20, %v60_v19 }
  0x3c   :  { %v122_v5 = vpack.c.bf16 %v34_v0, %v32_v61  ;;  %v104_v61 = vld [vmem:[%s1640_s0 + $0x2c8] sm:$0xff]  ;;  %v162_v25 = vpack.c.bf16 %v112_v21, %v112_v21 }
  0x3d   :  { %v158_v2 = vpack.c.bf16 %v106_v62, %v104_v61 }
  0x3e   :  { %329 = vmatpush1.bf16.msra.mxu0 %v993_v22  ;;  %976 = vmatpush1.bf16.msra.mxu1 %v993_v22  ;;  %v87_v22 = vld [vmem:[%s1640_s0 + $0x240] sm:$0xff] }
  0x3f   :  { %v149_v28 = vpack.c.bf16 %v89_v23, %v87_v22 }
  0x41   :  { %331 = vmatmul.mubr.bf16.vlgmr.msra.gmra.mrb[0].mxu0 %v113_v31  ;;  %435 = vmatmul.mubr.bf16.vlgmr.msra.gmra.mrb[0].mxu1 %v139_v32  ;;  %v39_v31 = vld [vmem:[%s1640_s0 + $0xc0] sm:$0xff]  ;;  %v41_v32 = vld [vmem:[%s1640_s0 + $0xd0] sm:$0xff] }
  0x42   :  { %338 = vmatprep.mubr.bf16.mxu0 %v116_v33  ;;  %442 = vmatprep.mubr.bf16.mxu1 %v142_v34  ;;  %v44_v33 = vld [vmem:[%s1640_s0 + $0xe8] sm:$0xff]  ;;  %v91_v34 = vld [vmem:[%s1640_s0 + $0x260] sm:$0xff]  ;;  %v125_v39 = vpack.c.bf16 %v41_v32, %v39_v31 }
  0x43   :  { %v151_v40 = vpack.c.bf16 %v93_v35, %v91_v34  ;;  %v128_v41 = vpack.c.bf16 %v46_v36, %v44_v33  ;;  %v63_v34 = vld [vmem:[%s1640_s0 + $0x180] sm:$0xff]  ;;  %v65_v35 = vld [vmem:[%s1640_s0 + $0x190] sm:$0xff] }
  0x44   :  { %v137_v36 = vpack.c.bf16 %v65_v35, %v63_v34 }
  0x49   :  { %339 = vmatmul.mubr.bf16.gmra.mrb[4].mxu0 %v115_v43  ;;  %443 = vmatmul.mubr.bf16.gmra.mrb[4].mxu1 %v141_v44  ;;  %v43_v43 = vld [vmem:[%s1640_s0 + $0xe0] sm:$0xff]  ;;  %v45_v44 = vld [vmem:[%s1640_s0 + $0xf0] sm:$0xff] }
  0x4a   :  { %346 = vmatprep.mubr.bf16.mxu0 %v118_v45  ;;  %450 = vmatprep.mubr.bf16.mxu1 %v144_v46  ;;  %v48_v45 = vld [vmem:[%s1640_s0 + $0x108] sm:$0xff]  ;;  %v95_v46 = vld [vmem:[%s1640_s0 + $0x280] sm:$0xff]  ;;  %v127_v51 = vpack.c.bf16 %v45_v44, %v43_v43 }
  0x4b   :  { %v153_v52 = vpack.c.bf16 %v97_v47, %v95_v46  ;;  %v130_v53 = vpack.c.bf16 %v50_v48, %v48_v45 }
  0x51   :  { %347 = vmatmul.mubr.bf16.gmra.mrb[8].mxu0 %v117_v55  ;;  %451 = vmatmul.mubr.bf16.gmra.mrb[8].mxu1 %v143_v56  ;;  %v47_v55 = vld [vmem:[%s1640_s0 + $0x100] sm:$0xff]  ;;  %v49_v56 = vld [vmem:[%s1640_s0 + $0x110] sm:$0xff] }
  0x52   :  { %354 = vmatprep.mubr.bf16.mxu0 %v120_v57  ;;  %458 = vmatprep.mubr.bf16.mxu1 %v146_v58  ;;  %v52_v57 = vld [vmem:[%s1640_s0 + $0x128] sm:$0xff]  ;;  %v99_v58 = vld [vmem:[%s1640_s0 + $0x2a0] sm:$0xff]  ;;  %v129_v63 = vpack.c.bf16 %v49_v56, %v47_v55 }
  0x53   :  { %v155_v0 = vpack.c.bf16 %v101_v59, %v99_v58  ;;  %v132_v1 = vpack.c.bf16 %v54_v60, %v52_v57 }
  0x59   :  { %355 = vmatmul.mubr.bf16.gmra.mrb[12].mxu0 %v119_v3  ;;  %459 = vmatmul.mubr.bf16.gmra.mrb[12].mxu1 %v145_v4  ;;  %v51_v3 = vld [vmem:[%s1640_s0 + $0x120] sm:$0xff]  ;;  %v53_v4 = vld [vmem:[%s1640_s0 + $0x130] sm:$0xff] }
  0x5a   :  { %362 = vmatprep.mubr.bf16.mxu0 %v122_v5  ;;  %466 = vmatprep.mubr.bf16.mxu1 %v148_v6  ;;  %v56_v5 = vld [vmem:[%s1640_s0 + $0x148] sm:$0xff]  ;;  %v103_v6 = vld [vmem:[%s1640_s0 + $0x2c0] sm:$0xff]  ;;  %v131_v11 = vpack.c.bf16 %v53_v4, %v51_v3 }
  0x5b   :  { %v157_v12 = vpack.c.bf16 %v105_v7, %v103_v6  ;;  %v134_v13 = vpack.c.bf16 %v58_v8, %v56_v5 }
  0x61   :  { %363 = vmatmul.mubr.bf16.gmra.mrb[16].mxu0 %v121_v15  ;;  %467 = vmatmul.mubr.bf16.gmra.mrb[16].mxu1 %v147_v16  ;;  %v55_v15 = vld [vmem:[%s1640_s0 + $0x140] sm:$0xff]  ;;  %v57_v16 = vld [vmem:[%s1640_s0 + $0x150] sm:$0xff] }
  0x62   :  { %370 = vmatprep.mubr.bf16.mxu0 %v124_v17  ;;  %474 = vmatprep.mubr.bf16.mxu1 %v150_v18  ;;  %v107_v17 = vld [vmem:[%s1640_s0 + $0x2e0] sm:$0xff]  ;;  %v109_v18 = vld [vmem:[%s1640_s0 + $0x2f0] sm:$0xff]  ;;  %v133_v22 = vpack.c.bf16 %v57_v16, %v55_v15 }
  0x63   :  { %v159_v23 = vpack.c.bf16 %v109_v18, %v107_v17 }
  0x69   :  { %371 = vmatmul.mubr.bf16.gmra.mrb[20].mxu0 %v123_v27  ;;  %475 = vmatmul.mubr.bf16.gmra.mrb[20].mxu1 %v149_v28  ;;  %v61_v27 = vld [vmem:[%s1640_s0 + $0x170] sm:$0xff]  ;;  %v111_v28 = vld [vmem:[%s1640_s0 + $0x300] sm:$0xff] }
  0x6a   :  { %378 = vmatprep.mubr.bf16.mxu0 %v126_v29  ;;  %482 = vmatprep.mubr.bf16.mxu1 %v152_v30  ;;  %v64_v29 = vld [vmem:[%s1640_s0 + $0x188] sm:$0xff]  ;;  %v66_v30 = vld [vmem:[%s1640_s0 + $0x198] sm:$0xff]  ;;  %v135_v31 = vpack.c.bf16 %v61_v27, %v59_v26  ;;  %v161_v32 = vpack.c.bf16 %v111_v28, %v111_v28 }
  0x6b   :  { %v138_v33 = vpack.c.bf16 %v66_v30, %v64_v29 }
  0x71   :  { %379 = vmatmul.mubr.bf16.gmra.mrb[24].mxu0 %v125_v39  ;;  %483 = vmatmul.mubr.bf16.gmra.mrb[24].mxu1 %v151_v40 }
  0x72   :  { %386 = vmatprep.mubr.bf16.mxu0 %v128_v41  ;;  %490 = vmatprep.mubr.bf16.mxu1 %v154_v42 }
  0x79   :  { %387 = vmatmul.mubr.bf16.gmra.mrb[28].mxu0 %v127_v51  ;;  %491 = vmatmul.mubr.bf16.gmra.mrb[28].mxu1 %v153_v52 }
  0x7a   :  { %394 = vmatprep.mubr.bf16.mxu0 %v130_v53  ;;  %498 = vmatprep.mubr.bf16.mxu1 %v156_v54 }
  0x81   :  { %395 = vmatmul.mubr.bf16.gmra.mrb[32].mxu0 %v129_v63  ;;  %499 = vmatmul.mubr.bf16.gmra.mrb[32].mxu1 %v155_v0 }
  0x82   :  { %402 = vmatprep.mubr.bf16.mxu0 %v132_v1  ;;  %506 = vmatprep.mubr.bf16.mxu1 %v158_v2 }
  0x89   :  { %403 = vmatmul.mubr.bf16.gmra.mrb[36].mxu0 %v131_v11  ;;  %507 = vmatmul.mubr.bf16.gmra.mrb[36].mxu1 %v157_v12 }
  0x8a   :  { %410 = vmatprep.mubr.bf16.mxu0 %v134_v13  ;;  %514 = vmatprep.mubr.bf16.mxu1 %v160_v14 }
  0x91   :  { %411 = vmatmul.mubr.bf16.gmra.mrb[40].mxu0 %v133_v22  ;;  %515 = vmatmul.mubr.bf16.gmra.mrb[40].mxu1 %v159_v23 }
  0x92   :  { %418 = vmatprep.mubr.bf16.mxu0 %v136_v24  ;;  %522 = vmatprep.mubr.bf16.mxu1 %v162_v25 }
  0x99   :  { %419 = vmatmul.mubr.bf16.gmra.mrb[44].mxu0 %v135_v31  ;;  %523 = vmatmul.mubr.bf16.gmra.mrb[44].mxu1 %v161_v32 }
  0x9a   :  { %426 = vmatprep.mubr.bf16.mxu0 %v138_v33 }
  0xa1   :  { %427 = vmatmul.mubr.bf16.gmra.mrb[48].mxu0 %v137_v36 }
 0x114   :  { %v332_v38 = vpop.f32.mrb[0].mxu0  ;;  %v436_v39 = vpop.f32.mrb[0].mxu1 }
 0x115   :  { %v333_v40 = vadd.f32 %v1392_v37, %v332_v38  ;;  %v334_v41 = vpop.f32.mrb[1].mxu0  ;;  %v437_v42 = vadd.f32 %v1392_v37, %v436_v39  ;;  %v438_v43 = vpop.f32.mrb[1].mxu1 }
 0x116   :  { %v335_v44 = vpop.f32.mrb[2].mxu0  ;;  %v439_v45 = vpop.f32.mrb[2].mxu1 }
 0x117   :  { %v530_v46 = vmax.f32 %v333_v40, 0.0  ;;  %v336_v47 = vadd.f32 %v1392_v37, %v335_v44  ;;  %v337_v48 = vpop.f32.mrb[3].mxu0  ;;  %v556_v49 = vmax.f32 %v437_v42, 0.0  ;;  %v440_v50 = vadd.f32 %v1392_v37, %v439_v45  ;;  %v441_v51 = vpop.f32.mrb[3].mxu1 }
 0x119   :  { %v896_v52 = vpack.c.bf16 %v530_v46, %v530_v46  ;;  %v531_v53 = vmax.f32 %v336_v47, 0.0  ;;  %v922_v54 = vpack.c.bf16 %v556_v49, %v556_v49  ;;  %v557_v55 = vmax.f32 %v440_v50, 0.0 }
 0x11b   :  { %777 = vst.msk [vmem:[%s1642_s3] sm:$0xf] %vm776_vm0, %v896_v52  ;;  %v897_v56 = vpack.c.bf16 %v531_v53, %v531_v53  ;;  %803 = vst.msk [vmem:[%s1642_s3 + $0x68] sm:$0xf] %vm776_vm0, %v922_v54  ;;  %v923_v57 = vpack.c.bf16 %v557_v55, %v557_v55 }
 0x11c   :  { %v340_v58 = vpop.f32.mrb[4].mxu0  ;;  %v444_v59 = vpop.f32.mrb[4].mxu1 }
 0x11d   :  { %778 = vst.msk [vmem:[%s1642_s3 + $0x4] sm:$0xf] %vm776_vm0, %v897_v56  ;;  %v341_v60 = vadd.f32 %v1392_v37, %v340_v58  ;;  %v342_v61 = vpop.f32.mrb[5].mxu0  ;;  %804 = vst.msk [vmem:[%s1642_s3 + $0x6c] sm:$0xf] %vm776_vm0, %v923_v57  ;;  %v445_v62 = vadd.f32 %v1392_v37, %v444_v59  ;;  %v446_v63 = vpop.f32.mrb[5].mxu1 }
 0x11e   :  { %v343_v0 = vpop.f32.mrb[6].mxu0  ;;  %v447_v1 = vpop.f32.mrb[6].mxu1 }
 0x11f   :  { %v532_v2 = vmax.f32 %v341_v60, 0.0  ;;  %v344_v3 = vadd.f32 %v1392_v37, %v343_v0  ;;  %v345_v4 = vpop.f32.mrb[7].mxu0  ;;  %v558_v5 = vmax.f32 %v445_v62, 0.0  ;;  %v448_v6 = vadd.f32 %v1392_v37, %v447_v1  ;;  %v449_v7 = vpop.f32.mrb[7].mxu1 }
 0x121   :  { %v898_v8 = vpack.c.bf16 %v532_v2, %v532_v2  ;;  %v533_v9 = vmax.f32 %v344_v3, 0.0  ;;  %v924_v10 = vpack.c.bf16 %v558_v5, %v558_v5  ;;  %v559_v11 = vmax.f32 %v448_v6, 0.0 }
 0x123   :  { %779 = vst.msk [vmem:[%s1642_s3 + $0x8] sm:$0xf] %vm776_vm0, %v898_v8  ;;  %v899_v12 = vpack.c.bf16 %v533_v9, %v533_v9  ;;  %805 = vst.msk [vmem:[%s1642_s3 + $0x70] sm:$0xf] %vm776_vm0, %v924_v10  ;;  %v925_v13 = vpack.c.bf16 %v559_v11, %v559_v11 }
 0x124   :  { %v348_v14 = vpop.f32.mrb[8].mxu0  ;;  %v452_v15 = vpop.f32.mrb[8].mxu1 }
 0x125   :  { %780 = vst.msk [vmem:[%s1642_s3 + $0xc] sm:$0xf] %vm776_vm0, %v899_v12  ;;  %v349_v16 = vadd.f32 %v1392_v37, %v348_v14  ;;  %v350_v17 = vpop.f32.mrb[9].mxu0  ;;  %806 = vst.msk [vmem:[%s1642_s3 + $0x74] sm:$0xf] %vm776_vm0, %v925_v13  ;;  %v453_v18 = vadd.f32 %v1392_v37, %v452_v15  ;;  %v454_v19 = vpop.f32.mrb[9].mxu1 }
 0x126   :  { %v351_v20 = vpop.f32.mrb[10].mxu0  ;;  %v455_v21 = vpop.f32.mrb[10].mxu1 }
 0x127   :  { %v534_v22 = vmax.f32 %v349_v16, 0.0  ;;  %v352_v23 = vadd.f32 %v1392_v37, %v351_v20  ;;  %v353_v24 = vpop.f32.mrb[11].mxu0  ;;  %v560_v25 = vmax.f32 %v453_v18, 0.0  ;;  %v456_v26 = vadd.f32 %v1392_v37, %v455_v21  ;;  %v457_v27 = vpop.f32.mrb[11].mxu1 }
 0x129   :  { %v900_v28 = vpack.c.bf16 %v534_v22, %v534_v22  ;;  %v535_v29 = vmax.f32 %v352_v23, 0.0  ;;  %v926_v30 = vpack.c.bf16 %v560_v25, %v560_v25  ;;  %v561_v31 = vmax.f32 %v456_v26, 0.0 }
 0x12b   :  { %781 = vst.msk [vmem:[%s1642_s3 + $0x10] sm:$0xf] %vm776_vm0, %v900_v28  ;;  %v901_v32 = vpack.c.bf16 %v535_v29, %v535_v29  ;;  %807 = vst.msk [vmem:[%s1642_s3 + $0x78] sm:$0xf] %vm776_vm0, %v926_v30  ;;  %v927_v33 = vpack.c.bf16 %v561_v31, %v561_v31 }
 0x12c   :  { %v356_v34 = vpop.f32.mrb[12].mxu0  ;;  %v460_v35 = vpop.f32.mrb[12].mxu1 }
 0x12d   :  { %782 = vst.msk [vmem:[%s1642_s3 + $0x14] sm:$0xf] %vm776_vm0, %v901_v32  ;;  %v357_v36 = vadd.f32 %v1392_v37, %v356_v34  ;;  %v358_v38 = vpop.f32.mrb[13].mxu0  ;;  %808 = vst.msk [vmem:[%s1642_s3 + $0x7c] sm:$0xf] %vm776_vm0, %v927_v33  ;;  %v461_v39 = vadd.f32 %v1392_v37, %v460_v35  ;;  %v462_v40 = vpop.f32.mrb[13].mxu1 }
 0x12e   :  { %v359_v41 = vpop.f32.mrb[14].mxu0  ;;  %v463_v42 = vpop.f32.mrb[14].mxu1 }
 0x12f   :  { %v536_v43 = vmax.f32 %v357_v36, 0.0  ;;  %v360_v44 = vadd.f32 %v1392_v37, %v359_v41  ;;  %v361_v45 = vpop.f32.mrb[15].mxu0  ;;  %v562_v46 = vmax.f32 %v461_v39, 0.0  ;;  %v464_v47 = vadd.f32 %v1392_v37, %v463_v42  ;;  %v465_v48 = vpop.f32.mrb[15].mxu1 }
 0x131   :  { %v902_v49 = vpack.c.bf16 %v536_v43, %v536_v43  ;;  %v537_v50 = vmax.f32 %v360_v44, 0.0  ;;  %v928_v51 = vpack.c.bf16 %v562_v46, %v562_v46  ;;  %v563_v52 = vmax.f32 %v464_v47, 0.0 }
 0x133   :  { %783 = vst.msk [vmem:[%s1642_s3 + $0x18] sm:$0xf] %vm776_vm0, %v902_v49  ;;  %v903_v53 = vpack.c.bf16 %v537_v50, %v537_v50  ;;  %809 = vst.msk [vmem:[%s1642_s3 + $0x80] sm:$0xf] %vm776_vm0, %v928_v51  ;;  %v929_v54 = vpack.c.bf16 %v563_v52, %v563_v52 }
 0x134   :  { %v364_v55 = vpop.f32.mrb[16].mxu0  ;;  %v468_v56 = vpop.f32.mrb[16].mxu1 }
 0x135   :  { %784 = vst.msk [vmem:[%s1642_s3 + $0x1c] sm:$0xf] %vm776_vm0, %v903_v53  ;;  %v365_v57 = vadd.f32 %v1392_v37, %v364_v55  ;;  %v366_v58 = vpop.f32.mrb[17].mxu0  ;;  %810 = vst.msk [vmem:[%s1642_s3 + $0x84] sm:$0xf] %vm776_vm0, %v929_v54  ;;  %v469_v59 = vadd.f32 %v1392_v37, %v468_v56  ;;  %v470_v60 = vpop.f32.mrb[17].mxu1 }
 0x136   :  { %v367_v61 = vpop.f32.mrb[18].mxu0  ;;  %v471_v62 = vpop.f32.mrb[18].mxu1 }
 0x137   :  { %v538_v63 = vmax.f32 %v365_v57, 0.0  ;;  %v368_v0 = vadd.f32 %v1392_v37, %v367_v61  ;;  %v369_v1 = vpop.f32.mrb[19].mxu0  ;;  %v564_v2 = vmax.f32 %v469_v59, 0.0  ;;  %v472_v3 = vadd.f32 %v1392_v37, %v471_v62  ;;  %v473_v4 = vpop.f32.mrb[19].mxu1 }
 0x139   :  { %v904_v5 = vpack.c.bf16 %v538_v63, %v538_v63  ;;  %v539_v6 = vmax.f32 %v368_v0, 0.0  ;;  %v930_v7 = vpack.c.bf16 %v564_v2, %v564_v2  ;;  %v565_v8 = vmax.f32 %v472_v3, 0.0 }
 0x13b   :  { %785 = vst.msk [vmem:[%s1642_s3 + $0x20] sm:$0xf] %vm776_vm0, %v904_v5  ;;  %v905_v9 = vpack.c.bf16 %v539_v6, %v539_v6  ;;  %811 = vst.msk [vmem:[%s1642_s3 + $0x88] sm:$0xf] %vm776_vm0, %v930_v7  ;;  %v931_v10 = vpack.c.bf16 %v565_v8, %v565_v8 }
 0x13c   :  { %v372_v11 = vpop.f32.mrb[20].mxu0  ;;  %v476_v12 = vpop.f32.mrb[20].mxu1 }
 0x13d   :  { %786 = vst.msk [vmem:[%s1642_s3 + $0x24] sm:$0xf] %vm776_vm0, %v905_v9  ;;  %v373_v13 = vadd.f32 %v1392_v37, %v372_v11  ;;  %v374_v14 = vpop.f32.mrb[21].mxu0  ;;  %812 = vst.msk [vmem:[%s1642_s3 + $0x8c] sm:$0xf] %vm776_vm0, %v931_v10  ;;  %v477_v15 = vadd.f32 %v1392_v37, %v476_v12  ;;  %v478_v16 = vpop.f32.mrb[21].mxu1 }
 0x13e   :  { %v375_v17 = vpop.f32.mrb[22].mxu0  ;;  %v479_v18 = vpop.f32.mrb[22].mxu1 }
 0x13f   :  { %v540_v19 = vmax.f32 %v373_v13, 0.0  ;;  %v376_v20 = vadd.f32 %v1392_v37, %v375_v17  ;;  %v377_v21 = vpop.f32.mrb[23].mxu0  ;;  %v566_v22 = vmax.f32 %v477_v15, 0.0  ;;  %v480_v23 = vadd.f32 %v1392_v37, %v479_v18  ;;  %v481_v24 = vpop.f32.mrb[23].mxu1 }
 0x141   :  { %v906_v25 = vpack.c.bf16 %v540_v19, %v540_v19  ;;  %v541_v26 = vmax.f32 %v376_v20, 0.0  ;;  %v932_v27 = vpack.c.bf16 %v566_v22, %v566_v22  ;;  %v567_v28 = vmax.f32 %v480_v23, 0.0 }
 0x143   :  { %787 = vst.msk [vmem:[%s1642_s3 + $0x28] sm:$0xf] %vm776_vm0, %v906_v25  ;;  %v907_v29 = vpack.c.bf16 %v541_v26, %v541_v26  ;;  %813 = vst.msk [vmem:[%s1642_s3 + $0x90] sm:$0xf] %vm776_vm0, %v932_v27  ;;  %v933_v30 = vpack.c.bf16 %v567_v28, %v567_v28 }
 0x144   :  { %v380_v31 = vpop.f32.mrb[24].mxu0  ;;  %v484_v32 = vpop.f32.mrb[24].mxu1 }
 0x145   :  { %788 = vst.msk [vmem:[%s1642_s3 + $0x2c] sm:$0xf] %vm776_vm0, %v907_v29  ;;  %v381_v33 = vadd.f32 %v1392_v37, %v380_v31  ;;  %v382_v34 = vpop.f32.mrb[25].mxu0  ;;  %814 = vst.msk [vmem:[%s1642_s3 + $0x94] sm:$0xf] %vm776_vm0, %v933_v30  ;;  %v485_v35 = vadd.f32 %v1392_v37, %v484_v32  ;;  %v486_v36 = vpop.f32.mrb[25].mxu1 }
 0x146   :  { %v383_v38 = vpop.f32.mrb[26].mxu0  ;;  %v487_v39 = vpop.f32.mrb[26].mxu1 }
 0x147   :  { %v542_v40 = vmax.f32 %v381_v33, 0.0  ;;  %v384_v41 = vadd.f32 %v1392_v37, %v383_v38  ;;  %v385_v42 = vpop.f32.mrb[27].mxu0  ;;  %v568_v43 = vmax.f32 %v485_v35, 0.0  ;;  %v488_v44 = vadd.f32 %v1392_v37, %v487_v39  ;;  %v489_v45 = vpop.f32.mrb[27].mxu1 }
 0x149   :  { %v908_v46 = vpack.c.bf16 %v542_v40, %v542_v40  ;;  %v543_v47 = vmax.f32 %v384_v41, 0.0  ;;  %v934_v48 = vpack.c.bf16 %v568_v43, %v568_v43  ;;  %v569_v49 = vmax.f32 %v488_v44, 0.0 }
 0x14b   :  { %789 = vst.msk [vmem:[%s1642_s3 + $0x30] sm:$0xf] %vm776_vm0, %v908_v46  ;;  %v909_v50 = vpack.c.bf16 %v543_v47, %v543_v47  ;;  %815 = vst.msk [vmem:[%s1642_s3 + $0x98] sm:$0xf] %vm776_vm0, %v934_v48  ;;  %v935_v51 = vpack.c.bf16 %v569_v49, %v569_v49 }
 0x14c   :  { %v388_v52 = vpop.f32.mrb[28].mxu0  ;;  %v492_v53 = vpop.f32.mrb[28].mxu1 }
 0x14d   :  { %790 = vst.msk [vmem:[%s1642_s3 + $0x34] sm:$0xf] %vm776_vm0, %v909_v50  ;;  %v389_v54 = vadd.f32 %v1392_v37, %v388_v52  ;;  %v390_v55 = vpop.f32.mrb[29].mxu0  ;;  %816 = vst.msk [vmem:[%s1642_s3 + $0x9c] sm:$0xf] %vm776_vm0, %v935_v51  ;;  %v493_v56 = vadd.f32 %v1392_v37, %v492_v53  ;;  %v494_v57 = vpop.f32.mrb[29].mxu1 }
 0x14e   :  { %v391_v58 = vpop.f32.mrb[30].mxu0  ;;  %v495_v59 = vpop.f32.mrb[30].mxu1 }
 0x14f   :  { %v544_v60 = vmax.f32 %v389_v54, 0.0  ;;  %v392_v61 = vadd.f32 %v1392_v37, %v391_v58  ;;  %v393_v62 = vpop.f32.mrb[31].mxu0  ;;  %v570_v63 = vmax.f32 %v493_v56, 0.0  ;;  %v496_v0 = vadd.f32 %v1392_v37, %v495_v59  ;;  %v497_v1 = vpop.f32.mrb[31].mxu1 }
 0x151   :  { %v910_v2 = vpack.c.bf16 %v544_v60, %v544_v60  ;;  %v545_v3 = vmax.f32 %v392_v61, 0.0  ;;  %v936_v4 = vpack.c.bf16 %v570_v63, %v570_v63  ;;  %v571_v5 = vmax.f32 %v496_v0, 0.0 }
 0x153   :  { %791 = vst.msk [vmem:[%s1642_s3 + $0x38] sm:$0xf] %vm776_vm0, %v910_v2  ;;  %v911_v6 = vpack.c.bf16 %v545_v3, %v545_v3  ;;  %817 = vst.msk [vmem:[%s1642_s3 + $0xa0] sm:$0xf] %vm776_vm0, %v936_v4  ;;  %v937_v7 = vpack.c.bf16 %v571_v5, %v571_v5 }
 0x154   :  { %v396_v8 = vpop.f32.mrb[32].mxu0  ;;  %v500_v9 = vpop.f32.mrb[32].mxu1 }
 0x155   :  { %792 = vst.msk [vmem:[%s1642_s3 + $0x3c] sm:$0xf] %vm776_vm0, %v911_v6  ;;  %v397_v10 = vadd.f32 %v1392_v37, %v396_v8  ;;  %v398_v11 = vpop.f32.mrb[33].mxu0  ;;  %818 = vst.msk [vmem:[%s1642_s3 + $0xa4] sm:$0xf] %vm776_vm0, %v937_v7  ;;  %v501_v12 = vadd.f32 %v1392_v37, %v500_v9  ;;  %v502_v13 = vpop.f32.mrb[33].mxu1 }
 0x156   :  { %v399_v14 = vpop.f32.mrb[34].mxu0  ;;  %v503_v15 = vpop.f32.mrb[34].mxu1 }
 0x157   :  { %v546_v16 = vmax.f32 %v397_v10, 0.0  ;;  %v400_v17 = vadd.f32 %v1392_v37, %v399_v14  ;;  %v401_v18 = vpop.f32.mrb[35].mxu0  ;;  %v572_v19 = vmax.f32 %v501_v12, 0.0  ;;  %v504_v20 = vadd.f32 %v1392_v37, %v503_v15  ;;  %v505_v21 = vpop.f32.mrb[35].mxu1 }
 0x159   :  { %v912_v22 = vpack.c.bf16 %v546_v16, %v546_v16  ;;  %v547_v23 = vmax.f32 %v400_v17, 0.0  ;;  %v938_v24 = vpack.c.bf16 %v572_v19, %v572_v19  ;;  %v573_v25 = vmax.f32 %v504_v20, 0.0 }
 0x15b   :  { %793 = vst.msk [vmem:[%s1642_s3 + $0x40] sm:$0xf] %vm776_vm0, %v912_v22  ;;  %v913_v26 = vpack.c.bf16 %v547_v23, %v547_v23  ;;  %819 = vst.msk [vmem:[%s1642_s3 + $0xa8] sm:$0xf] %vm776_vm0, %v938_v24  ;;  %v939_v27 = vpack.c.bf16 %v573_v25, %v573_v25 }
 0x15c   :  { %v404_v28 = vpop.f32.mrb[36].mxu0  ;;  %v508_v29 = vpop.f32.mrb[36].mxu1 }
 0x15d   :  { %794 = vst.msk [vmem:[%s1642_s3 + $0x44] sm:$0xf] %vm776_vm0, %v913_v26  ;;  %v405_v30 = vadd.f32 %v1392_v37, %v404_v28  ;;  %v406_v31 = vpop.f32.mrb[37].mxu0  ;;  %820 = vst.msk [vmem:[%s1642_s3 + $0xac] sm:$0xf] %vm776_vm0, %v939_v27  ;;  %v509_v32 = vadd.f32 %v1392_v37, %v508_v29  ;;  %v510_v33 = vpop.f32.mrb[37].mxu1 }
 0x15e   :  { %v407_v34 = vpop.f32.mrb[38].mxu0  ;;  %v511_v35 = vpop.f32.mrb[38].mxu1 }
 0x15f   :  { %v548_v36 = vmax.f32 %v405_v30, 0.0  ;;  %v408_v38 = vadd.f32 %v1392_v37, %v407_v34  ;;  %v409_v39 = vpop.f32.mrb[39].mxu0  ;;  %v574_v40 = vmax.f32 %v509_v32, 0.0  ;;  %v512_v41 = vadd.f32 %v1392_v37, %v511_v35  ;;  %v513_v42 = vpop.f32.mrb[39].mxu1 }
 0x161   :  { %v914_v43 = vpack.c.bf16 %v548_v36, %v548_v36  ;;  %v549_v44 = vmax.f32 %v408_v38, 0.0  ;;  %v940_v45 = vpack.c.bf16 %v574_v40, %v574_v40  ;;  %v575_v46 = vmax.f32 %v512_v41, 0.0 }
 0x163   :  { %795 = vst.msk [vmem:[%s1642_s3 + $0x48] sm:$0xf] %vm776_vm0, %v914_v43  ;;  %v915_v47 = vpack.c.bf16 %v549_v44, %v549_v44  ;;  %821 = vst.msk [vmem:[%s1642_s3 + $0xb0] sm:$0xf] %vm776_vm0, %v940_v45  ;;  %v941_v48 = vpack.c.bf16 %v575_v46, %v575_v46 }
 0x164   :  { %v412_v49 = vpop.f32.mrb[40].mxu0  ;;  %v516_v50 = vpop.f32.mrb[40].mxu1 }
 0x165   :  { %796 = vst.msk [vmem:[%s1642_s3 + $0x4c] sm:$0xf] %vm776_vm0, %v915_v47  ;;  %v413_v51 = vadd.f32 %v1392_v37, %v412_v49  ;;  %v414_v52 = vpop.f32.mrb[41].mxu0  ;;  %822 = vst.msk [vmem:[%s1642_s3 + $0xb4] sm:$0xf] %vm776_vm0, %v941_v48  ;;  %v517_v53 = vadd.f32 %v1392_v37, %v516_v50  ;;  %v518_v54 = vpop.f32.mrb[41].mxu1 }
 0x166   :  { %v415_v55 = vpop.f32.mrb[42].mxu0  ;;  %v519_v56 = vpop.f32.mrb[42].mxu1 }
 0x167   :  { %v550_v57 = vmax.f32 %v413_v51, 0.0  ;;  %v416_v58 = vadd.f32 %v1392_v37, %v415_v55  ;;  %v417_v59 = vpop.f32.mrb[43].mxu0  ;;  %v576_v60 = vmax.f32 %v517_v53, 0.0  ;;  %v520_v61 = vadd.f32 %v1392_v37, %v519_v56  ;;  %v521_v62 = vpop.f32.mrb[43].mxu1 }
 0x169   :  { %v916_v63 = vpack.c.bf16 %v550_v57, %v550_v57  ;;  %v551_v0 = vmax.f32 %v416_v58, 0.0  ;;  %v942_v1 = vpack.c.bf16 %v576_v60, %v576_v60  ;;  %v577_v2 = vmax.f32 %v520_v61, 0.0 }
 0x16b   :  { %797 = vst.msk [vmem:[%s1642_s3 + $0x50] sm:$0xf] %vm776_vm0, %v916_v63  ;;  %v917_v3 = vpack.c.bf16 %v551_v0, %v551_v0  ;;  %823 = vst.msk [vmem:[%s1642_s3 + $0xb8] sm:$0xf] %vm776_vm0, %v942_v1  ;;  %v943_v4 = vpack.c.bf16 %v577_v2, %v577_v2 }
 0x16c   :  { %v420_v5 = vpop.f32.mrb[44].mxu0  ;;  %v524_v6 = vpop.f32.mrb[44].mxu1 }
 0x16d   :  { %798 = vst.msk [vmem:[%s1642_s3 + $0x54] sm:$0xf] %vm776_vm0, %v917_v3  ;;  %v421_v7 = vadd.f32 %v1392_v37, %v420_v5  ;;  %v422_v8 = vpop.f32.mrb[45].mxu0  ;;  %824 = vst.msk [vmem:[%s1642_s3 + $0xbc] sm:$0xf] %vm776_vm0, %v943_v4  ;;  %v525_v9 = vadd.f32 %v1392_v37, %v524_v6  ;;  %v526_v10 = vpop.f32.mrb[45].mxu1 }
 0x16e   :  { %v423_v11 = vpop.f32.mrb[46].mxu0  ;;  %v527_v12 = vpop.f32.mrb[46].mxu1 }
 0x16f   :  { %v552_v13 = vmax.f32 %v421_v7, 0.0  ;;  %v424_v14 = vadd.f32 %v1392_v37, %v423_v11  ;;  %v425_v15 = vpop.f32.mrb[47].mxu0  ;;  %v578_v16 = vmax.f32 %v525_v9, 0.0  ;;  %v528_v17 = vpop.f32.mrb[47].mxu1 }
 0x171   :  { %v918_v18 = vpack.c.bf16 %v552_v13, %v552_v13  ;;  %v553_v19 = vmax.f32 %v424_v14, 0.0  ;;  %v944_v20 = vpack.c.bf16 %v578_v16, %v578_v16 }
 0x173   :  { %799 = vst.msk [vmem:[%s1642_s3 + $0x58] sm:$0xf] %vm776_vm0, %v918_v18  ;;  %v919_v21 = vpack.c.bf16 %v553_v19, %v553_v19  ;;  %825 = vst.msk [vmem:[%s1642_s3 + $0xc0] sm:$0xf] %vm776_vm0, %v944_v20 }
 0x174   :  { %v428_v22 = vpop.f32.mrb[48].mxu0 }
 0x175   :  { %800 = vst.msk [vmem:[%s1642_s3 + $0x5c] sm:$0xf] %vm776_vm0, %v919_v21  ;;  %v429_v23 = vadd.f32 %v1392_v37, %v428_v22  ;;  %v430_v24 = vpop.f32.mrb[49].mxu0 }
 0x176   :  { %v431_v25 = vpop.f32.mrb[50].mxu0 }
 0x177   :  { %v554_v26 = vmax.f32 %v429_v23, 0.0  ;;  %v432_v27 = vadd.f32 %v1392_v37, %v431_v25  ;;  %v433_v28 = vpop.f32.mrb[51].mxu0 }
 0x179   :  { %v920_v29 = vpack.c.bf16 %v554_v26, %v554_v26  ;;  %v555_v30 = vmax.f32 %v432_v27, 0.0 }
 0x17b   :  { %801 = vst.msk [vmem:[%s1642_s3 + $0x60] sm:$0xf] %vm776_vm0, %v920_v29  ;;  %v921_v31 = vpack.c.bf16 %v555_v30, %v555_v30 }
 0x17d   :  { %802 = vst.msk [vmem:[%s1642_s3 + $0x64] sm:$0xf] %vm776_vm0, %v921_v31 }

// kernel: attention_dueling_dqn_forward.6
= control target key start
LH: loop header
LB: loop body
LE: loop exit
PB: predicated region body
PF: predicated region fallthrough
CT: control target
= control target key end

     0   :  { %vm580_vm0 = vcmask 519168   ;;  %s1037_s1 = inlined_call_operand.vmem [shape: bf16[512,64], index: 1, kind: input, shape index: {}]   ;;  %s1038_s0 = inlined_call_operand.vmem [shape: bf16[72,512], index: 0, kind: input, shape index: {}]   ;;  %s1039_s2 = inlined_call_operand.vmem [shape: f32[1,64], index: 2, kind: input, shape index: {}]   ;;  %s1040_s3 = inlined_call_operand.vmem [shape: bf16[72,64], index: 3, kind: output, shape index: {}]  }
   0x1   :  { %v757_v0 = vld [vmem:[%s1037_s1 + $0x40] sm:$0xff]   ;;  %v761_v4 = vld [vmem:[%s1037_s1 + $0x48] sm:$0xff]   ;;  %v765_v8 = vld [vmem:[%s1037_s1 + $0x50] sm:$0xff]  }
   0x2   :  { %v758_v1 = vld [vmem:[%s1037_s1 + $0xc0] sm:$0xff]   ;;  %665 = vmatprep.subr.bf16.mxu0 %v757_v0  ;;  %v762_v5 = vld [vmem:[%s1037_s1 + $0xc8] sm:$0xff]   ;;  %v766_v9 = vld [vmem:[%s1037_s1 + $0xd0] sm:$0xff]  }
   0x3   :  { %v759_v2 = vld [vmem:[%s1037_s1] sm:$0xff]   ;;  %711 = vmatprep.subr.bf16.mxu1 %v758_v1  ;;  %v763_v6 = vld [vmem:[%s1037_s1 + $0x8] sm:$0xff]   ;;  %v767_v10 = vld [vmem:[%s1037_s1 + $0x10] sm:$0xff]  }
   0x4   :  { %v760_v3 = vld [vmem:[%s1037_s1 + $0x80] sm:$0xff]   ;;  %666 = vmatpush3.bf16.msra.mxu0 %v759_v2  ;;  %v764_v7 = vld [vmem:[%s1037_s1 + $0x88] sm:$0xff]   ;;  %v768_v11 = vld [vmem:[%s1037_s1 + $0x90] sm:$0xff]  }
   0x5   :  { %712 = vmatpush3.bf16.msra.mxu1 %v760_v3  ;;  %667 = vmatprep.subr.bf16.mxu0 %v761_v4  ;;  %v769_v12 = vld [vmem:[%s1037_s1 + $0x58] sm:$0xff]   ;;  %v773_v16 = vld [vmem:[%s1037_s1 + $0x60] sm:$0xff]   ;;  %v777_v20 = vld [vmem:[%s1037_s1 + $0x68] sm:$0xff]  }
   0x6   :  { %713 = vmatprep.subr.bf16.mxu1 %v762_v5  ;;  %v770_v13 = vld [vmem:[%s1037_s1 + $0xd8] sm:$0xff]   ;;  %v774_v17 = vld [vmem:[%s1037_s1 + $0xe0] sm:$0xff]   ;;  %v778_v21 = vld [vmem:[%s1037_s1 + $0xe8] sm:$0xff]  }
   0x7   :  { %v771_v14 = vld [vmem:[%s1037_s1 + $0x18] sm:$0xff]   ;;  %v775_v18 = vld [vmem:[%s1037_s1 + $0x20] sm:$0xff]   ;;  %v779_v22 = vld [vmem:[%s1037_s1 + $0x28] sm:$0xff]  }
   0x8   :  { %668 = vmatpush3.bf16.msra.mxu0 %v763_v6  ;;  %v772_v15 = vld [vmem:[%s1037_s1 + $0x98] sm:$0xff]   ;;  %v776_v19 = vld [vmem:[%s1037_s1 + $0xa0] sm:$0xff]   ;;  %v780_v23 = vld [vmem:[%s1037_s1 + $0xa8] sm:$0xff]  }
   0x9   :  { %714 = vmatpush3.bf16.msra.mxu1 %v764_v7  ;;  %669 = vmatprep.subr.bf16.mxu0 %v765_v8  ;;  %v781_v24 = vld [vmem:[%s1037_s1 + $0x70] sm:$0xff]   ;;  %v785_v28 = vld [vmem:[%s1037_s1 + $0x78] sm:$0xff]   ;;  %v31_v46 = vld [vmem:[%s1038_s0 + $0x80] sm:$0xff] }
   0xa   :  { %715 = vmatprep.subr.bf16.mxu1 %v766_v9  ;;  %v782_v25 = vld [vmem:[%s1037_s1 + $0xf0] sm:$0xff]   ;;  %v786_v29 = vld [vmem:[%s1037_s1 + $0xf8] sm:$0xff]   ;;  %v32_v47 = vld [vmem:[%s1038_s0 + $0x88] sm:$0xff]  ;;  %v612_v50 = vcombine.high %v31_v46, %v31_v46  ;;  %v611_v52 = vcombine.low %v31_v46, %v31_v46 }
   0xb   :  { %v783_v26 = vld [vmem:[%s1037_s1 + $0x30] sm:$0xff]   ;;  %v787_v30 = vld [vmem:[%s1037_s1 + $0x38] sm:$0xff]   ;;  %v614_v51 = vcombine.high %v32_v47, %v32_v47  ;;  %v613_v53 = vcombine.low %v32_v47, %v32_v47  ;;  %v990_v56 = vld [vmem:[%s1039_s2] ss:$0 sm:$0xff] }
   0xc   :  { %670 = vmatpush3.bf16.msra.mxu0 %v767_v10  ;;  %v784_v27 = vld [vmem:[%s1037_s1 + $0xb0] sm:$0xff]   ;;  %v788_v31 = vld [vmem:[%s1037_s1 + $0xb8] sm:$0xff]  }
   0xd   :  { %716 = vmatpush3.bf16.msra.mxu1 %v768_v11  ;;  %671 = vmatprep.subr.bf16.mxu0 %v769_v12  ;;  %v789_v32 = vld [vmem:[%s1038_s0] ss:$16 sps:$4 sm:$0xff]   ;;  %v791_v33 = vld [vmem:[%s1038_s0 + $0x4] ss:$16 sps:$4 sm:$0xff]   ;;  %v792_v34 = vld [vmem:[%s1038_s0 + $0x8] ss:$16 sps:$4 sm:$0xff]  }
   0xe   :  { %717 = vmatprep.subr.bf16.mxu1 %v770_v13  ;;  %v794_v35 = vld [vmem:[%s1038_s0 + $0xc] ss:$16 sps:$4 sm:$0xff]   ;;  %422 = vmatprep.mubr.bf16.mxu0 %v791_v33  ;;  %v795_v36 = vld [vmem:[%s1038_s0 + $0x24] ss:$16 sps:$4 sm:$0xff]   ;;  %v799_v38 = vld [vmem:[%s1038_s0 + $0x20] ss:$16 sps:$4 sm:$0xff]  }
   0xf   :  { %494 = vmatprep.mubr.bf16.mxu1 %v794_v35  ;;  %v797_v37 = vld [vmem:[%s1038_s0 + $0x2c] ss:$16 sps:$4 sm:$0xff]   ;;  %v800_v39 = vld [vmem:[%s1038_s0 + $0x28] ss:$16 sps:$4 sm:$0xff]   ;;  %v801_v40 = vld [vmem:[%s1038_s0 + $0x44] ss:$16 sps:$4 sm:$0xff]  }
  0x10   :  { %672 = vmatpush3.bf16.msra.mxu0 %v771_v14  ;;  %v803_v41 = vld [vmem:[%s1038_s0 + $0x4c] ss:$16 sps:$4 sm:$0xff]   ;;  %v805_v42 = vld [vmem:[%s1038_s0 + $0x40] ss:$16 sps:$4 sm:$0xff]   ;;  %v806_v43 = vld [vmem:[%s1038_s0 + $0x48] ss:$16 sps:$4 sm:$0xff]  }
  0x11   :  { %718 = vmatpush3.bf16.msra.mxu1 %v772_v15  ;;  %673 = vmatprep.subr.bf16.mxu0 %v773_v16  ;;  %v807_v44 = vld [vmem:[%s1038_s0 + $0x64] ss:$16 sps:$4 sm:$0xff]   ;;  %v809_v45 = vld [vmem:[%s1038_s0 + $0x6c] ss:$16 sps:$4 sm:$0xff]   ;;  %v811_v48 = vld [vmem:[%s1038_s0 + $0x60] ss:$16 sps:$4 sm:$0xff]  }
  0x12   :  { %719 = vmatprep.subr.bf16.mxu1 %v774_v17  ;;  %v812_v49 = vld [vmem:[%s1038_s0 + $0x68] ss:$16 sps:$4 sm:$0xff]  }
  0x14   :  { %674 = vmatpush3.bf16.msra.mxu0 %v775_v18 }
  0x15   :  { %720 = vmatpush3.bf16.msra.mxu1 %v776_v19  ;;  %675 = vmatprep.subr.bf16.mxu0 %v777_v20 }
  0x16   :  { %721 = vmatprep.subr.bf16.mxu1 %v778_v21 }
  0x18   :  { %676 = vmatpush3.bf16.msra.mxu0 %v779_v22 }
  0x19   :  { %722 = vmatpush3.bf16.msra.mxu1 %v780_v23  ;;  %677 = vmatprep.subr.bf16.mxu0 %v781_v24 }
  0x1a   :  { %723 = vmatprep.subr.bf16.mxu1 %v782_v25 }
  0x1c   :  { %678 = vmatpush3.bf16.msra.mxu0 %v783_v26 }
  0x1d   :  { %724 = vmatpush3.bf16.msra.mxu1 %v784_v27  ;;  %679 = vmatprep.subr.bf16.mxu0 %v785_v28 }
  0x1e   :  { %725 = vmatprep.subr.bf16.mxu1 %v786_v29 }
  0x20   :  { %680 = vmatpush3.bf16.msra.mxu0 %v787_v30 }
  0x21   :  { %726 = vmatpush3.bf16.msra.mxu1 %v788_v31 }
  0x23   :  { %423 = vmatmul.mubr.bf16.vlgmr.msra.gmra.mrb[0].mxu0 %v789_v32 }
  0x24   :  { %495 = vmatmul.mubr.bf16.vlgmr.msra.gmra.mrb[0].mxu1 %v792_v34  ;;  %430 = vmatprep.mubr.bf16.mxu0 %v795_v36 }
  0x25   :  { %502 = vmatprep.mubr.bf16.mxu1 %v797_v37 }
  0x2b   :  { %431 = vmatmul.mubr.bf16.gmra.mrb[4].mxu0 %v799_v38 }
  0x2c   :  { %503 = vmatmul.mubr.bf16.gmra.mrb[4].mxu1 %v800_v39  ;;  %438 = vmatprep.mubr.bf16.mxu0 %v801_v40 }
  0x2d   :  { %510 = vmatprep.mubr.bf16.mxu1 %v803_v41 }
  0x33   :  { %439 = vmatmul.mubr.bf16.gmra.mrb[8].mxu0 %v805_v42 }
  0x34   :  { %511 = vmatmul.mubr.bf16.gmra.mrb[8].mxu1 %v806_v43  ;;  %446 = vmatprep.mubr.bf16.mxu0 %v807_v44 }
  0x35   :  { %518 = vmatprep.mubr.bf16.mxu1 %v809_v45 }
  0x3b   :  { %447 = vmatmul.mubr.bf16.gmra.mrb[12].mxu0 %v811_v48 }
  0x3c   :  { %519 = vmatmul.mubr.bf16.gmra.mrb[12].mxu1 %v812_v49  ;;  %454 = vmatprep.mubr.bf16.mxu0 %v612_v50 }
  0x3d   :  { %526 = vmatprep.mubr.bf16.mxu1 %v614_v51 }
  0x43   :  { %455 = vmatmul.mubr.bf16.gmra.mrb[16].mxu0 %v611_v52 }
  0x44   :  { %527 = vmatmul.mubr.bf16.gmra.mrb[16].mxu1 %v613_v53 }
  0xf6   :  { %v681_v54 = vpop.f32.mrb[0].mxu0 }
  0xf7   :  { %v727_v55 = vpop.f32.mrb[0].mxu1  ;;  %v682_v57 = vpop.f32.mrb[1].mxu0 }
  0xf8   :  { %v683_v58 = vadd.f32 %v682_v57, %v681_v54  ;;  %v728_v59 = vpop.f32.mrb[1].mxu1  ;;  %v684_v60 = vpop.f32.mrb[2].mxu0 }
  0xf9   :  { %v729_v61 = vadd.f32 %v728_v59, %v727_v55  ;;  %v730_v62 = vpop.f32.mrb[2].mxu1  ;;  %v685_v63 = vpop.f32.mrb[3].mxu0 }
  0xfa   :  { %v425_v0 = vadd.f32 %v683_v58, %v990_v56  ;;  %v686_v1 = vadd.f32 %v685_v63, %v684_v60  ;;  %v731_v2 = vpop.f32.mrb[3].mxu1 }
  0xfb   :  { %v732_v3 = vadd.f32 %v731_v2, %v730_v62 }
  0xfc   :  { %v497_v4 = vadd.f32 %v729_v61, %v425_v0  ;;  %v428_v5 = vadd.f32 %v686_v1, %v990_v56 }
  0xfe   :  { %v534_v6 = vmax.f32 %v497_v4, 0.0  ;;  %v500_v7 = vadd.f32 %v732_v3, %v428_v5  ;;  %v687_v8 = vpop.f32.mrb[4].mxu0 }
  0xff   :  { %v733_v9 = vpop.f32.mrb[4].mxu1  ;;  %v688_v10 = vpop.f32.mrb[5].mxu0 }
 0x100   :  { %v656_v11 = vpack.c.bf16 %v534_v6, %v534_v6  ;;  %v535_v12 = vmax.f32 %v500_v7, 0.0  ;;  %v689_v13 = vadd.f32 %v688_v10, %v687_v8  ;;  %v734_v14 = vpop.f32.mrb[5].mxu1  ;;  %v690_v15 = vpop.f32.mrb[6].mxu0 }
 0x101   :  { %v735_v16 = vadd.f32 %v734_v14, %v733_v9  ;;  %v736_v17 = vpop.f32.mrb[6].mxu1  ;;  %v691_v18 = vpop.f32.mrb[7].mxu0 }
 0x102   :  { %581 = vst.msk [vmem:[%s1040_s3] sm:$0xf] %vm580_vm0, %v656_v11  ;;  %v657_v19 = vpack.c.bf16 %v535_v12, %v535_v12  ;;  %v433_v20 = vadd.f32 %v689_v13, %v990_v56  ;;  %v692_v21 = vadd.f32 %v691_v18, %v690_v15  ;;  %v737_v22 = vpop.f32.mrb[7].mxu1 }
 0x103   :  { %v738_v23 = vadd.f32 %v737_v22, %v736_v17 }
 0x104   :  { %582 = vst.msk [vmem:[%s1040_s3 + $0x4] sm:$0xf] %vm580_vm0, %v657_v19  ;;  %v505_v24 = vadd.f32 %v735_v16, %v433_v20  ;;  %v436_v25 = vadd.f32 %v692_v21, %v990_v56 }
 0x106   :  { %v536_v26 = vmax.f32 %v505_v24, 0.0  ;;  %v508_v27 = vadd.f32 %v738_v23, %v436_v25  ;;  %v693_v28 = vpop.f32.mrb[8].mxu0 }
 0x107   :  { %v739_v29 = vpop.f32.mrb[8].mxu1  ;;  %v694_v30 = vpop.f32.mrb[9].mxu0 }
 0x108   :  { %v658_v31 = vpack.c.bf16 %v536_v26, %v536_v26  ;;  %v537_v32 = vmax.f32 %v508_v27, 0.0  ;;  %v695_v33 = vadd.f32 %v694_v30, %v693_v28  ;;  %v740_v34 = vpop.f32.mrb[9].mxu1  ;;  %v696_v35 = vpop.f32.mrb[10].mxu0 }
 0x109   :  { %v741_v36 = vadd.f32 %v740_v34, %v739_v29  ;;  %v742_v37 = vpop.f32.mrb[10].mxu1  ;;  %v697_v38 = vpop.f32.mrb[11].mxu0 }
 0x10a   :  { %583 = vst.msk [vmem:[%s1040_s3 + $0x8] sm:$0xf] %vm580_vm0, %v658_v31  ;;  %v659_v39 = vpack.c.bf16 %v537_v32, %v537_v32  ;;  %v441_v40 = vadd.f32 %v695_v33, %v990_v56  ;;  %v698_v41 = vadd.f32 %v697_v38, %v696_v35  ;;  %v743_v42 = vpop.f32.mrb[11].mxu1 }
 0x10b   :  { %v744_v43 = vadd.f32 %v743_v42, %v742_v37 }
 0x10c   :  { %584 = vst.msk [vmem:[%s1040_s3 + $0xc] sm:$0xf] %vm580_vm0, %v659_v39  ;;  %v513_v44 = vadd.f32 %v741_v36, %v441_v40  ;;  %v444_v45 = vadd.f32 %v698_v41, %v990_v56 }
 0x10e   :  { %v538_v46 = vmax.f32 %v513_v44, 0.0  ;;  %v516_v47 = vadd.f32 %v744_v43, %v444_v45  ;;  %v699_v48 = vpop.f32.mrb[12].mxu0 }
 0x10f   :  { %v745_v49 = vpop.f32.mrb[12].mxu1  ;;  %v700_v50 = vpop.f32.mrb[13].mxu0 }
 0x110   :  { %v660_v51 = vpack.c.bf16 %v538_v46, %v538_v46  ;;  %v539_v52 = vmax.f32 %v516_v47, 0.0  ;;  %v701_v53 = vadd.f32 %v700_v50, %v699_v48  ;;  %v746_v54 = vpop.f32.mrb[13].mxu1  ;;  %v702_v55 = vpop.f32.mrb[14].mxu0 }
 0x111   :  { %v747_v57 = vadd.f32 %v746_v54, %v745_v49  ;;  %v748_v58 = vpop.f32.mrb[14].mxu1  ;;  %v703_v59 = vpop.f32.mrb[15].mxu0 }
 0x112   :  { %585 = vst.msk [vmem:[%s1040_s3 + $0x10] sm:$0xf] %vm580_vm0, %v660_v51  ;;  %v661_v60 = vpack.c.bf16 %v539_v52, %v539_v52  ;;  %v449_v61 = vadd.f32 %v701_v53, %v990_v56  ;;  %v704_v62 = vadd.f32 %v703_v59, %v702_v55  ;;  %v749_v63 = vpop.f32.mrb[15].mxu1 }
 0x113   :  { %v750_v0 = vadd.f32 %v749_v63, %v748_v58 }
 0x114   :  { %586 = vst.msk [vmem:[%s1040_s3 + $0x14] sm:$0xf] %vm580_vm0, %v661_v60  ;;  %v521_v1 = vadd.f32 %v747_v57, %v449_v61  ;;  %v452_v2 = vadd.f32 %v704_v62, %v990_v56 }
 0x116   :  { %v540_v3 = vmax.f32 %v521_v1, 0.0  ;;  %v524_v4 = vadd.f32 %v750_v0, %v452_v2  ;;  %v705_v5 = vpop.f32.mrb[16].mxu0 }
 0x117   :  { %v751_v6 = vpop.f32.mrb[16].mxu1  ;;  %v706_v7 = vpop.f32.mrb[17].mxu0 }
 0x118   :  { %v662_v8 = vpack.c.bf16 %v540_v3, %v540_v3  ;;  %v541_v9 = vmax.f32 %v524_v4, 0.0  ;;  %v707_v10 = vadd.f32 %v706_v7, %v705_v5  ;;  %v752_v11 = vpop.f32.mrb[17].mxu1  ;;  %v708_v12 = vpop.f32.mrb[18].mxu0 }
 0x119   :  { %v753_v13 = vadd.f32 %v752_v11, %v751_v6  ;;  %v754_v14 = vpop.f32.mrb[18].mxu1  ;;  %v709_v15 = vpop.f32.mrb[19].mxu0 }
 0x11a   :  { %587 = vst.msk [vmem:[%s1040_s3 + $0x18] sm:$0xf] %vm580_vm0, %v662_v8  ;;  %v663_v16 = vpack.c.bf16 %v541_v9, %v541_v9  ;;  %v457_v17 = vadd.f32 %v707_v10, %v990_v56  ;;  %v755_v18 = vpop.f32.mrb[19].mxu1 }
 0x11c   :  { %588 = vst.msk [vmem:[%s1040_s3 + $0x1c] sm:$0xf] %vm580_vm0, %v663_v16  ;;  %v529_v19 = vadd.f32 %v753_v13, %v457_v17 }
 0x11e   :  { %v542_v20 = vmax.f32 %v529_v19, 0.0 }
 0x120   :  { %v664_v21 = vpack.c.bf16 %v542_v20, %v542_v20 }
 0x122   :  { %589 = vst.msk [vmem:[%s1040_s3 + $0x20] sm:$0xf] %vm580_vm0, %v664_v21 }

// kernel: attention_dueling_dqn_forward.7
= control target key start
LH: loop header
LB: loop body
LE: loop exit
PB: predicated region body
PF: predicated region fallthrough
CT: control target
= control target key end

     0   :  { %vm372_vm0 = vcmask 523264   ;;  %vm546_vm1 = vcmask 519168   ;;  %s909_s1 = inlined_call_operand.vmem [shape: bf16[576,64], index: 1, kind: input, shape index: {}]   ;;  %s910_s0 = inlined_call_operand.vmem [shape: bf16[32,576], index: 0, kind: input, shape index: {}]   ;;  %s911_s2 = inlined_call_operand.vmem [shape: f32[1,64], index: 2, kind: input, shape index: {}]   ;;  %s912_s3 = inlined_call_operand.vmem [shape: bf16[32,64], index: 3, kind: output, shape index: {}]  }
   0x1   :  { %v686_v0 = vld [vmem:[%s909_s1 + $0x40] sm:$0xff]   ;;  %v690_v4 = vld [vmem:[%s909_s1 + $0x48] sm:$0xff]   ;;  %v694_v8 = vld [vmem:[%s909_s1 + $0x50] sm:$0xff]  }
   0x2   :  { %v687_v1 = vld [vmem:[%s909_s1] sm:$0xff]   ;;  %612 = vmatprep.subr.bf16.mxu0 %v686_v0  ;;  %v691_v5 = vld [vmem:[%s909_s1 + $0x8] sm:$0xff]   ;;  %v695_v9 = vld [vmem:[%s909_s1 + $0x10] sm:$0xff]  }
   0x3   :  { %v688_v2 = vld [vmem:[%s909_s1 + $0xc0] sm:$0xff]   ;;  %613 = vmatpush3.bf16.msra.mxu0 %v687_v1  ;;  %v692_v6 = vld [vmem:[%s909_s1 + $0xc8] sm:$0xff]   ;;  %v696_v10 = vld [vmem:[%s909_s1 + $0xd0] sm:$0xff]  }
   0x4   :  { %v689_v3 = vld [vmem:[%s909_s1 + $0x80] sm:$0xff]   ;;  %640 = vmatprep.subr.bf16.mxu1 %v688_v2  ;;  %614 = vmatprep.subr.bf16.mxu0 %v690_v4  ;;  %v693_v7 = vld [vmem:[%s909_s1 + $0x88] sm:$0xff]   ;;  %v697_v11 = vld [vmem:[%s909_s1 + $0x90] sm:$0xff]  }
   0x5   :  { %641 = vmatpush3.bf16.msra.mxu1 %v689_v3  ;;  %v698_v12 = vld [vmem:[%s909_s1 + $0x58] sm:$0xff]   ;;  %v702_v16 = vld [vmem:[%s909_s1 + $0x60] sm:$0xff]   ;;  %v706_v20 = vld [vmem:[%s909_s1 + $0x68] sm:$0xff]  }
   0x6   :  { %642 = vmatprep.subr.bf16.mxu1 %v692_v6  ;;  %v699_v13 = vld [vmem:[%s909_s1 + $0x18] sm:$0xff]   ;;  %v703_v17 = vld [vmem:[%s909_s1 + $0x20] sm:$0xff]   ;;  %v707_v21 = vld [vmem:[%s909_s1 + $0x28] sm:$0xff]  }
   0x7   :  { %615 = vmatpush3.bf16.msra.mxu0 %v691_v5  ;;  %v700_v14 = vld [vmem:[%s909_s1 + $0xd8] sm:$0xff]   ;;  %v704_v18 = vld [vmem:[%s909_s1 + $0xe0] sm:$0xff]   ;;  %v708_v22 = vld [vmem:[%s909_s1 + $0xe8] sm:$0xff]  }
   0x8   :  { %616 = vmatprep.subr.bf16.mxu0 %v694_v8  ;;  %v701_v15 = vld [vmem:[%s909_s1 + $0x98] sm:$0xff]   ;;  %v705_v19 = vld [vmem:[%s909_s1 + $0xa0] sm:$0xff]   ;;  %v709_v23 = vld [vmem:[%s909_s1 + $0xa8] sm:$0xff]  }
   0x9   :  { %643 = vmatpush3.bf16.msra.mxu1 %v693_v7  ;;  %v710_v24 = vld [vmem:[%s909_s1 + $0x70] sm:$0xff]   ;;  %v714_v28 = vld [vmem:[%s909_s1 + $0x78] sm:$0xff]   ;;  %v721_v34 = vld [vmem:[%s909_s1 + $0x100] sm:$0xff]  }
   0xa   :  { %644 = vmatprep.subr.bf16.mxu1 %v696_v10  ;;  %v711_v25 = vld [vmem:[%s909_s1 + $0x30] sm:$0xff]   ;;  %v715_v29 = vld [vmem:[%s909_s1 + $0x38] sm:$0xff]   ;;  %v724_v36 = vld [vmem:[%s910_s0 + $0xc] ss:$20 sps:$4 sm:$0xff]  }
   0xb   :  { %617 = vmatpush3.bf16.msra.mxu0 %v695_v9  ;;  %v712_v26 = vld [vmem:[%s909_s1 + $0xf0] sm:$0xff]   ;;  %v716_v30 = vld [vmem:[%s909_s1 + $0xf8] sm:$0xff]   ;;  %v725_v37 = vld [vmem:[%s909_s1 + $0x108] sm:$0xff]   ;;  %460 = vmatprep.mubr.bf16.mxu1 %v724_v36 }
   0xc   :  { %618 = vmatprep.subr.bf16.mxu0 %v698_v12  ;;  %v713_v27 = vld [vmem:[%s909_s1 + $0xb0] sm:$0xff]   ;;  %v719_v32 = vld [vmem:[%s910_s0 + $0x4] ss:$20 sps:$4 sm:$0xff]   ;;  %v722_v35 = vld [vmem:[%s910_s0 + $0x8] ss:$20 sps:$4 sm:$0xff]  }
   0xd   :  { %645 = vmatpush3.bf16.msra.mxu1 %v697_v11  ;;  %v717_v31 = vld [vmem:[%s910_s0] ss:$20 sps:$4 sm:$0xff]   ;;  %v720_v33 = vld [vmem:[%s909_s1 + $0xb8] sm:$0xff]   ;;  %411 = vmatprep.mubr.bf16.mxu0 %v719_v32  ;;  %v732_v42 = vld [vmem:[%s910_s0 + $0x30] ss:$20 sps:$4 sm:$0xff]  }
   0xe   :  { %646 = vmatprep.subr.bf16.mxu1 %v700_v14  ;;  %v726_v38 = vld [vmem:[%s910_s0 + $0x2c] ss:$20 sps:$4 sm:$0xff]   ;;  %v728_v39 = vld [vmem:[%s910_s0 + $0x28] ss:$20 sps:$4 sm:$0xff]   ;;  %v729_v40 = vld [vmem:[%s909_s1 + $0x110] sm:$0xff]  }
   0xf   :  { %619 = vmatpush3.bf16.msra.mxu0 %v699_v13  ;;  %v730_v41 = vld [vmem:[%s910_s0 + $0x34] ss:$20 sps:$4 sm:$0xff]   ;;  %v733_v43 = vld [vmem:[%s909_s1 + $0x118] sm:$0xff]   ;;  %v734_v44 = vld [vmem:[%s910_s0 + $0x10] ss:$20 sps:$4 sm:$0xff]  }
  0x10   :  { %620 = vmatprep.subr.bf16.mxu0 %v702_v16  ;;  %v735_v45 = vld [vmem:[%s910_s0 + $0x38] ss:$20 sps:$4 sm:$0xff]   ;;  %v555_v47 = vld [vmem:[%s911_s2] ss:$0 sm:$0xff] }
  0x11   :  { %647 = vmatpush3.bf16.msra.mxu1 %v701_v15 }
  0x12   :  { %648 = vmatprep.subr.bf16.mxu1 %v704_v18 }
  0x13   :  { %621 = vmatpush3.bf16.msra.mxu0 %v703_v17 }
  0x14   :  { %622 = vmatprep.subr.bf16.mxu0 %v706_v20 }
  0x15   :  { %649 = vmatpush3.bf16.msra.mxu1 %v705_v19 }
  0x16   :  { %650 = vmatprep.subr.bf16.mxu1 %v708_v22 }
  0x17   :  { %623 = vmatpush3.bf16.msra.mxu0 %v707_v21 }
  0x18   :  { %624 = vmatprep.subr.bf16.mxu0 %v710_v24 }
  0x19   :  { %651 = vmatpush3.bf16.msra.mxu1 %v709_v23 }
  0x1a   :  { %652 = vmatprep.subr.bf16.mxu1 %v712_v26 }
  0x1b   :  { %625 = vmatpush3.bf16.msra.mxu0 %v711_v25 }
  0x1c   :  { %626 = vmatprep.subr.bf16.mxu0 %v714_v28 }
  0x1d   :  { %653 = vmatpush3.bf16.msra.mxu1 %v713_v27 }
  0x1e   :  { %654 = vmatprep.subr.bf16.mxu1 %v716_v30 }
  0x1f   :  { %627 = vmatpush3.bf16.msra.mxu0 %v715_v29 }
  0x20   :  { %674 = vmatprep.subr.bf16.mxu0 %v721_v34 }
  0x21   :  { %655 = vmatpush3.bf16.msra.mxu1 %v720_v33 }
  0x22   :  { %412 = vmatmul.mubr.bf16.vlgmr.msra.gmra.mrb[0].mxu0 %v717_v31 }
  0x23   :  { %675 = vmatpush3.bf16.msra.mxu0 %v721_v34  ;;  %419 = vmatprep.mubr.bf16.mxu0 %v726_v38 }
  0x24   :  { %461 = vmatmul.mubr.bf16.vlgmr.msra.gmra.mrb[0].mxu1 %v722_v35  ;;  %676 = vmatprep.subr.bf16.mxu0 %v725_v37 }
  0x25   :  { %468 = vmatprep.mubr.bf16.mxu1 %v730_v41 }
  0x27   :  { %677 = vmatpush3.bf16.msra.mxu0 %v725_v37 }
  0x28   :  { %678 = vmatprep.subr.bf16.mxu0 %v729_v40 }
  0x2a   :  { %420 = vmatmul.mubr.bf16.gmra.mrb[4].mxu0 %v728_v39 }
  0x2b   :  { %682 = vmatprep.mubr.msk.bf16.mxu0 %vm372_vm0, %v734_v44  ;;  %679 = vmatpush3.bf16.msra.mxu0 %v729_v40 }
  0x2c   :  { %469 = vmatmul.mubr.bf16.gmra.mrb[4].mxu1 %v732_v42  ;;  %680 = vmatprep.subr.bf16.mxu0 %v733_v43 }
  0x2f   :  { %681 = vmatpush3.bf16.msra.mxu0 %v733_v43 }
  0x32   :  { %683 = vmatmul.mubr.msk.bf16.vlgmr.msra.gmra.mrb[8].mxu0 %vm372_vm0, %v735_v45 }
  0xf5   :  { %v628_v46 = vpop.f32.mrb[0].mxu0 }
  0xf6   :  { %v629_v48 = vpop.f32.mrb[1].mxu0 }
  0xf7   :  { %v630_v49 = vadd.f32 %v629_v48, %v628_v46  ;;  %v631_v50 = vpop.f32.mrb[2].mxu0  ;;  %v656_v51 = vpop.f32.mrb[0].mxu1 }
  0xf8   :  { %v632_v52 = vpop.f32.mrb[3].mxu0  ;;  %v657_v55 = vpop.f32.mrb[1].mxu1 }
  0xf9   :  { %v414_v53 = vadd.f32 %v630_v49, %v555_v47  ;;  %v633_v54 = vadd.f32 %v632_v52, %v631_v50  ;;  %v658_v56 = vadd.f32 %v657_v55, %v656_v51  ;;  %v659_v57 = vpop.f32.mrb[2].mxu1 }
  0xfa   :  { %v660_v59 = vpop.f32.mrb[3].mxu1 }
  0xfb   :  { %v417_v58 = vadd.f32 %v633_v54, %v555_v47  ;;  %v661_v60 = vadd.f32 %v660_v59, %v659_v57  ;;  %v463_v61 = vadd.f32 %v658_v56, %v414_v53 }
  0xfd   :  { %v634_v62 = vpop.f32.mrb[4].mxu0  ;;  %v466_v0 = vadd.f32 %v661_v60, %v417_v58 }
  0xfe   :  { %v635_v63 = vpop.f32.mrb[5].mxu0 }
  0xff   :  { %v636_v1 = vadd.f32 %v635_v63, %v634_v62  ;;  %v637_v2 = vpop.f32.mrb[6].mxu0  ;;  %v662_v3 = vpop.f32.mrb[4].mxu1 }
 0x100   :  { %v638_v4 = vpop.f32.mrb[7].mxu0  ;;  %v663_v7 = vpop.f32.mrb[5].mxu1 }
 0x101   :  { %v422_v5 = vadd.f32 %v636_v1, %v555_v47  ;;  %v639_v6 = vadd.f32 %v638_v4, %v637_v2  ;;  %v664_v8 = vadd.f32 %v663_v7, %v662_v3  ;;  %v665_v9 = vpop.f32.mrb[6].mxu1 }
 0x102   :  { %v666_v11 = vpop.f32.mrb[7].mxu1 }
 0x103   :  { %v425_v10 = vadd.f32 %v639_v6, %v555_v47  ;;  %v667_v12 = vadd.f32 %v666_v11, %v665_v9  ;;  %v471_v13 = vadd.f32 %v664_v8, %v422_v5 }
 0x105   :  { %v684_v14 = vpop.f32.mrb[8].mxu0  ;;  %v474_v15 = vadd.f32 %v667_v12, %v425_v10 }
 0x106   :  { %v520_v16 = vadd.f32 %v684_v14, %v471_v13  ;;  %v511_v17 = vpop.f32.mrb[9].mxu0 }
 0x107   :  { %v512_v18 = vadd.f32 %v511_v17, %v463_v61  ;;  %v685_v19 = vpop.f32.mrb[10].mxu0 }
 0x108   :  { %v528_v20 = vmax.f32 %v520_v16, 0.0  ;;  %v523_v21 = vadd.f32 %v685_v19, %v474_v15  ;;  %v514_v22 = vpop.f32.mrb[11].mxu0 }
 0x109   :  { %v526_v23 = vmax.f32 %v512_v18, 0.0  ;;  %v515_v24 = vadd.f32 %v514_v22, %v466_v0 }
 0x10a   :  { %v610_v25 = vpack.c.bf16 %v528_v20, %v528_v20  ;;  %v529_v26 = vmax.f32 %v523_v21, 0.0 }
 0x10b   :  { %v608_v27 = vpack.c.bf16 %v526_v23, %v526_v23  ;;  %v527_v28 = vmax.f32 %v515_v24, 0.0 }
 0x10c   :  { %549 = vst.msk [vmem:[%s912_s3 + $0x8] sm:$0xf] %vm546_vm1, %v610_v25  ;;  %v611_v29 = vpack.c.bf16 %v529_v26, %v529_v26 }
 0x10d   :  { %547 = vst.msk [vmem:[%s912_s3] sm:$0xf] %vm546_vm1, %v608_v27  ;;  %v609_v30 = vpack.c.bf16 %v527_v28, %v527_v28 }
 0x10e   :  { %550 = vst.msk [vmem:[%s912_s3 + $0xc] sm:$0xf] %vm546_vm1, %v611_v29 }
 0x10f   :  { %548 = vst.msk [vmem:[%s912_s3 + $0x4] sm:$0xf] %vm546_vm1, %v609_v30 }

// kernel: attention_dueling_dqn_forward.8
= control target key start
LH: loop header
LB: loop body
LE: loop exit
PB: predicated region body
PF: predicated region fallthrough
CT: control target
= control target key end

     0   :  { %s681_s18 = smov 0   ;;  %s736_s0 = inlined_call_operand.vmem [shape: bf16[2,16,64], index: 0, kind: input, shape index: {}]   ;;  %s737_s1 = inlined_call_operand.vmem [shape: bf16[64,96], index: 1, kind: input, shape index: {}]   ;;  %s738_s2 = inlined_call_operand.vmem [shape: f32[1,96], index: 2, kind: input, shape index: {}]   ;;  %s739_s3 = inlined_call_operand.vmem [shape: bf16[32,64], index: 3, kind: input, shape index: {}]   ;;  %s740_s4 = inlined_call_operand.vmem [shape: f32[1,64], index: 4, kind: input, shape index: {}]   ;;  %s741_s5 = inlined_call_operand.vmem [shape: f32[2,16,64], index: 5, kind: output, shape index: {}]  }
   0x1 LB: > { %s549_s19 = sadd.s32 4294967295, %s645_s18   ;;  %p553_p0 = scmp.ge.s32.totalorder %s645_s18, 1  ;;  %s645_s18 = sphi %s681_s18, %s15_s18  }
   0x2   : > { %p187_p1 = scmp.lt.s32.totalorder %s645_s18, 3 }
   0x4   : > { %p188_p2 = pnand %p553_p0, %p187_p1 }
   0x5   : > { %v631_v0 = vld [vmem:[%s737_s1] sm:$0xff] (!%p188_p2)   ;;  %v647_v1 = vmov (!%p188_p2), 0.0   ;;  %v632_v2 = vld [vmem:[%s737_s1 + $0x8] sm:$0xff] (!%p188_p2)   ;;  %vm648_vm0 = vmmov (!%p188_p2), 0   ;;  %p215_p3 = scmp.lt.s32.totalorder (!%p188_p2), %s549_s19, 1  ;;  %v633_v3 = vld [vmem:[%s737_s1 + $0x10] sm:$0xff] (!%p188_p2)  }
   0x6   : > { %191 = sbr.rel (%p188_p2) target bundleno = 1016 (0x3f8), region = 40  ;;  %587 = vmatprep.subr.bf16.mxu0 (!%p188_p2), %v647_v1  ;;  %599 = vmatprep.subr.bf16.mxu1 (!%p188_p2), %v647_v1  ;;  %v634_v4 = vld [vmem:[%s737_s1 + $0x18] sm:$0xff] (!%p188_p2)   ;;  %vm272_vm1 = vcmask (!%p188_p2), 523264   ;;  %v558_v6 = vld [vmem:[%s738_s2] ss:$0 sm:$0xff] (!%p188_p2)  ;;  %s649_s9 = smov (!%p188_p2), 96  }
   0x7   : > { %588 = vmatpush3.bf16.msra.mxu0 (!%p188_p2), %v631_v0  ;;  %595 = vmatprep.mubr.msk.bf16.mxu0 (!%p188_p2), %vm648_vm0, %v647_v1  ;;  %s650_s10 = smov (!%p188_p2), 64   ;;  %vm321_vm2 = vcmask (!%p188_p2), 261120   ;;  %v636_v17 = vld [vmem:[%s739_s3] sm:$0xff] (!%p188_p2)   ;;  %vm375_vm3 = vcmask (!%p188_p2), 130048   ;;  %v637_v25 = vld [vmem:[%s739_s3 + $0x8] sm:$0xff] (!%p188_p2)  }
   0x8   : > { %589 = vmatprep.subr.bf16.mxu0 (!%p188_p2), %v647_v1  ;;  %601 = vmatprep.mubr.msk.bf16.mxu1 (!%p188_p2), %vm648_vm0, %v647_v1  ;;  %v567_v31 = vld [vmem:[%s740_s4] ss:$0 sm:$0xff] (!%p188_p2) }
   0xb   : > { %590 = vmatpush3.bf16.msra.mxu0 (!%p188_p2), %v632_v2 }
   0xc   : > { %591 = vmatprep.subr.bf16.mxu0 (!%p188_p2), %v647_v1 }
   0xd   : > { %s743_s19 = smov (!%p215_p3, %s549_s19), 1 }
   0xe   : > { %s573_s26 = sshll.u32 %s743_s19, 3  ;;  %s574_s17 = sshll.u32 %s743_s19, 4 }
   0xf   : > { %s219_s29 = scalar_lea.vmem %s736_s0, %s573_s26  ;;  %592 = vmatpush3.bf16.msra.mxu0 %v633_v3  ;;  %s224_s22 = scalar_lea.vmem %s741_s5, %s574_s17 }
  0x10   : > { %v226_v5 = vld [vmem:[%s219_s29] sm:$0xff]   ;;  %593 = vmatprep.subr.bf16.mxu0 %v647_v1 }
  0x11   : > { %v488_v32 = vunpack.c.l.bf16 %v226_v5  ;;  %v489_v36 = vunpack.c.h.bf16 %v226_v5 }
  0x13   : > { %594 = vmatpush3.bf16.msra.mxu0 %v634_v4 }
  0x14   : > { %611 = vmatprep.subr.bf16.mxu0 %v647_v1 }
  0x16   : > { %596 = vmatmul.mubr.msk.bf16.vlgmr.msra.gmra.mrb[0].mxu0 %vm272_vm1, %v226_v5 }
  0x17   : > { %615 = vmatprep.mubr.msk.bf16.mxu0 %vm648_vm0, %v647_v1  ;;  %612 = vmatpush3.bf16.msra.mxu0 %v636_v17 }
  0x18   : > { %613 = vmatprep.subr.bf16.mxu0 %v647_v1 }
  0x1b   : > { %614 = vmatpush3.bf16.msra.mxu0 %v637_v25 }
  0xe9   : > { %v310_v7 = vpop.f32.mrb[0].mxu0 }
  0xea   : > { %v597_v8 = vpop.f32.mrb[1].mxu0  ;;  %v311_v10 = vadd.f32 %v558_v6, %v310_v7 }
  0xeb   : > { %v313_v9 = vpop.f32.mrb[2].mxu0 }
  0xec   : > { %v314_v11 = vadd.f32 %v558_v6, %v313_v9  ;;  %v598_v12 = vpop.f32.mrb[3].mxu0 }
  0xee   : > { %v317_v13 = vpack.c.bf16 %v314_v11, %v311_v10 }
  0xf0   : > { %319 = vrot.lane.b32.xlu0 %v317_v13, %s649_s9 }
  0xf4   : > { %372 = vrot.lane.b32.xlu0 %v317_v13, %s650_s10 }
 0x162   : > { %v320_v14 = vpop.permute.xlu0 %319 }
 0x163   : > { %v326_v15 = vsel %vm321_vm2, %v320_v14, 0 }
 0x164   : > { %600 = vmatpush3.bf16.xpose.msra.mxu1 %v326_v15 }
 0x165   : > { %605 = vmatprep.subr.bf16.mxu1 %v647_v1 }
 0x166   : > { %v373_v16 = vpop.permute.xlu0 %372 }
 0x16b   : > { %602 = vmatmul.mubr.msk.bf16.vlgmr.msra.gmra.mrb[0].mxu1 %vm321_vm2, %v317_v13 }
 0x16c   : > { %606 = vmatpush3.bf16.msra.mxu1 %v373_v16  ;;  %607 = vmatprep.mubr.msk.bf16.mxu1 %vm648_vm0, %v647_v1 }
 0x23e   : > { %v362_v18 = vpop.f32.mrb[0].mxu1 }
 0x23f   : > { %v603_v19 = vpop.f32.mrb[1].mxu1  ;;  %v369_v21 = vmul.f32 0.0625, %v362_v18 }
 0x240   : > { %v365_v20 = vpop.f32.mrb[2].mxu1 }
 0x241   : > { %v370_v22 = vmul.f32 0.0625, %v365_v20  ;;  %v604_v23 = vpop.f32.mrb[3].mxu1 }
 0x243   : > { %v371_v24 = vpack.c.bf16 %v370_v22, %v369_v21 }
 0x245   : > { %608 = vmatmul.mubr.msk.bf16.vlgmr.msra.gmra.mrb[4].mxu1 %vm375_vm3, %v371_v24 }
 0x318   : > { %v413_v26 = vpop.f32.mrb[4].mxu1 }
 0x319   : > { %v609_v27 = vpop.f32.mrb[5].mxu1 }
 0x31a   : > { %v416_v28 = vpop.f32.mrb[6].mxu1 }
 0x31b   : > { %v420_v29 = vpack.c.bf16 %v416_v28, %v413_v26  ;;  %v610_v30 = vpop.f32.mrb[7].mxu1 }
 0x31d   : > { %616 = vmatmul.mubr.msk.bf16.vlgmr.msra.gmra.mrb[4].mxu0 %vm321_vm2, %v420_v29 }
 0x3f0   : > { %v481_v33 = vpop.f32.mrb[4].mxu0 }
 0x3f1   : > { %v482_v34 = vadd.f32 %v567_v31, %v481_v33  ;;  %v617_v35 = vpop.f32.mrb[5].mxu0 }
 0x3f2   : > { %v484_v37 = vpop.f32.mrb[6].mxu0 }
 0x3f3   : > { %v490_v38 = vadd.f32 %v488_v32, %v482_v34  ;;  %v485_v39 = vadd.f32 %v567_v31, %v484_v37  ;;  %v618_v40 = vpop.f32.mrb[7].mxu0 }
 0x3f5   : > { %492 = vst.msk [vmem:[%s224_s22] sm:$0xff] %vm272_vm1, %v490_v38  ;;  %v491_v41 = vadd.f32 %v489_v36, %v485_v39 }
 0x3f7   : > { %493 = vst.msk [vmem:[%s224_s22 + $0x8] sm:$0xff] %vm272_vm1, %v491_v41 }
 0x3f8 PF: > { %s15_s18 = sadd.s32 1, %s645_s18  }
 0x3f9   : > { %p12_p4 = scmp.ge.s32.totalorder %s15_s18, 4  }
 0x3fb   :  { %14 = sbr.rel (!%p12_p4) target bundleno = 1 (0x1), region = 70 }

// kernel: attention_dueling_dqn_forward.9
= control target key start
LH: loop header
LB: loop body
LE: loop exit
PB: predicated region body
PF: predicated region fallthrough
CT: control target
= control target key end

     0   :  { %v5514_v32 = vmov 1983009808   ;;  %v38_v34 = vlaneseq  ;;  %s7443_s0 = inlined_call_operand.vmem [shape: f32[2,1024], index: 0, kind: input, shape index: {}]   ;;  %s7444_s1 = inlined_call_operand.vmem [shape: bf16[1024,1024], index: 1, kind: input, shape index: {}]   ;;  %s7445_s2 = inlined_call_operand.vmem [shape: f32[1,1024], index: 2, kind: input, shape index: {}]   ;;  %s7446_s3 = inlined_call_operand.vmem [shape: bf16[1024,6], index: 3, kind: input, shape index: {}]   ;;  %s7447_s4 = inlined_call_operand.vmem [shape: f32[1,6], index: 4, kind: input, shape index: {}]   ;;  %s7448_s5 = inlined_call_operand.hbm [shape: f32[2,5], index: 5, kind: output, shape index: {}]  }
   0x1   :  { %v84_v0 = vld [vmem:[%s7444_s1] sm:$0xff]  ;;  %v85_v2 = vld [vmem:[%s7444_s1 + $0x8] sm:$0xff]  ;;  %v36_v33 = vunpack.c.l.s4 %v5514_v32 }
   0x2   :  { %v88_v1 = vld [vmem:[%s7444_s1 + $0x20] sm:$0xff]  ;;  %v89_v4 = vld [vmem:[%s7444_s1 + $0x28] sm:$0xff]  ;;  %v5613_v44 = vshrl.u32 %v38_v34, 7 }
   0x3   :  { %v4706_v3 = vcombine.high %v84_v0, %v88_v1  ;;  %v4705_v5 = vcombine.low %v84_v0, %v88_v1  ;;  %v92_v6 = vld [vmem:[%s7444_s1 + $0x40] sm:$0xff]  ;;  %v4708_v8 = vcombine.high %v85_v2, %v89_v4  ;;  %v4707_v9 = vcombine.low %v85_v2, %v89_v4  ;;  %v93_v11 = vld [vmem:[%s7444_s1 + $0x48] sm:$0xff] }
   0x4   :  { %v96_v7 = vld [vmem:[%s7444_s1 + $0x60] sm:$0xff]  ;;  %v97_v12 = vld [vmem:[%s7444_s1 + $0x68] sm:$0xff]  ;;  %v37_v43 = vunpack.c.0.s8 %v36_v33 }
   0x5   :  { %v4714_v10 = vcombine.high %v92_v6, %v96_v7  ;;  %v100_v13 = vld [vmem:[%s7444_s1 + $0x80] sm:$0xff]  ;;  %3156 = vmatprep.subr.bf16.mxu0 %v4706_v3  ;;  %v4716_v14 = vcombine.high %v93_v11, %v97_v12  ;;  %v101_v16 = vld [vmem:[%s7444_s1 + $0x88] sm:$0xff]  ;;  %3320 = vmatprep.subr.bf16.mxu1 %v4708_v8  ;;  %v4713_v18 = vcombine.low %v92_v6, %v96_v7 }
   0x6   :  { %v104_v15 = vld [vmem:[%s7444_s1 + $0xa0] sm:$0xff]  ;;  %v105_v17 = vld [vmem:[%s7444_s1 + $0xa8] sm:$0xff]  ;;  %3157 = vmatpush1.bf16.msra.mxu0 %v4705_v5  ;;  %3321 = vmatpush1.bf16.msra.mxu1 %v4707_v9  ;;  %v4715_v19 = vcombine.low %v93_v11, %v97_v12  ;;  %v5628_v53 = vsub.s32 %v37_v43, %v5613_v44 }
   0x7   :  { %3158 = vmatprep.subr.bf16.mxu0 %v4714_v10  ;;  %v4722_v20 = vcombine.high %v100_v13, %v104_v15  ;;  %3322 = vmatprep.subr.bf16.mxu1 %v4716_v14  ;;  %v4724_v21 = vcombine.high %v101_v16, %v105_v17  ;;  %v108_v22 = vld [vmem:[%s7444_s1 + $0xc0] sm:$0xff]  ;;  %v109_v24 = vld [vmem:[%s7444_s1 + $0xc8] sm:$0xff]  ;;  %v4721_v26 = vcombine.low %v100_v13, %v104_v15 }
   0x8   :  { %v112_v23 = vld [vmem:[%s7444_s1 + $0xe0] sm:$0xff]  ;;  %v113_v25 = vld [vmem:[%s7444_s1 + $0xe8] sm:$0xff]  ;;  %v4723_v27 = vcombine.low %v101_v16, %v105_v17 }
   0x9   :  { %v4730_v28 = vcombine.high %v108_v22, %v112_v23  ;;  %v4732_v29 = vcombine.high %v109_v24, %v113_v25  ;;  %v116_v30 = vld [vmem:[%s7444_s1 + $0x100] sm:$0xff]  ;;  %v117_v35 = vld [vmem:[%s7444_s1 + $0x108] sm:$0xff]  ;;  %v4729_v37 = vcombine.low %v108_v22, %v112_v23  ;;  %v4731_v38 = vcombine.low %v109_v24, %v113_v25 }
   0xa   :  { %3159 = vmatpush1.bf16.msra.mxu0 %v4713_v18  ;;  %3323 = vmatpush1.bf16.msra.mxu1 %v4715_v19  ;;  %v120_v31 = vld [vmem:[%s7444_s1 + $0x120] sm:$0xff]  ;;  %v121_v36 = vld [vmem:[%s7444_s1 + $0x128] sm:$0xff] }
   0xb   :  { %3160 = vmatprep.subr.bf16.mxu0 %v4722_v20  ;;  %3324 = vmatprep.subr.bf16.mxu1 %v4724_v21  ;;  %v4738_v39 = vcombine.high %v116_v30, %v120_v31  ;;  %v4740_v40 = vcombine.high %v117_v35, %v121_v36  ;;  %v124_v41 = vld [vmem:[%s7444_s1 + $0x140] sm:$0xff]  ;;  %v125_v45 = vld [vmem:[%s7444_s1 + $0x148] sm:$0xff]  ;;  %v4737_v47 = vcombine.low %v116_v30, %v120_v31 }
   0xc   :  { %v128_v42 = vld [vmem:[%s7444_s1 + $0x160] sm:$0xff]  ;;  %v129_v46 = vld [vmem:[%s7444_s1 + $0x168] sm:$0xff]  ;;  %v4739_v48 = vcombine.low %v117_v35, %v121_v36 }
   0xd   :  { %v4746_v49 = vcombine.high %v124_v41, %v128_v42  ;;  %v4748_v50 = vcombine.high %v125_v45, %v129_v46  ;;  %v132_v51 = vld [vmem:[%s7444_s1 + $0x180] sm:$0xff]  ;;  %v133_v54 = vld [vmem:[%s7444_s1 + $0x188] sm:$0xff]  ;;  %v4745_v56 = vcombine.low %v124_v41, %v128_v42  ;;  %v4747_v57 = vcombine.low %v125_v45, %v129_v46 }
   0xe   :  { %3161 = vmatpush1.bf16.msra.mxu0 %v4721_v26  ;;  %3325 = vmatpush1.bf16.msra.mxu1 %v4723_v27  ;;  %v136_v52 = vld [vmem:[%s7444_s1 + $0x1a0] sm:$0xff]  ;;  %v137_v55 = vld [vmem:[%s7444_s1 + $0x1a8] sm:$0xff] }
   0xf   :  { %3162 = vmatprep.subr.bf16.mxu0 %v4730_v28  ;;  %3326 = vmatprep.subr.bf16.mxu1 %v4732_v29  ;;  %v4754_v58 = vcombine.high %v132_v51, %v136_v52  ;;  %v5639_v59 = vld [vmem:[%s7443_s0] sm:$0xff]  ;;  %v4756_v60 = vcombine.high %v133_v54, %v137_v55  ;;  %v141_v0 = vld [vmem:[%s7444_s1 + $0x1c8] sm:$0xff]  ;;  %v4753_v2 = vcombine.low %v132_v51, %v136_v52 }
  0x10   :  { %v140_v61 = vld [vmem:[%s7444_s1 + $0x1c0] sm:$0xff]  ;;  %v5649_v63 = vrot.slane %v5639_v59, %v5628_v53  ;;  %v145_v1 = vld [vmem:[%s7444_s1 + $0x1e8] sm:$0xff]  ;;  %v4755_v4 = vcombine.low %v133_v54, %v137_v55 }
  0x11   :  { %v144_v62 = vld [vmem:[%s7444_s1 + $0x1e0] sm:$0xff]  ;;  %v4764_v6 = vcombine.high %v141_v0, %v145_v1  ;;  %v149_v10 = vld [vmem:[%s7444_s1 + $0x208] sm:$0xff]  ;;  %v4763_v13 = vcombine.low %v141_v0, %v145_v1 }
  0x12   :  { %3163 = vmatpush1.bf16.msra.mxu0 %v4729_v37  ;;  %3327 = vmatpush1.bf16.msra.mxu1 %v4731_v38  ;;  %v49_v3 = vcombine.high %v5649_v63, %v5649_v63  ;;  %v4762_v5 = vcombine.high %v140_v61, %v144_v62  ;;  %v148_v7 = vld [vmem:[%s7444_s1 + $0x200] sm:$0xff]  ;;  %v153_v11 = vld [vmem:[%s7444_s1 + $0x228] sm:$0xff]  ;;  %v4761_v12 = vcombine.low %v140_v61, %v144_v62 }
  0x13   :  { %3164 = vmatprep.subr.bf16.mxu0 %v4738_v39  ;;  %3328 = vmatprep.subr.bf16.mxu1 %v4740_v40  ;;  %v152_v8 = vld [vmem:[%s7444_s1 + $0x220] sm:$0xff]  ;;  %v4772_v15 = vcombine.high %v149_v10, %v153_v11  ;;  %v157_v18 = vld [vmem:[%s7444_s1 + $0x248] sm:$0xff]  ;;  %v4771_v21 = vcombine.low %v149_v10, %v153_v11 }
  0x14   :  { %v5665_v9 = vpack.c.bf16 %v49_v3, %v49_v3  ;;  %v4770_v14 = vcombine.high %v148_v7, %v152_v8  ;;  %v156_v16 = vld [vmem:[%s7444_s1 + $0x240] sm:$0xff]  ;;  %v161_v19 = vld [vmem:[%s7444_s1 + $0x268] sm:$0xff]  ;;  %v4769_v20 = vcombine.low %v148_v7, %v152_v8 }
  0x15   :  { %v160_v17 = vld [vmem:[%s7444_s1 + $0x260] sm:$0xff]  ;;  %v4780_v23 = vcombine.high %v157_v18, %v161_v19  ;;  %v165_v26 = vld [vmem:[%s7444_s1 + $0x288] sm:$0xff]  ;;  %v4779_v29 = vcombine.low %v157_v18, %v161_v19 }
  0x16   :  { %3165 = vmatpush1.bf16.msra.mxu0 %v4737_v47  ;;  %3329 = vmatpush1.bf16.msra.mxu1 %v4739_v48  ;;  %v4778_v22 = vcombine.high %v156_v16, %v160_v17  ;;  %v164_v24 = vld [vmem:[%s7444_s1 + $0x280] sm:$0xff]  ;;  %v169_v27 = vld [vmem:[%s7444_s1 + $0x2a8] sm:$0xff]  ;;  %v4777_v28 = vcombine.low %v156_v16, %v160_v17 }
  0x17   :  { %3166 = vmatprep.subr.bf16.mxu0 %v4746_v49  ;;  %3330 = vmatprep.subr.bf16.mxu1 %v4748_v50  ;;  %v168_v25 = vld [vmem:[%s7444_s1 + $0x2a0] sm:$0xff]  ;;  %v4788_v31 = vcombine.high %v165_v26, %v169_v27  ;;  %v173_v34 = vld [vmem:[%s7444_s1 + $0x2c8] sm:$0xff]  ;;  %v4787_v37 = vcombine.low %v165_v26, %v169_v27 }
  0x18   :  { %3188 = vmatprep.mubr.bf16.mxu0 %v5665_v9  ;;  %3352 = vmatprep.mubr.bf16.mxu1 %v5665_v9  ;;  %v4786_v30 = vcombine.high %v164_v24, %v168_v25  ;;  %v172_v32 = vld [vmem:[%s7444_s1 + $0x2c0] sm:$0xff]  ;;  %v177_v35 = vld [vmem:[%s7444_s1 + $0x2e8] sm:$0xff]  ;;  %v4785_v36 = vcombine.low %v164_v24, %v168_v25  ;;  %v5786_v25 = vpack.c.bf16 %v5649_v63, %v5649_v63 }
  0x19   :  { %v176_v33 = vld [vmem:[%s7444_s1 + $0x2e0] sm:$0xff]  ;;  %v4796_v39 = vcombine.high %v173_v34, %v177_v35  ;;  %v181_v42 = vld [vmem:[%s7444_s1 + $0x308] sm:$0xff]  ;;  %v4795_v46 = vcombine.low %v173_v34, %v177_v35 }
  0x1a   :  { %3167 = vmatpush1.bf16.msra.mxu0 %v4745_v56  ;;  %3331 = vmatpush1.bf16.msra.mxu1 %v4747_v57  ;;  %v4794_v38 = vcombine.high %v172_v32, %v176_v33  ;;  %v180_v40 = vld [vmem:[%s7444_s1 + $0x300] sm:$0xff]  ;;  %v185_v43 = vld [vmem:[%s7444_s1 + $0x328] sm:$0xff]  ;;  %v4793_v45 = vcombine.low %v172_v32, %v176_v33 }
  0x1b   :  { %3168 = vmatprep.subr.bf16.mxu0 %v4754_v58  ;;  %3332 = vmatprep.subr.bf16.mxu1 %v4756_v60  ;;  %v184_v41 = vld [vmem:[%s7444_s1 + $0x320] sm:$0xff]  ;;  %v4804_v48 = vcombine.high %v181_v42, %v185_v43  ;;  %v189_v51 = vld [vmem:[%s7444_s1 + $0x348] sm:$0xff]  ;;  %v4803_v55 = vcombine.low %v181_v42, %v185_v43 }
  0x1c   :  { %v4802_v47 = vcombine.high %v180_v40, %v184_v41  ;;  %v188_v49 = vld [vmem:[%s7444_s1 + $0x340] sm:$0xff]  ;;  %v193_v52 = vld [vmem:[%s7444_s1 + $0x368] sm:$0xff]  ;;  %v4801_v54 = vcombine.low %v180_v40, %v184_v41 }
  0x1d   :  { %v192_v50 = vld [vmem:[%s7444_s1 + $0x360] sm:$0xff]  ;;  %v4812_v57 = vcombine.high %v189_v51, %v193_v52  ;;  %v197_v61 = vld [vmem:[%s7444_s1 + $0x388] sm:$0xff]  ;;  %v4811_v1 = vcombine.low %v189_v51, %v193_v52 }
  0x1e   :  { %3169 = vmatpush1.bf16.msra.mxu0 %v4753_v2  ;;  %3333 = vmatpush1.bf16.msra.mxu1 %v4755_v4  ;;  %v4810_v56 = vcombine.high %v188_v49, %v192_v50  ;;  %v196_v58 = vld [vmem:[%s7444_s1 + $0x380] sm:$0xff]  ;;  %v201_v62 = vld [vmem:[%s7444_s1 + $0x3a8] sm:$0xff]  ;;  %v4809_v0 = vcombine.low %v188_v49, %v192_v50 }
  0x1f   :  { %3170 = vmatprep.subr.bf16.mxu0 %v4762_v5  ;;  %3334 = vmatprep.subr.bf16.mxu1 %v4764_v6  ;;  %v200_v60 = vld [vmem:[%s7444_s1 + $0x3a0] sm:$0xff]  ;;  %v4820_v3 = vcombine.high %v197_v61, %v201_v62  ;;  %v34_v6 = vcombine.high %v5639_v59, %v5639_v59  ;;  %v205_v7 = vld [vmem:[%s7444_s1 + $0x3c8] sm:$0xff]  ;;  %v4819_v11 = vcombine.low %v197_v61, %v201_v62 }
  0x20   :  { %v4818_v2 = vcombine.high %v196_v58, %v200_v60  ;;  %v204_v4 = vld [vmem:[%s7444_s1 + $0x3c0] sm:$0xff]  ;;  %v209_v8 = vld [vmem:[%s7444_s1 + $0x3e8] sm:$0xff]  ;;  %v4817_v10 = vcombine.low %v196_v58, %v200_v60 }
  0x21   :  { %v208_v5 = vld [vmem:[%s7444_s1 + $0x3e0] sm:$0xff]  ;;  %v213_v16 = vld [vmem:[%s7444_s1 + $0x408] sm:$0xff]  ;;  %v4827_v19 = vcombine.low %v205_v7, %v209_v8 }
  0x22   :  { %3171 = vmatpush1.bf16.msra.mxu0 %v4761_v12  ;;  %3335 = vmatpush1.bf16.msra.mxu1 %v4763_v13  ;;  %v4826_v12 = vcombine.high %v204_v4, %v208_v5  ;;  %v4828_v13 = vcombine.high %v205_v7, %v209_v8  ;;  %v212_v59 = vld [vmem:[%s7444_s1 + $0x400] sm:$0xff]  ;;  %v217_v17 = vld [vmem:[%s7444_s1 + $0x428] sm:$0xff]  ;;  %v4825_v18 = vcombine.low %v204_v4, %v208_v5 }
  0x23   :  { %3172 = vmatprep.subr.bf16.mxu0 %v4770_v14  ;;  %3336 = vmatprep.subr.bf16.mxu1 %v4772_v15  ;;  %v216_v14 = vld [vmem:[%s7444_s1 + $0x420] sm:$0xff]  ;;  %v5768_v15 = vrot.slane %v34_v6, %v5628_v53  ;;  %v221_v26 = vld [vmem:[%s7444_s1 + $0x448] sm:$0xff] }
  0x24   :  { %v225_v27 = vld [vmem:[%s7444_s1 + $0x468] sm:$0xff]  ;;  %v232_v63 = vld [vmem:[%s7444_s1 + $0x4a0] sm:$0xff] }
  0x25   :  { %v50_v24 = vcombine.high %v5768_v15, %v5768_v15  ;;  %v229_v32 = vld [vmem:[%s7444_s1 + $0x488] sm:$0xff]  ;;  %v4844_v33 = vcombine.high %v221_v26, %v225_v27  ;;  %v240_v40 = vld [vmem:[%s7444_s1 + $0x4e0] sm:$0xff] }
  0x26   :  { %3173 = vmatpush1.bf16.msra.mxu0 %v4769_v20  ;;  %3337 = vmatpush1.bf16.msra.mxu1 %v4771_v21  ;;  %v4834_v20 = vcombine.high %v212_v59, %v216_v14  ;;  %v4836_v21 = vcombine.high %v213_v16, %v217_v17  ;;  %v233_v34 = vld [vmem:[%s7444_s1 + $0x4a8] sm:$0xff]  ;;  %v248_v49 = vld [vmem:[%s7444_s1 + $0x520] sm:$0xff] }
  0x27   :  { %3174 = vmatprep.subr.bf16.mxu0 %v4778_v22  ;;  %3338 = vmatprep.subr.bf16.mxu1 %v4780_v23  ;;  %v220_v22 = vld [vmem:[%s7444_s1 + $0x440] sm:$0xff]  ;;  %v5806_v35 = vpack.c.bf16 %v50_v24, %v50_v24  ;;  %v237_v41 = vld [vmem:[%s7444_s1 + $0x4c8] sm:$0xff]  ;;  %v4852_v42 = vcombine.high %v229_v32, %v233_v34 }
  0x28   :  { %v224_v23 = vld [vmem:[%s7444_s1 + $0x460] sm:$0xff]  ;;  %v241_v43 = vld [vmem:[%s7444_s1 + $0x4e8] sm:$0xff] }
  0x29   :  { %v245_v50 = vld [vmem:[%s7444_s1 + $0x508] sm:$0xff]  ;;  %v4860_v51 = vcombine.high %v237_v41, %v241_v43  ;;  %v256_v58 = vld [vmem:[%s7444_s1 + $0x560] sm:$0xff] }
  0x2a   :  { %3175 = vmatpush1.bf16.msra.mxu0 %v4777_v28  ;;  %3339 = vmatpush1.bf16.msra.mxu1 %v4779_v29  ;;  %v4833_v28 = vcombine.low %v212_v59, %v216_v14  ;;  %v4835_v29 = vcombine.low %v213_v16, %v217_v17  ;;  %v249_v52 = vld [vmem:[%s7444_s1 + $0x528] sm:$0xff]  ;;  %v264_v4 = vld [vmem:[%s7444_s1 + $0x5a0] sm:$0xff] }
  0x2b   :  { %3176 = vmatprep.subr.bf16.mxu0 %v4786_v30  ;;  %3340 = vmatprep.subr.bf16.mxu1 %v4788_v31  ;;  %v4842_v30 = vcombine.high %v220_v22, %v224_v23  ;;  %v228_v31 = vld [vmem:[%s7444_s1 + $0x480] sm:$0xff]  ;;  %v253_v60 = vld [vmem:[%s7444_s1 + $0x548] sm:$0xff]  ;;  %v4868_v61 = vcombine.high %v245_v50, %v249_v52 }
  0x2c   :  { %v257_v62 = vld [vmem:[%s7444_s1 + $0x568] sm:$0xff] }
  0x2d   :  { %v261_v5 = vld [vmem:[%s7444_s1 + $0x588] sm:$0xff]  ;;  %v4876_v6 = vcombine.high %v253_v60, %v257_v62 }
  0x2e   :  { %3177 = vmatpush1.bf16.msra.mxu0 %v4785_v36  ;;  %3341 = vmatpush1.bf16.msra.mxu1 %v4787_v37  ;;  %v4841_v36 = vcombine.low %v220_v22, %v224_v23  ;;  %v4843_v37 = vcombine.low %v221_v26, %v225_v27  ;;  %v265_v7 = vld [vmem:[%s7444_s1 + $0x5a8] sm:$0xff] }
  0x2f   :  { %3178 = vmatprep.subr.bf16.mxu0 %v4794_v38  ;;  %3342 = vmatprep.subr.bf16.mxu1 %v4796_v39  ;;  %v4850_v38 = vcombine.high %v228_v31, %v232_v63  ;;  %v236_v39 = vld [vmem:[%s7444_s1 + $0x4c0] sm:$0xff]  ;;  %v269_v59 = vld [vmem:[%s7444_s1 + $0x5c8] sm:$0xff]  ;;  %v4884_v14 = vcombine.high %v261_v5, %v265_v7 }
  0x30   :  { %v273_v16 = vld [vmem:[%s7444_s1 + $0x5e8] sm:$0xff] }
  0x31   :  { %v277_v22 = vld [vmem:[%s7444_s1 + $0x608] sm:$0xff]  ;;  %v4892_v23 = vcombine.high %v269_v59, %v273_v16  ;;  %v4891_v27 = vcombine.low %v269_v59, %v273_v16  ;;  %v332_v16 = vld [vmem:[%s7444_s1 + $0x7c0] sm:$0xff] }
  0x32   :  { %3179 = vmatpush1.bf16.msra.mxu0 %v4793_v45  ;;  %3343 = vmatpush1.bf16.msra.mxu1 %v4795_v46  ;;  %v4849_v45 = vcombine.low %v228_v31, %v232_v63  ;;  %v4851_v46 = vcombine.low %v229_v32, %v233_v34  ;;  %v281_v24 = vld [vmem:[%s7444_s1 + $0x628] sm:$0xff] }
  0x33   :  { %3180 = vmatprep.subr.bf16.mxu0 %v4802_v47  ;;  %3344 = vmatprep.subr.bf16.mxu1 %v4804_v48  ;;  %v4858_v47 = vcombine.high %v236_v39, %v240_v40  ;;  %v244_v48 = vld [vmem:[%s7444_s1 + $0x500] sm:$0xff]  ;;  %v285_v31 = vld [vmem:[%s7444_s1 + $0x648] sm:$0xff]  ;;  %v4900_v63 = vcombine.high %v277_v22, %v281_v24  ;;  %v4899_v34 = vcombine.low %v277_v22, %v281_v24 }
  0x34   :  { %v289_v32 = vld [vmem:[%s7444_s1 + $0x668] sm:$0xff] }
  0x35   :  { %v329_v59 = vld [vmem:[%s7444_s1 + $0x7a8] sm:$0xff] }
  0x36   :  { %3181 = vmatpush1.bf16.msra.mxu0 %v4801_v54  ;;  %3345 = vmatpush1.bf16.msra.mxu1 %v4803_v55  ;;  %v4857_v54 = vcombine.low %v236_v39, %v240_v40  ;;  %v4859_v55 = vcombine.low %v237_v41, %v241_v43  ;;  %v293_v39 = vld [vmem:[%s7444_s1 + $0x688] sm:$0xff]  ;;  %v4908_v40 = vcombine.high %v285_v31, %v289_v32 }
  0x37   :  { %3182 = vmatprep.subr.bf16.mxu0 %v4810_v56  ;;  %3346 = vmatprep.subr.bf16.mxu1 %v4812_v57  ;;  %v4866_v56 = vcombine.high %v244_v48, %v248_v49  ;;  %v252_v57 = vld [vmem:[%s7444_s1 + $0x540] sm:$0xff]  ;;  %v297_v41 = vld [vmem:[%s7444_s1 + $0x6a8] sm:$0xff]  ;;  %v4907_v43 = vcombine.low %v285_v31, %v289_v32 }
  0x38   :  { %v4873_v8 = vcombine.low %v252_v57, %v256_v58 }
  0x3a   :  { %3183 = vmatpush1.bf16.msra.mxu0 %v4809_v0  ;;  %3347 = vmatpush1.bf16.msra.mxu1 %v4811_v1  ;;  %v4865_v0 = vcombine.low %v244_v48, %v248_v49  ;;  %v4867_v1 = vcombine.low %v245_v50, %v249_v52  ;;  %v301_v48 = vld [vmem:[%s7444_s1 + $0x6c8] sm:$0xff]  ;;  %v4916_v49 = vcombine.high %v293_v39, %v297_v41 }
  0x3b   :  { %3184 = vmatprep.subr.bf16.mxu0 %v4818_v2  ;;  %3348 = vmatprep.subr.bf16.mxu1 %v4820_v3  ;;  %v4874_v2 = vcombine.high %v252_v57, %v256_v58  ;;  %v260_v3 = vld [vmem:[%s7444_s1 + $0x580] sm:$0xff]  ;;  %v305_v50 = vld [vmem:[%s7444_s1 + $0x6e8] sm:$0xff]  ;;  %v4915_v52 = vcombine.low %v293_v39, %v297_v41 }
  0x3c   :  { %v4881_v17 = vcombine.low %v260_v3, %v264_v4  ;;  %v309_v57 = vld [vmem:[%s7444_s1 + $0x708] sm:$0xff]  ;;  %v4924_v58 = vcombine.high %v301_v48, %v305_v50 }
  0x3d   :  { %v349_v39 = vld [vmem:[%s7444_s1 + $0x848] sm:$0xff] }
  0x3e   :  { %3185 = vmatpush1.bf16.msra.mxu0 %v4817_v10  ;;  %3349 = vmatpush1.bf16.msra.mxu1 %v4819_v11  ;;  %v4875_v10 = vcombine.low %v253_v60, %v257_v62  ;;  %v4882_v11 = vcombine.high %v260_v3, %v264_v4  ;;  %v313_v60 = vld [vmem:[%s7444_s1 + $0x728] sm:$0xff]  ;;  %v4923_v62 = vcombine.low %v301_v48, %v305_v50 }
  0x3f   :  { %3186 = vmatprep.subr.bf16.mxu0 %v4826_v12  ;;  %3350 = vmatprep.subr.bf16.mxu1 %v4828_v13  ;;  %v268_v12 = vld [vmem:[%s7444_s1 + $0x5c0] sm:$0xff]  ;;  %v317_v3 = vld [vmem:[%s7444_s1 + $0x748] sm:$0xff]  ;;  %v4932_v4 = vcombine.high %v309_v57, %v313_v60 }
  0x40   :  { %v272_v13 = vld [vmem:[%s7444_s1 + $0x5e0] sm:$0xff]  ;;  %v353_v41 = vld [vmem:[%s7444_s1 + $0x868] sm:$0xff] }
  0x41   :  { %v4889_v26 = vcombine.low %v268_v12, %v272_v13 }
  0x42   :  { %3187 = vmatpush1.bf16.msra.mxu0 %v4825_v18  ;;  %3351 = vmatpush1.bf16.msra.mxu1 %v4827_v19  ;;  %v4883_v18 = vcombine.low %v261_v5, %v265_v7  ;;  %v4890_v19 = vcombine.high %v268_v12, %v272_v13  ;;  %v321_v5 = vld [vmem:[%s7444_s1 + $0x768] sm:$0xff]  ;;  %v4931_v7 = vcombine.low %v309_v57, %v313_v60 }
  0x43   :  { %3197 = vmatprep.subr.bf16.mxu0 %v4834_v20  ;;  %3361 = vmatprep.subr.bf16.mxu1 %v4836_v21  ;;  %v276_v20 = vld [vmem:[%s7444_s1 + $0x600] sm:$0xff]  ;;  %v325_v12 = vld [vmem:[%s7444_s1 + $0x788] sm:$0xff]  ;;  %v4940_v13 = vcombine.high %v317_v3, %v321_v5 }
  0x44   :  { %v280_v21 = vld [vmem:[%s7444_s1 + $0x620] sm:$0xff]  ;;  %v4948_v22 = vcombine.high %v325_v12, %v329_v59 }
  0x45   :  { %3189 = vmatmul.mubr.bf16.vlgmr.msra.gmra.mrb[0].mxu0 %v5786_v25  ;;  %3353 = vmatmul.mubr.bf16.vlgmr.msra.gmra.mrb[0].mxu1 %v5786_v25 }
  0x46   :  { %3198 = vmatpush1.bf16.msra.mxu0 %v4833_v28  ;;  %3362 = vmatpush1.bf16.msra.mxu1 %v4835_v29  ;;  %v4898_v28 = vcombine.high %v276_v20, %v280_v21  ;;  %v284_v29 = vld [vmem:[%s7444_s1 + $0x640] sm:$0xff] }
  0x47   :  { %3199 = vmatprep.subr.bf16.mxu0 %v4842_v30  ;;  %3363 = vmatprep.subr.bf16.mxu1 %v4844_v33  ;;  %v288_v30 = vld [vmem:[%s7444_s1 + $0x660] sm:$0xff]  ;;  %v4897_v33 = vcombine.low %v276_v20, %v280_v21  ;;  %v333_v20 = vld [vmem:[%s7444_s1 + $0x7c8] sm:$0xff] }
  0x48   :  { %3229 = vmatprep.mubr.bf16.mxu0 %v5806_v35  ;;  %3393 = vmatprep.mubr.bf16.mxu1 %v5806_v35  ;;  %v337_v21 = vld [vmem:[%s7444_s1 + $0x7e8] sm:$0xff] }
  0x49   :  { %v4956_v31 = vcombine.high %v333_v20, %v337_v21 }
  0x4a   :  { %3200 = vmatpush1.bf16.msra.mxu0 %v4841_v36  ;;  %3364 = vmatpush1.bf16.msra.mxu1 %v4843_v37  ;;  %v4906_v36 = vcombine.high %v284_v29, %v288_v30  ;;  %v292_v37 = vld [vmem:[%s7444_s1 + $0x680] sm:$0xff] }
  0x4b   :  { %3201 = vmatprep.subr.bf16.mxu0 %v4850_v38  ;;  %3365 = vmatprep.subr.bf16.mxu1 %v4852_v42  ;;  %v296_v38 = vld [vmem:[%s7444_s1 + $0x6a0] sm:$0xff]  ;;  %v4905_v42 = vcombine.low %v284_v29, %v288_v30  ;;  %v341_v30 = vld [vmem:[%s7444_s1 + $0x808] sm:$0xff] }
  0x4c   :  { %v344_v29 = vld [vmem:[%s7444_s1 + $0x820] sm:$0xff] }
  0x4e   :  { %3202 = vmatpush1.bf16.msra.mxu0 %v4849_v45  ;;  %3366 = vmatpush1.bf16.msra.mxu1 %v4851_v46  ;;  %v4914_v45 = vcombine.high %v292_v37, %v296_v38  ;;  %v300_v46 = vld [vmem:[%s7444_s1 + $0x6c0] sm:$0xff] }
  0x4f   :  { %3203 = vmatprep.subr.bf16.mxu0 %v4858_v47  ;;  %3367 = vmatprep.subr.bf16.mxu1 %v4860_v51  ;;  %v304_v47 = vld [vmem:[%s7444_s1 + $0x6e0] sm:$0xff]  ;;  %v4913_v51 = vcombine.low %v292_v37, %v296_v38 }
  0x50   :  { %v348_v37 = vld [vmem:[%s7444_s1 + $0x840] sm:$0xff] }
  0x51   :  { %v352_v38 = vld [vmem:[%s7444_s1 + $0x860] sm:$0xff] }
  0x52   :  { %3204 = vmatpush1.bf16.msra.mxu0 %v4857_v54  ;;  %3368 = vmatpush1.bf16.msra.mxu1 %v4859_v55  ;;  %v4922_v54 = vcombine.high %v300_v46, %v304_v47  ;;  %v308_v55 = vld [vmem:[%s7444_s1 + $0x700] sm:$0xff] }
  0x53   :  { %3205 = vmatprep.subr.bf16.mxu0 %v4866_v56  ;;  %3369 = vmatprep.subr.bf16.mxu1 %v4868_v61  ;;  %v312_v56 = vld [vmem:[%s7444_s1 + $0x720] sm:$0xff]  ;;  %v4921_v61 = vcombine.low %v300_v46, %v304_v47 }
  0x56   :  { %3206 = vmatpush1.bf16.msra.mxu0 %v4865_v0  ;;  %3370 = vmatpush1.bf16.msra.mxu1 %v4867_v1  ;;  %v4930_v0 = vcombine.high %v308_v55, %v312_v56  ;;  %v316_v1 = vld [vmem:[%s7444_s1 + $0x740] sm:$0xff] }
  0x57   :  { %3207 = vmatprep.subr.bf16.mxu0 %v4874_v2  ;;  %3371 = vmatprep.subr.bf16.mxu1 %v4876_v6  ;;  %v320_v2 = vld [vmem:[%s7444_s1 + $0x760] sm:$0xff]  ;;  %v4929_v6 = vcombine.low %v308_v55, %v312_v56 }
  0x5a   :  { %3208 = vmatpush1.bf16.msra.mxu0 %v4873_v8  ;;  %3372 = vmatpush1.bf16.msra.mxu1 %v4875_v10  ;;  %v4938_v8 = vcombine.high %v316_v1, %v320_v2  ;;  %v324_v10 = vld [vmem:[%s7444_s1 + $0x780] sm:$0xff] }
  0x5b   :  { %3209 = vmatprep.subr.bf16.mxu0 %v4882_v11  ;;  %3373 = vmatprep.subr.bf16.mxu1 %v4884_v14  ;;  %v328_v11 = vld [vmem:[%s7444_s1 + $0x7a0] sm:$0xff]  ;;  %v4937_v14 = vcombine.low %v316_v1, %v320_v2 }
  0x5c   :  { %v4945_v24 = vcombine.low %v324_v10, %v328_v11 }
  0x5e   :  { %3210 = vmatpush1.bf16.msra.mxu0 %v4881_v17  ;;  %3374 = vmatpush1.bf16.msra.mxu1 %v4883_v18  ;;  %v4939_v17 = vcombine.low %v317_v3, %v321_v5  ;;  %v4946_v18 = vcombine.high %v324_v10, %v328_v11 }
  0x5f   :  { %3211 = vmatprep.subr.bf16.mxu0 %v4890_v19  ;;  %3375 = vmatprep.subr.bf16.mxu1 %v4892_v23  ;;  %v336_v19 = vld [vmem:[%s7444_s1 + $0x7e0] sm:$0xff]  ;;  %v5971_v23 = vld [vmem:[%s7443_s0 + $0x8] sm:$0xff] }
  0x60   :  { %v5987_v32 = vrot.slane %v5971_v23, %v5628_v53 }
  0x62   :  { %3212 = vmatpush1.bf16.msra.mxu0 %v4889_v26  ;;  %3376 = vmatpush1.bf16.msra.mxu1 %v4891_v27  ;;  %v4947_v26 = vcombine.low %v325_v12, %v329_v59  ;;  %v4954_v27 = vcombine.high %v332_v16, %v336_v19 }
  0x63   :  { %3213 = vmatprep.subr.bf16.mxu0 %v4898_v28  ;;  %3377 = vmatprep.subr.bf16.mxu1 %v4900_v63  ;;  %v340_v28 = vld [vmem:[%s7444_s1 + $0x800] sm:$0xff]  ;;  %v345_v63 = vld [vmem:[%s7444_s1 + $0x828] sm:$0xff] }
  0x66   :  { %3214 = vmatpush1.bf16.msra.mxu0 %v4897_v33  ;;  %3378 = vmatpush1.bf16.msra.mxu1 %v4899_v34  ;;  %v4953_v33 = vcombine.low %v332_v16, %v336_v19  ;;  %v4955_v34 = vcombine.low %v333_v20, %v337_v21 }
  0x67   :  { %3215 = vmatprep.subr.bf16.mxu0 %v4906_v36  ;;  %3379 = vmatprep.subr.bf16.mxu1 %v4908_v40  ;;  %v4962_v36 = vcombine.high %v340_v28, %v344_v29  ;;  %v4964_v40 = vcombine.high %v341_v30, %v345_v63 }
  0x6a   :  { %3216 = vmatpush1.bf16.msra.mxu0 %v4905_v42  ;;  %3380 = vmatpush1.bf16.msra.mxu1 %v4907_v43  ;;  %v66_v42 = vcombine.high %v5987_v32, %v5987_v32  ;;  %v6005_v43 = vpack.c.bf16 %v5768_v15, %v5768_v15 }
  0x6b   :  { %3217 = vmatprep.subr.bf16.mxu0 %v4914_v45  ;;  %3381 = vmatprep.subr.bf16.mxu1 %v4916_v49  ;;  %v4961_v45 = vcombine.low %v340_v28, %v344_v29 }
  0x6e   :  { %3218 = vmatpush1.bf16.msra.mxu0 %v4913_v51  ;;  %3382 = vmatpush1.bf16.msra.mxu1 %v4915_v52 }
  0x6f   :  { %3219 = vmatprep.subr.bf16.mxu0 %v4922_v54  ;;  %3383 = vmatprep.subr.bf16.mxu1 %v4924_v58 }
  0x72   :  { %3220 = vmatpush1.bf16.msra.mxu0 %v4921_v61  ;;  %3384 = vmatpush1.bf16.msra.mxu1 %v4923_v62 }
  0x73   :  { %3221 = vmatprep.subr.bf16.mxu0 %v4930_v0  ;;  %3385 = vmatprep.subr.bf16.mxu1 %v4932_v4 }
  0x76   :  { %3222 = vmatpush1.bf16.msra.mxu0 %v4929_v6  ;;  %3386 = vmatpush1.bf16.msra.mxu1 %v4931_v7 }
  0x77   :  { %3223 = vmatprep.subr.bf16.mxu0 %v4938_v8  ;;  %3387 = vmatprep.subr.bf16.mxu1 %v4940_v13 }
  0x7a   :  { %3224 = vmatpush1.bf16.msra.mxu0 %v4937_v14  ;;  %3388 = vmatpush1.bf16.msra.mxu1 %v4939_v17 }
  0x7b   :  { %3225 = vmatprep.subr.bf16.mxu0 %v4946_v18  ;;  %3389 = vmatprep.subr.bf16.mxu1 %v4948_v22 }
  0x7e   :  { %3226 = vmatpush1.bf16.msra.mxu0 %v4945_v24  ;;  %3390 = vmatpush1.bf16.msra.mxu1 %v4947_v26 }
  0x7f   :  { %3227 = vmatprep.subr.bf16.mxu0 %v4954_v27  ;;  %3391 = vmatprep.subr.bf16.mxu1 %v4956_v31 }
  0x82   :  { %3228 = vmatpush1.bf16.msra.mxu0 %v4953_v33 }
  0x83   :  { %10 = vsyncpa [#allocation4], 0  ;;  %3392 = vmatpush1.bf16.msra.mxu1 %v4955_v34  ;;  %3238 = vmatprep.subr.bf16.mxu0 %v4962_v36  ;;  %v4963_v46 = vcombine.low %v341_v30, %v345_v63  ;;  %v4970_v47 = vcombine.high %v348_v37, %v352_v38  ;;  %v4972_v48 = vcombine.high %v349_v39, %v353_v41  ;;  %v356_v49 = vld [vmem:[%s7444_s1 + $0x880] sm:$0xff]  ;;  %v357_v15 = vld [vmem:[%s7444_s1 + $0x888] sm:$0xff]  ;;  %vm4670_vm0 = vcmask 33792   ;;  %s5516_s7 = smov [#allocation3]  }
  0x84   :  { %3402 = vmatprep.subr.bf16.mxu1 %v4964_v40  ;;  %v360_v50 = vld [vmem:[%s7444_s1 + $0x8a0] sm:$0xff]  ;;  %v6013_v51 = vpack.c.bf16 %v66_v42, %v66_v42  ;;  %v361_v52 = vld [vmem:[%s7444_s1 + $0x8a8] sm:$0xff]  ;;  %v4969_v54 = vcombine.low %v348_v37, %v352_v38  ;;  %v4971_v55 = vcombine.low %v349_v39, %v353_v41  ;;  %s4697_s8 = sshll.u32 %s5516_s7, 4  ;;  %s4698_s8 = int_to_ptr.vmem [resolvable:$true] %s4697_s8 }
  0x85   :  { %3230 = vmatmul.mubr.bf16.vlgmr.msra.gmra.mrb[0].mxu0 %v6005_v43  ;;  %v4978_v56 = vcombine.high %v356_v49, %v360_v50  ;;  %v4980_v57 = vcombine.high %v357_v15, %v361_v52  ;;  %v364_v58 = vld [vmem:[%s7444_s1 + $0x8c0] sm:$0xff]  ;;  %v365_v61 = vld [vmem:[%s7444_s1 + $0x8c8] sm:$0xff]  ;;  %v4977_v0 = vcombine.low %v356_v49, %v360_v50  ;;  %v4979_v1 = vcombine.low %v357_v15, %v361_v52  ;;  %s5490_s0 = scalar_lea.vmem %s4698_s8, 32  ;;  %p5495_p1 = scmp.lt.s32.totalorder %s4698_s8, %s4698_s8 }
  0x86   :  { %3239 = vmatpush1.bf16.msra.mxu0 %v4961_v45  ;;  %3394 = vmatmul.mubr.bf16.vlgmr.msra.gmra.mrb[0].mxu1 %v6005_v43  ;;  %v368_v60 = vld [vmem:[%s7444_s1 + $0x8e0] sm:$0xff]  ;;  %v369_v62 = vld [vmem:[%s7444_s1 + $0x8e8] sm:$0xff]  ;;  %p5491_p0 = scmp.ne.s32.totalorder %s4698_s8, %s5490_s0  ;;  %p5496_p2 = scmp.lt.s32.totalorder %s5490_s0, %s5490_s0 }
  0x87   :  { %3403 = vmatpush1.bf16.msra.mxu1 %v4963_v46  ;;  %3240 = vmatprep.subr.bf16.mxu0 %v4970_v47  ;;  %v4986_v2 = vcombine.high %v364_v58, %v368_v60  ;;  %v4988_v3 = vcombine.high %v365_v61, %v369_v62  ;;  %v372_v4 = vld [vmem:[%s7444_s1 + $0x900] sm:$0xff]  ;;  %v373_v6 = vld [vmem:[%s7444_s1 + $0x908] sm:$0xff]  ;;  %v4985_v8 = vcombine.low %v364_v58, %v368_v60 }
  0x88   :  { %3404 = vmatprep.subr.bf16.mxu1 %v4972_v48  ;;  %3270 = vmatprep.mubr.bf16.mxu0 %v6013_v51  ;;  %v376_v5 = vld [vmem:[%s7444_s1 + $0x920] sm:$0xff]  ;;  %v377_v7 = vld [vmem:[%s7444_s1 + $0x928] sm:$0xff]  ;;  %v4987_v10 = vcombine.low %v365_v61, %v369_v62  ;;  %p5497_p3 = por %p5496_p2, %p5495_p1 }
  0x89   :  { %3434 = vmatprep.mubr.bf16.mxu1 %v6013_v51  ;;  %v4994_v11 = vcombine.high %v372_v4, %v376_v5  ;;  %v4996_v12 = vcombine.high %v373_v6, %v377_v7  ;;  %v380_v13 = vld [vmem:[%s7444_s1 + $0x940] sm:$0xff]  ;;  %v381_v14 = vld [vmem:[%s7444_s1 + $0x948] sm:$0xff]  ;;  %v4993_v17 = vcombine.low %v372_v4, %v376_v5  ;;  %v4995_v18 = vcombine.low %v373_v6, %v377_v7 }
  0x8a   :  { %3241 = vmatpush1.bf16.msra.mxu0 %v4969_v54  ;;  %v384_v59 = vld [vmem:[%s7444_s1 + $0x960] sm:$0xff]  ;;  %v385_v16 = vld [vmem:[%s7444_s1 + $0x968] sm:$0xff]  ;;  %p5498_p4 = pnand %p5497_p3, %p5491_p0 }
  0x8b   :  { %3405 = vmatpush1.bf16.msra.mxu1 %v4971_v55  ;;  %3242 = vmatprep.subr.bf16.mxu0 %v4978_v56  ;;  %v5002_v19 = vcombine.high %v380_v13, %v384_v59  ;;  %v5004_v20 = vcombine.high %v381_v14, %v385_v16  ;;  %v388_v21 = vld [vmem:[%s7444_s1 + $0x980] sm:$0xff]  ;;  %v389_v24 = vld [vmem:[%s7444_s1 + $0x988] sm:$0xff]  ;;  %v5001_v27 = vcombine.low %v380_v13, %v384_v59 }
  0x8c   :  { %3406 = vmatprep.subr.bf16.mxu1 %v4980_v57  ;;  %v392_v22 = vld [vmem:[%s7444_s1 + $0x9a0] sm:$0xff]  ;;  %v393_v26 = vld [vmem:[%s7444_s1 + $0x9a8] sm:$0xff]  ;;  %v5003_v28 = vcombine.low %v381_v14, %v385_v16 }
  0x8d   :  { %v5010_v29 = vcombine.high %v388_v21, %v392_v22  ;;  %v5012_v30 = vcombine.high %v389_v24, %v393_v26  ;;  %v396_v31 = vld [vmem:[%s7444_s1 + $0x9c0] sm:$0xff]  ;;  %v397_v33 = vld [vmem:[%s7444_s1 + $0x9c8] sm:$0xff]  ;;  %v5009_v36 = vcombine.low %v388_v21, %v392_v22  ;;  %v5011_v37 = vcombine.low %v389_v24, %v393_v26 }
  0x8e   :  { %3243 = vmatpush1.bf16.msra.mxu0 %v4977_v0  ;;  %v400_v63 = vld [vmem:[%s7444_s1 + $0x9e0] sm:$0xff]  ;;  %v401_v34 = vld [vmem:[%s7444_s1 + $0x9e8] sm:$0xff] }
  0x8f   :  { %3407 = vmatpush1.bf16.msra.mxu1 %v4979_v1  ;;  %3244 = vmatprep.subr.bf16.mxu0 %v4986_v2  ;;  %v5018_v38 = vcombine.high %v396_v31, %v400_v63  ;;  %v5020_v39 = vcombine.high %v397_v33, %v401_v34  ;;  %v404_v40 = vld [vmem:[%s7444_s1 + $0xa00] sm:$0xff]  ;;  %v405_v42 = vld [vmem:[%s7444_s1 + $0xa08] sm:$0xff]  ;;  %v5017_v46 = vcombine.low %v396_v31, %v400_v63 }
  0x90   :  { %3408 = vmatprep.subr.bf16.mxu1 %v4988_v3  ;;  %v408_v41 = vld [vmem:[%s7444_s1 + $0xa20] sm:$0xff]  ;;  %v409_v45 = vld [vmem:[%s7444_s1 + $0xa28] sm:$0xff]  ;;  %v5019_v47 = vcombine.low %v397_v33, %v401_v34 }
  0x91   :  { %v5026_v48 = vcombine.high %v404_v40, %v408_v41  ;;  %v5028_v49 = vcombine.high %v405_v42, %v409_v45  ;;  %v412_v50 = vld [vmem:[%s7444_s1 + $0xa40] sm:$0xff]  ;;  %v413_v52 = vld [vmem:[%s7444_s1 + $0xa48] sm:$0xff]  ;;  %v5025_v55 = vcombine.low %v404_v40, %v408_v41  ;;  %v5027_v56 = vcombine.low %v405_v42, %v409_v45 }
  0x92   :  { %3245 = vmatpush1.bf16.msra.mxu0 %v4985_v8  ;;  %v416_v15 = vld [vmem:[%s7444_s1 + $0xa60] sm:$0xff]  ;;  %v417_v54 = vld [vmem:[%s7444_s1 + $0xa68] sm:$0xff]  ;;  %v51_v45 = vcombine.high %v5971_v23, %v5971_v23 }
  0x93   :  { %3409 = vmatpush1.bf16.msra.mxu1 %v4987_v10  ;;  %3246 = vmatprep.subr.bf16.mxu0 %v4994_v11  ;;  %v5034_v57 = vcombine.high %v412_v50, %v416_v15  ;;  %v5036_v58 = vcombine.high %v413_v52, %v417_v54  ;;  %v420_v60 = vld [vmem:[%s7444_s1 + $0xa80] sm:$0xff]  ;;  %v421_v62 = vld [vmem:[%s7444_s1 + $0xa88] sm:$0xff]  ;;  %v5033_v1 = vcombine.low %v412_v50, %v416_v15 }
  0x94   :  { %3410 = vmatprep.subr.bf16.mxu1 %v4996_v12  ;;  %v424_v61 = vld [vmem:[%s7444_s1 + $0xaa0] sm:$0xff]  ;;  %v425_v0 = vld [vmem:[%s7444_s1 + $0xaa8] sm:$0xff]  ;;  %v5035_v2 = vcombine.low %v413_v52, %v417_v54  ;;  %v6190_v54 = vrot.slane %v51_v45, %v5628_v53 }
  0x95   :  { %v5042_v3 = vcombine.high %v420_v60, %v424_v61  ;;  %v5044_v4 = vcombine.high %v421_v62, %v425_v0  ;;  %v428_v5 = vld [vmem:[%s7444_s1 + $0xac0] sm:$0xff]  ;;  %v429_v7 = vld [vmem:[%s7444_s1 + $0xac8] sm:$0xff]  ;;  %v5041_v10 = vcombine.low %v420_v60, %v424_v61  ;;  %v5043_v11 = vcombine.low %v421_v62, %v425_v0 }
  0x96   :  { %3247 = vmatpush1.bf16.msra.mxu0 %v4993_v17  ;;  %v432_v6 = vld [vmem:[%s7444_s1 + $0xae0] sm:$0xff]  ;;  %v433_v8 = vld [vmem:[%s7444_s1 + $0xae8] sm:$0xff] }
  0x97   :  { %3411 = vmatpush1.bf16.msra.mxu1 %v4995_v18  ;;  %3248 = vmatprep.subr.bf16.mxu0 %v5002_v19  ;;  %v5050_v12 = vcombine.high %v428_v5, %v432_v6  ;;  %v5052_v13 = vcombine.high %v429_v7, %v433_v8  ;;  %v436_v59 = vld [vmem:[%s7444_s1 + $0xb00] sm:$0xff]  ;;  %v437_v16 = vld [vmem:[%s7444_s1 + $0xb08] sm:$0xff]  ;;  %v5049_v18 = vcombine.low %v428_v5, %v432_v6 }
  0x98   :  { %3412 = vmatprep.subr.bf16.mxu1 %v5004_v20  ;;  %v440_v14 = vld [vmem:[%s7444_s1 + $0xb20] sm:$0xff]  ;;  %v441_v17 = vld [vmem:[%s7444_s1 + $0xb28] sm:$0xff]  ;;  %v5051_v19 = vcombine.low %v429_v7, %v433_v8 }
  0x99   :  { %v5058_v20 = vcombine.high %v436_v59, %v440_v14  ;;  %v5060_v21 = vcombine.high %v437_v16, %v441_v17  ;;  %v444_v22 = vld [vmem:[%s7444_s1 + $0xb40] sm:$0xff]  ;;  %v445_v26 = vld [vmem:[%s7444_s1 + $0xb48] sm:$0xff] }
  0x9a   :  { %3249 = vmatpush1.bf16.msra.mxu0 %v5001_v27  ;;  %v448_v24 = vld [vmem:[%s7444_s1 + $0xb60] sm:$0xff]  ;;  %v449_v27 = vld [vmem:[%s7444_s1 + $0xb68] sm:$0xff] }
  0x9b   :  { %3413 = vmatpush1.bf16.msra.mxu1 %v5003_v28  ;;  %3250 = vmatprep.subr.bf16.mxu0 %v5010_v29  ;;  %v5057_v28 = vcombine.low %v436_v59, %v440_v14  ;;  %v5059_v29 = vcombine.low %v437_v16, %v441_v17  ;;  %v5068_v31 = vcombine.high %v445_v26, %v449_v27  ;;  %v452_v63 = vld [vmem:[%s7444_s1 + $0xb80] sm:$0xff]  ;;  %v453_v34 = vld [vmem:[%s7444_s1 + $0xb88] sm:$0xff] }
  0x9c   :  { %3414 = vmatprep.subr.bf16.mxu1 %v5012_v30  ;;  %v5066_v30 = vcombine.high %v444_v22, %v448_v24  ;;  %v456_v33 = vld [vmem:[%s7444_s1 + $0xba0] sm:$0xff] }
  0x9d   :  { %v460_v41 = vld [vmem:[%s7444_s1 + $0xbc0] sm:$0xff] }
  0x9e   :  { %3251 = vmatpush1.bf16.msra.mxu0 %v5009_v36  ;;  %v457_v36 = vld [vmem:[%s7444_s1 + $0xba8] sm:$0xff]  ;;  %v464_v42 = vld [vmem:[%s7444_s1 + $0xbe0] sm:$0xff] }
  0x9f   :  { %3415 = vmatpush1.bf16.msra.mxu1 %v5011_v37  ;;  %3252 = vmatprep.subr.bf16.mxu0 %v5018_v38  ;;  %v5065_v37 = vcombine.low %v444_v22, %v448_v24  ;;  %v5067_v38 = vcombine.low %v445_v26, %v449_v27  ;;  %v5076_v40 = vcombine.high %v453_v34, %v457_v36  ;;  %v468_v23 = vld [vmem:[%s7444_s1 + $0xc00] sm:$0xff] }
  0xa0   :  { %3416 = vmatprep.subr.bf16.mxu1 %v5020_v39  ;;  %v5074_v39 = vcombine.high %v452_v63, %v456_v33  ;;  %v5082_v50 = vcombine.high %v460_v41, %v464_v42  ;;  %v472_v52 = vld [vmem:[%s7444_s1 + $0xc20] sm:$0xff] }
  0xa1   :  { %v5090_v60 = vcombine.high %v468_v23, %v472_v52  ;;  %v476_v62 = vld [vmem:[%s7444_s1 + $0xc40] sm:$0xff]  ;;  %v5089_v5 = vcombine.low %v468_v23, %v472_v52 }
  0xa2   :  { %3253 = vmatpush1.bf16.msra.mxu0 %v5017_v46  ;;  %v461_v46 = vld [vmem:[%s7444_s1 + $0xbc8] sm:$0xff]  ;;  %v480_v0 = vld [vmem:[%s7444_s1 + $0xc60] sm:$0xff] }
  0xa3   :  { %3417 = vmatpush1.bf16.msra.mxu1 %v5019_v47  ;;  %3254 = vmatprep.subr.bf16.mxu0 %v5026_v48  ;;  %v465_v47 = vld [vmem:[%s7444_s1 + $0xbe8] sm:$0xff]  ;;  %v5073_v48 = vcombine.low %v452_v63, %v456_v33  ;;  %v5098_v7 = vcombine.high %v476_v62, %v480_v0  ;;  %v5097_v59 = vcombine.low %v476_v62, %v480_v0 }
  0xa4   :  { %3418 = vmatprep.subr.bf16.mxu1 %v5028_v49  ;;  %v5075_v49 = vcombine.low %v453_v34, %v457_v36  ;;  %v5084_v15 = vcombine.high %v461_v46, %v465_v47 }
  0xa6   :  { %3255 = vmatpush1.bf16.msra.mxu0 %v5025_v55  ;;  %v469_v55 = vld [vmem:[%s7444_s1 + $0xc08] sm:$0xff] }
  0xa7   :  { %3419 = vmatpush1.bf16.msra.mxu1 %v5027_v56  ;;  %3256 = vmatprep.subr.bf16.mxu0 %v5034_v57  ;;  %v473_v56 = vld [vmem:[%s7444_s1 + $0xc28] sm:$0xff]  ;;  %v5081_v57 = vcombine.low %v460_v41, %v464_v42 }
  0xa8   :  { %3420 = vmatprep.subr.bf16.mxu1 %v5036_v58  ;;  %v5083_v58 = vcombine.low %v461_v46, %v465_v47  ;;  %v5092_v61 = vcombine.high %v469_v55, %v473_v56  ;;  %v5091_v6 = vcombine.low %v469_v55, %v473_v56  ;;  %v516_v47 = vld [vmem:[%s7444_s1 + $0xd80] sm:$0xff] }
  0xa9   :  { %v524_v56 = vld [vmem:[%s7444_s1 + $0xdc0] sm:$0xff] }
  0xaa   :  { %3257 = vmatpush1.bf16.msra.mxu0 %v5033_v1  ;;  %v67_v1 = vcombine.high %v6190_v54, %v6190_v54 }
  0xab   :  { %3421 = vmatpush1.bf16.msra.mxu1 %v5035_v2  ;;  %3258 = vmatprep.subr.bf16.mxu0 %v5042_v3  ;;  %v6208_v2 = vpack.c.bf16 %v5987_v32, %v5987_v32  ;;  %v477_v3 = vld [vmem:[%s7444_s1 + $0xc48] sm:$0xff]  ;;  %v484_v32 = vld [vmem:[%s7444_s1 + $0xc80] sm:$0xff] }
  0xac   :  { %3422 = vmatprep.subr.bf16.mxu1 %v5044_v4  ;;  %v481_v4 = vld [vmem:[%s7444_s1 + $0xc68] sm:$0xff] }
  0xad   :  { %v5100_v8 = vcombine.high %v477_v3, %v481_v4  ;;  %v5099_v14 = vcombine.low %v477_v3, %v481_v4  ;;  %v532_v3 = vld [vmem:[%s7444_s1 + $0xe00] sm:$0xff] }
  0xae   :  { %3259 = vmatpush1.bf16.msra.mxu0 %v5041_v10  ;;  %v488_v10 = vld [vmem:[%s7444_s1 + $0xca0] sm:$0xff] }
  0xaf   :  { %3423 = vmatpush1.bf16.msra.mxu1 %v5043_v11  ;;  %3260 = vmatprep.subr.bf16.mxu0 %v5050_v12  ;;  %v6222_v11 = vpack.c.bf16 %v67_v1, %v67_v1  ;;  %v485_v12 = vld [vmem:[%s7444_s1 + $0xc88] sm:$0xff]  ;;  %v5106_v16 = vcombine.high %v484_v32, %v488_v10  ;;  %v5105_v22 = vcombine.low %v484_v32, %v488_v10  ;;  %v536_v4 = vld [vmem:[%s7444_s1 + $0xe20] sm:$0xff] }
  0xb0   :  { %3424 = vmatprep.subr.bf16.mxu1 %v5052_v13  ;;  %v489_v13 = vld [vmem:[%s7444_s1 + $0xca8] sm:$0xff]  ;;  %v5154_v32 = vcombine.high %v532_v3, %v536_v4 }
  0xb1   :  { %v5108_v17 = vcombine.high %v485_v12, %v489_v13  ;;  %v5107_v24 = vcombine.low %v485_v12, %v489_v13  ;;  %v540_v12 = vld [vmem:[%s7444_s1 + $0xe40] sm:$0xff] }
  0xb2   :  { %3261 = vmatpush1.bf16.msra.mxu0 %v5049_v18  ;;  %v492_v18 = vld [vmem:[%s7444_s1 + $0xcc0] sm:$0xff] }
  0xb3   :  { %3425 = vmatpush1.bf16.msra.mxu1 %v5051_v19  ;;  %3262 = vmatprep.subr.bf16.mxu0 %v5058_v20  ;;  %v496_v19 = vld [vmem:[%s7444_s1 + $0xce0] sm:$0xff]  ;;  %v493_v20 = vld [vmem:[%s7444_s1 + $0xcc8] sm:$0xff] }
  0xb4   :  { %3426 = vmatprep.subr.bf16.mxu1 %v5060_v21  ;;  %v497_v21 = vld [vmem:[%s7444_s1 + $0xce8] sm:$0xff]  ;;  %v5114_v26 = vcombine.high %v492_v18, %v496_v19  ;;  %v5113_v63 = vcombine.low %v492_v18, %v496_v19  ;;  %v544_v13 = vld [vmem:[%s7444_s1 + $0xe60] sm:$0xff] }
  0xb5   :  { %v5116_v27 = vcombine.high %v493_v20, %v497_v21  ;;  %v5115_v33 = vcombine.low %v493_v20, %v497_v21  ;;  %v5162_v18 = vcombine.high %v540_v12, %v544_v13  ;;  %v548_v20 = vld [vmem:[%s7444_s1 + $0xe80] sm:$0xff] }
  0xb6   :  { %3263 = vmatpush1.bf16.msra.mxu0 %v5057_v28  ;;  %v500_v28 = vld [vmem:[%s7444_s1 + $0xd00] sm:$0xff] }
  0xb7   :  { %3427 = vmatpush1.bf16.msra.mxu1 %v5059_v29  ;;  %3264 = vmatprep.subr.bf16.mxu0 %v5066_v30  ;;  %v504_v29 = vld [vmem:[%s7444_s1 + $0xd20] sm:$0xff]  ;;  %v501_v30 = vld [vmem:[%s7444_s1 + $0xd08] sm:$0xff] }
  0xb8   :  { %3428 = vmatprep.subr.bf16.mxu1 %v5068_v31  ;;  %v505_v31 = vld [vmem:[%s7444_s1 + $0xd28] sm:$0xff]  ;;  %v5122_v34 = vcombine.high %v500_v28, %v504_v29  ;;  %v5121_v41 = vcombine.low %v500_v28, %v504_v29  ;;  %v552_v21 = vld [vmem:[%s7444_s1 + $0xea0] sm:$0xff] }
  0xb9   :  { %v5124_v36 = vcombine.high %v501_v30, %v505_v31  ;;  %v5123_v42 = vcombine.low %v501_v30, %v505_v31  ;;  %v5170_v28 = vcombine.high %v548_v20, %v552_v21  ;;  %v556_v30 = vld [vmem:[%s7444_s1 + $0xec0] sm:$0xff] }
  0xba   :  { %3265 = vmatpush1.bf16.msra.mxu0 %v5065_v37  ;;  %v508_v37 = vld [vmem:[%s7444_s1 + $0xd40] sm:$0xff] }
  0xbb   :  { %3429 = vmatpush1.bf16.msra.mxu1 %v5067_v38  ;;  %3266 = vmatprep.subr.bf16.mxu0 %v5074_v39  ;;  %v512_v38 = vld [vmem:[%s7444_s1 + $0xd60] sm:$0xff]  ;;  %v509_v39 = vld [vmem:[%s7444_s1 + $0xd48] sm:$0xff] }
  0xbc   :  { %3430 = vmatprep.subr.bf16.mxu1 %v5076_v40  ;;  %v513_v40 = vld [vmem:[%s7444_s1 + $0xd68] sm:$0xff]  ;;  %v5130_v45 = vcombine.high %v508_v37, %v512_v38  ;;  %v560_v31 = vld [vmem:[%s7444_s1 + $0xee0] sm:$0xff] }
  0xbd   :  { %v5132_v46 = vcombine.high %v509_v39, %v513_v40  ;;  %v5131_v23 = vcombine.low %v509_v39, %v513_v40  ;;  %v564_v39 = vld [vmem:[%s7444_s1 + $0xf00] sm:$0xff] }
  0xbe   :  { %3267 = vmatpush1.bf16.msra.mxu0 %v5073_v48  ;;  %v520_v48 = vld [vmem:[%s7444_s1 + $0xda0] sm:$0xff] }
  0xbf   :  { %3431 = vmatpush1.bf16.msra.mxu1 %v5075_v49  ;;  %3268 = vmatprep.subr.bf16.mxu0 %v5082_v50  ;;  %v517_v49 = vld [vmem:[%s7444_s1 + $0xd88] sm:$0xff]  ;;  %v5138_v52 = vcombine.high %v516_v47, %v520_v48  ;;  %v568_v40 = vld [vmem:[%s7444_s1 + $0xf20] sm:$0xff] }
  0xc0   :  { %3432 = vmatprep.subr.bf16.mxu1 %v5084_v15  ;;  %v521_v50 = vld [vmem:[%s7444_s1 + $0xda8] sm:$0xff]  ;;  %v5129_v15 = vcombine.low %v508_v37, %v512_v38  ;;  %v5178_v37 = vcombine.high %v556_v30, %v560_v31 }
  0xc1   :  { %v5140_v55 = vcombine.high %v517_v49, %v521_v50  ;;  %v5139_v62 = vcombine.low %v517_v49, %v521_v50  ;;  %v572_v49 = vld [vmem:[%s7444_s1 + $0xf40] sm:$0xff] }
  0xc2   :  { %3269 = vmatpush1.bf16.msra.mxu0 %v5081_v57  ;;  %v528_v57 = vld [vmem:[%s7444_s1 + $0xde0] sm:$0xff] }
  0xc3   :  { %3433 = vmatpush1.bf16.msra.mxu1 %v5083_v58  ;;  %3279 = vmatprep.subr.bf16.mxu0 %v5090_v60  ;;  %v525_v58 = vld [vmem:[%s7444_s1 + $0xdc8] sm:$0xff]  ;;  %v5146_v0 = vcombine.high %v524_v56, %v528_v57  ;;  %v576_v50 = vld [vmem:[%s7444_s1 + $0xf60] sm:$0xff] }
  0xc4   :  { %3443 = vmatprep.subr.bf16.mxu1 %v5092_v61  ;;  %v529_v60 = vld [vmem:[%s7444_s1 + $0xde8] sm:$0xff]  ;;  %v5137_v61 = vcombine.low %v516_v47, %v520_v48  ;;  %v5186_v47 = vcombine.high %v564_v39, %v568_v40 }
  0xc5   :  { %3271 = vmatmul.mubr.bf16.vlgmr.msra.gmra.mrb[0].mxu0 %v6208_v2  ;;  %v5148_v1 = vcombine.high %v525_v58, %v529_v60 }
  0xc6   :  { %3280 = vmatpush1.bf16.msra.mxu0 %v5089_v5  ;;  %3435 = vmatmul.mubr.bf16.vlgmr.msra.gmra.mrb[0].mxu1 %v6208_v2  ;;  %v533_v5 = vld [vmem:[%s7444_s1 + $0xe08] sm:$0xff] }
  0xc7   :  { %3444 = vmatpush1.bf16.msra.mxu1 %v5091_v6  ;;  %3281 = vmatprep.subr.bf16.mxu0 %v5098_v7  ;;  %v537_v6 = vld [vmem:[%s7444_s1 + $0xe28] sm:$0xff]  ;;  %v5145_v7 = vcombine.low %v524_v56, %v528_v57  ;;  %v5194_v56 = vcombine.high %v572_v49, %v576_v50 }
  0xc8   :  { %3445 = vmatprep.subr.bf16.mxu1 %v5100_v8  ;;  %3311 = vmatprep.mubr.bf16.mxu0 %v6222_v11  ;;  %v5147_v8 = vcombine.low %v525_v58, %v529_v60  ;;  %v5156_v10 = vcombine.high %v533_v5, %v537_v6  ;;  %v580_v58 = vld [vmem:[%s7444_s1 + $0xf80] sm:$0xff] }
  0xc9   :  { %3475 = vmatprep.mubr.bf16.mxu1 %v6222_v11  ;;  %v584_v60 = vld [vmem:[%s7444_s1 + $0xfa0] sm:$0xff] }
  0xca   :  { %3282 = vmatpush1.bf16.msra.mxu0 %v5097_v59  ;;  %v541_v59 = vld [vmem:[%s7444_s1 + $0xe48] sm:$0xff] }
  0xcb   :  { %3446 = vmatpush1.bf16.msra.mxu1 %v5099_v14  ;;  %3283 = vmatprep.subr.bf16.mxu0 %v5106_v16  ;;  %v545_v14 = vld [vmem:[%s7444_s1 + $0xe68] sm:$0xff]  ;;  %v5153_v16 = vcombine.low %v532_v3, %v536_v4  ;;  %v5202_v3 = vcombine.high %v580_v58, %v584_v60 }
  0xcc   :  { %3447 = vmatprep.subr.bf16.mxu1 %v5108_v17  ;;  %v5155_v17 = vcombine.low %v533_v5, %v537_v6  ;;  %v5164_v19 = vcombine.high %v541_v59, %v545_v14  ;;  %v588_v5 = vld [vmem:[%s7444_s1 + $0xfc0] sm:$0xff] }
  0xcd   :  { %v592_v6 = vld [vmem:[%s7444_s1 + $0xfe0] sm:$0xff] }
  0xce   :  { %3284 = vmatpush1.bf16.msra.mxu0 %v5105_v22  ;;  %v549_v22 = vld [vmem:[%s7444_s1 + $0xe88] sm:$0xff] }
  0xcf   :  { %3448 = vmatpush1.bf16.msra.mxu1 %v5107_v24  ;;  %3285 = vmatprep.subr.bf16.mxu0 %v5114_v26  ;;  %v553_v24 = vld [vmem:[%s7444_s1 + $0xea8] sm:$0xff]  ;;  %v5161_v26 = vcombine.low %v540_v12, %v544_v13  ;;  %v5210_v12 = vcombine.high %v588_v5, %v592_v6 }
  0xd0   :  { %3449 = vmatprep.subr.bf16.mxu1 %v5116_v27  ;;  %v5163_v27 = vcombine.low %v541_v59, %v545_v14  ;;  %v5172_v29 = vcombine.high %v549_v22, %v553_v24  ;;  %v86_v59 = vld [vmem:[%s7444_s1 + $0x10] sm:$0xff] }
  0xd1   :  { %v90_v14 = vld [vmem:[%s7444_s1 + $0x30] sm:$0xff] }
  0xd2   :  { %3286 = vmatpush1.bf16.msra.mxu0 %v5113_v63  ;;  %v557_v63 = vld [vmem:[%s7444_s1 + $0xec8] sm:$0xff] }
  0xd3   :  { %3450 = vmatpush1.bf16.msra.mxu1 %v5115_v33  ;;  %3287 = vmatprep.subr.bf16.mxu0 %v5122_v34  ;;  %v561_v33 = vld [vmem:[%s7444_s1 + $0xee8] sm:$0xff]  ;;  %v5169_v34 = vcombine.low %v548_v20, %v552_v21  ;;  %v4710_v20 = vcombine.high %v86_v59, %v90_v14 }
  0xd4   :  { %3451 = vmatprep.subr.bf16.mxu1 %v5124_v36  ;;  %v5171_v36 = vcombine.low %v549_v22, %v553_v24  ;;  %v5180_v38 = vcombine.high %v557_v63, %v561_v33  ;;  %v94_v22 = vld [vmem:[%s7444_s1 + $0x50] sm:$0xff] }
  0xd5   :  { %v98_v24 = vld [vmem:[%s7444_s1 + $0x70] sm:$0xff] }
  0xd6   :  { %3288 = vmatpush1.bf16.msra.mxu0 %v5121_v41  ;;  %v565_v41 = vld [vmem:[%s7444_s1 + $0xf08] sm:$0xff] }
  0xd7   :  { %3452 = vmatpush1.bf16.msra.mxu1 %v5123_v42  ;;  %3289 = vmatprep.subr.bf16.mxu0 %v5130_v45  ;;  %v569_v42 = vld [vmem:[%s7444_s1 + $0xf28] sm:$0xff]  ;;  %v5177_v45 = vcombine.low %v556_v30, %v560_v31  ;;  %v4718_v31 = vcombine.high %v94_v22, %v98_v24 }
  0xd8   :  { %3453 = vmatprep.subr.bf16.mxu1 %v5132_v46  ;;  %v5179_v46 = vcombine.low %v557_v63, %v561_v33  ;;  %v5188_v48 = vcombine.high %v565_v41, %v569_v42  ;;  %v106_v33 = vld [vmem:[%s7444_s1 + $0xb0] sm:$0xff] }
  0xda   :  { %3290 = vmatpush1.bf16.msra.mxu0 %v5129_v15  ;;  %v573_v15 = vld [vmem:[%s7444_s1 + $0xf48] sm:$0xff] }
  0xdb   :  { %3454 = vmatpush1.bf16.msra.mxu1 %v5131_v23  ;;  %3291 = vmatprep.subr.bf16.mxu0 %v5138_v52  ;;  %v577_v23 = vld [vmem:[%s7444_s1 + $0xf68] sm:$0xff]  ;;  %v5185_v52 = vcombine.low %v564_v39, %v568_v40 }
  0xdc   :  { %3455 = vmatprep.subr.bf16.mxu1 %v5140_v55  ;;  %v5187_v55 = vcombine.low %v565_v41, %v569_v42  ;;  %v5196_v57 = vcombine.high %v573_v15, %v577_v23  ;;  %v110_v41 = vld [vmem:[%s7444_s1 + $0xd0] sm:$0xff] }
  0xdd   :  { %v114_v42 = vld [vmem:[%s7444_s1 + $0xf0] sm:$0xff] }
  0xde   :  { %3292 = vmatpush1.bf16.msra.mxu0 %v5137_v61  ;;  %v581_v61 = vld [vmem:[%s7444_s1 + $0xf88] sm:$0xff] }
  0xdf   :  { %3456 = vmatpush1.bf16.msra.mxu1 %v5139_v62  ;;  %3293 = vmatprep.subr.bf16.mxu0 %v5146_v0  ;;  %v585_v62 = vld [vmem:[%s7444_s1 + $0xfa8] sm:$0xff]  ;;  %v5193_v0 = vcombine.low %v572_v49, %v576_v50  ;;  %v4734_v49 = vcombine.high %v110_v41, %v114_v42 }
  0xe0   :  { %3457 = vmatprep.subr.bf16.mxu1 %v5148_v1  ;;  %v5195_v1 = vcombine.low %v573_v15, %v577_v23  ;;  %v5204_v4 = vcombine.high %v581_v61, %v585_v62  ;;  %v118_v15 = vld [vmem:[%s7444_s1 + $0x110] sm:$0xff] }
  0xe1   :  { %v122_v23 = vld [vmem:[%s7444_s1 + $0x130] sm:$0xff] }
  0xe2   :  { %3294 = vmatpush1.bf16.msra.mxu0 %v5145_v7  ;;  %v589_v7 = vld [vmem:[%s7444_s1 + $0xfc8] sm:$0xff] }
  0xe3   :  { %3458 = vmatpush1.bf16.msra.mxu1 %v5147_v8  ;;  %3295 = vmatprep.subr.bf16.mxu0 %v5154_v32  ;;  %v593_v8 = vld [vmem:[%s7444_s1 + $0xfe8] sm:$0xff]  ;;  %v5201_v32 = vcombine.low %v580_v58, %v584_v60  ;;  %v126_v60 = vld [vmem:[%s7444_s1 + $0x150] sm:$0xff] }
  0xe4   :  { %3459 = vmatprep.subr.bf16.mxu1 %v5156_v10  ;;  %v5203_v10 = vcombine.low %v581_v61, %v585_v62  ;;  %v5212_v13 = vcombine.high %v589_v7, %v593_v8  ;;  %v130_v61 = vld [vmem:[%s7444_s1 + $0x170] sm:$0xff]  ;;  %v127_v62 = vld [vmem:[%s7444_s1 + $0x158] sm:$0xff] }
  0xe6   :  { %3296 = vmatpush1.bf16.msra.mxu0 %v5153_v16  ;;  %v87_v16 = vld [vmem:[%s7444_s1 + $0x18] sm:$0xff] }
  0xe7   :  { %3460 = vmatpush1.bf16.msra.mxu1 %v5155_v17  ;;  %3297 = vmatprep.subr.bf16.mxu0 %v5162_v18  ;;  %v91_v17 = vld [vmem:[%s7444_s1 + $0x38] sm:$0xff]  ;;  %v5209_v18 = vcombine.low %v588_v5, %v592_v6  ;;  %v134_v6 = vld [vmem:[%s7444_s1 + $0x190] sm:$0xff] }
  0xe8   :  { %3461 = vmatprep.subr.bf16.mxu1 %v5164_v19  ;;  %v5211_v19 = vcombine.low %v589_v7, %v593_v8  ;;  %v4712_v21 = vcombine.high %v87_v16, %v91_v17  ;;  %v4711_v30 = vcombine.low %v87_v16, %v91_v17  ;;  %v138_v7 = vld [vmem:[%s7444_s1 + $0x1b0] sm:$0xff]  ;;  %v135_v8 = vld [vmem:[%s7444_s1 + $0x198] sm:$0xff] }
  0xe9   :  { %v146_v16 = vld [vmem:[%s7444_s1 + $0x1f0] sm:$0xff]  ;;  %v143_v17 = vld [vmem:[%s7444_s1 + $0x1d8] sm:$0xff] }
  0xea   :  { %3298 = vmatpush1.bf16.msra.mxu0 %v5161_v26  ;;  %v6410_v26 = vpack.c.bf16 %v6190_v54, %v6190_v54  ;;  %v102_v54 = vld [vmem:[%s7444_s1 + $0x90] sm:$0xff] }
  0xeb   :  { %3462 = vmatpush1.bf16.msra.mxu1 %v5163_v27  ;;  %3299 = vmatprep.subr.bf16.mxu0 %v5170_v28  ;;  %v95_v27 = vld [vmem:[%s7444_s1 + $0x58] sm:$0xff]  ;;  %v4726_v39 = vcombine.high %v102_v54, %v106_v33 }
  0xec   :  { %3463 = vmatprep.subr.bf16.mxu1 %v5172_v29  ;;  %v99_v28 = vld [vmem:[%s7444_s1 + $0x78] sm:$0xff]  ;;  %v4709_v29 = vcombine.low %v86_v59, %v90_v14  ;;  %v142_v14 = vld [vmem:[%s7444_s1 + $0x1d0] sm:$0xff] }
  0xed   :  { %v4720_v63 = vcombine.high %v95_v27, %v99_v28 }
  0xee   :  { %3300 = vmatpush1.bf16.msra.mxu0 %v5169_v34  ;;  %v103_v34 = vld [vmem:[%s7444_s1 + $0x98] sm:$0xff] }
  0xef   :  { %3464 = vmatpush1.bf16.msra.mxu1 %v5171_v36  ;;  %3301 = vmatprep.subr.bf16.mxu0 %v5178_v37  ;;  %v107_v36 = vld [vmem:[%s7444_s1 + $0xb8] sm:$0xff]  ;;  %v4717_v37 = vcombine.low %v94_v22, %v98_v24  ;;  %v150_v24 = vld [vmem:[%s7444_s1 + $0x210] sm:$0xff] }
  0xf0   :  { %3465 = vmatprep.subr.bf16.mxu1 %v5180_v38  ;;  %v4719_v38 = vcombine.low %v95_v27, %v99_v28  ;;  %v4728_v40 = vcombine.high %v103_v34, %v107_v36  ;;  %v154_v27 = vld [vmem:[%s7444_s1 + $0x230] sm:$0xff]  ;;  %v151_v28 = vld [vmem:[%s7444_s1 + $0x218] sm:$0xff] }
  0xf2   :  { %3302 = vmatpush1.bf16.msra.mxu0 %v5177_v45  ;;  %v111_v45 = vld [vmem:[%s7444_s1 + $0xd8] sm:$0xff] }
  0xf3   :  { %3466 = vmatpush1.bf16.msra.mxu1 %v5179_v46  ;;  %3303 = vmatprep.subr.bf16.mxu0 %v5186_v47  ;;  %v115_v46 = vld [vmem:[%s7444_s1 + $0xf8] sm:$0xff]  ;;  %v4725_v47 = vcombine.low %v102_v54, %v106_v33  ;;  %v158_v33 = vld [vmem:[%s7444_s1 + $0x250] sm:$0xff] }
  0xf4   :  { %3467 = vmatprep.subr.bf16.mxu1 %v5188_v48  ;;  %v4727_v48 = vcombine.low %v103_v34, %v107_v36  ;;  %v4736_v50 = vcombine.high %v111_v45, %v115_v46  ;;  %v162_v34 = vld [vmem:[%s7444_s1 + $0x270] sm:$0xff]  ;;  %v159_v36 = vld [vmem:[%s7444_s1 + $0x258] sm:$0xff] }
  0xf6   :  { %3304 = vmatpush1.bf16.msra.mxu0 %v5185_v52  ;;  %v123_v52 = vld [vmem:[%s7444_s1 + $0x138] sm:$0xff] }
  0xf7   :  { %3468 = vmatpush1.bf16.msra.mxu1 %v5187_v55  ;;  %3305 = vmatprep.subr.bf16.mxu0 %v5194_v56  ;;  %v4733_v55 = vcombine.low %v110_v41, %v114_v42  ;;  %v4735_v56 = vcombine.low %v111_v45, %v115_v46  ;;  %v166_v42 = vld [vmem:[%s7444_s1 + $0x290] sm:$0xff]  ;;  %v167_v46 = vld [vmem:[%s7444_s1 + $0x298] sm:$0xff] }
  0xf8   :  { %3469 = vmatprep.subr.bf16.mxu1 %v5196_v57  ;;  %v4742_v57 = vcombine.high %v118_v15, %v122_v23  ;;  %v170_v45 = vld [vmem:[%s7444_s1 + $0x2b0] sm:$0xff] }
  0xfa   :  { %3306 = vmatpush1.bf16.msra.mxu0 %v5193_v0  ;;  %v131_v0 = vld [vmem:[%s7444_s1 + $0x178] sm:$0xff] }
  0xfb   :  { %3470 = vmatpush1.bf16.msra.mxu1 %v5195_v1  ;;  %3307 = vmatprep.subr.bf16.mxu0 %v5202_v3  ;;  %v4741_v1 = vcombine.low %v118_v15, %v122_v23  ;;  %v4752_v5 = vcombine.high %v127_v62, %v131_v0  ;;  %v174_v23 = vld [vmem:[%s7444_s1 + $0x2d0] sm:$0xff] }
  0xfc   :  { %3471 = vmatprep.subr.bf16.mxu1 %v5204_v4  ;;  %v4750_v4 = vcombine.high %v126_v60, %v130_v61 }
  0xfe   :  { %3308 = vmatpush1.bf16.msra.mxu0 %v5201_v32  ;;  %v139_v32 = vld [vmem:[%s7444_s1 + $0x1b8] sm:$0xff] }
  0xff   :  { %3472 = vmatpush1.bf16.msra.mxu1 %v5203_v10  ;;  %3309 = vmatprep.subr.bf16.mxu0 %v5210_v12  ;;  %v4749_v10 = vcombine.low %v126_v60, %v130_v61  ;;  %v4751_v12 = vcombine.low %v127_v62, %v131_v0  ;;  %v4760_v59 = vcombine.high %v135_v8, %v139_v32  ;;  %v182_v61 = vld [vmem:[%s7444_s1 + $0x310] sm:$0xff]  ;;  %v183_v0 = vld [vmem:[%s7444_s1 + $0x318] sm:$0xff] }
 0x100   :  { %3473 = vmatprep.subr.bf16.mxu1 %v5212_v13  ;;  %v4758_v13 = vcombine.high %v134_v6, %v138_v7  ;;  %v186_v62 = vld [vmem:[%s7444_s1 + $0x330] sm:$0xff] }
 0x102   :  { %3310 = vmatpush1.bf16.msra.mxu0 %v5209_v18  ;;  %v147_v18 = vld [vmem:[%s7444_s1 + $0x1f8] sm:$0xff] }
 0x103   :  { %3474 = vmatpush1.bf16.msra.mxu1 %v5211_v19  ;;  %3484 = vmatprep.subr.bf16.mxu0 %v4710_v20  ;;  %v4757_v19 = vcombine.low %v134_v6, %v138_v7  ;;  %v4759_v20 = vcombine.low %v135_v8, %v139_v32  ;;  %v4768_v22 = vcombine.high %v143_v17, %v147_v18  ;;  %v190_v7 = vld [vmem:[%s7444_s1 + $0x350] sm:$0xff]  ;;  %v191_v32 = vld [vmem:[%s7444_s1 + $0x358] sm:$0xff] }
 0x104   :  { %3648 = vmatprep.subr.bf16.mxu1 %v4712_v21  ;;  %v4766_v21 = vcombine.high %v142_v14, %v146_v16  ;;  %v194_v8 = vld [vmem:[%s7444_s1 + $0x370] sm:$0xff] }
 0x105   :  { %3312 = vmatmul.mubr.bf16.vlgmr.msra.gmra.mrb[0].mxu0 %v6410_v26 }
 0x106   :  { %3476 = vmatmul.mubr.bf16.vlgmr.msra.gmra.mrb[0].mxu1 %v6410_v26  ;;  %3485 = vmatpush1.bf16.msra.mxu0 %v4709_v29  ;;  %v155_v29 = vld [vmem:[%s7444_s1 + $0x238] sm:$0xff] }
 0x107   :  { %3649 = vmatpush1.bf16.msra.mxu1 %v4711_v30  ;;  %3486 = vmatprep.subr.bf16.mxu0 %v4718_v31  ;;  %v4765_v30 = vcombine.low %v142_v14, %v146_v16  ;;  %v4767_v31 = vcombine.low %v143_v17, %v147_v18  ;;  %v4776_v54 = vcombine.high %v151_v28, %v155_v29  ;;  %v198_v16 = vld [vmem:[%s7444_s1 + $0x390] sm:$0xff]  ;;  %v199_v18 = vld [vmem:[%s7444_s1 + $0x398] sm:$0xff] }
 0x108   :  { %3650 = vmatprep.subr.bf16.mxu1 %v4720_v63  ;;  %3516 = vmatprep.mubr.bf16.mxu0 %v5665_v9  ;;  %v4774_v63 = vcombine.high %v150_v24, %v154_v27  ;;  %v202_v17 = vld [vmem:[%s7444_s1 + $0x3b0] sm:$0xff] }
 0x109   :  { %3680 = vmatprep.mubr.bf16.mxu1 %v5665_v9  ;;  %v119_v9 = vld [vmem:[%s7444_s1 + $0x118] sm:$0xff] }
 0x10a   :  { %3487 = vmatpush1.bf16.msra.mxu0 %v4717_v37  ;;  %v4744_v58 = vcombine.high %v119_v9, %v123_v52  ;;  %v4743_v3 = vcombine.low %v119_v9, %v123_v52  ;;  %v163_v37 = vld [vmem:[%s7444_s1 + $0x278] sm:$0xff]  ;;  %v178_v9 = vld [vmem:[%s7444_s1 + $0x2f0] sm:$0xff] }
 0x10b   :  { %3651 = vmatpush1.bf16.msra.mxu1 %v4719_v38  ;;  %3488 = vmatprep.subr.bf16.mxu0 %v4726_v39  ;;  %v4773_v38 = vcombine.low %v150_v24, %v154_v27  ;;  %v4775_v39 = vcombine.low %v151_v28, %v155_v29  ;;  %v4784_v41 = vcombine.high %v159_v36, %v163_v37  ;;  %v175_v52 = vld [vmem:[%s7444_s1 + $0x2d8] sm:$0xff]  ;;  %v206_v27 = vld [vmem:[%s7444_s1 + $0x3d0] sm:$0xff] }
 0x10c   :  { %3652 = vmatprep.subr.bf16.mxu1 %v4728_v40  ;;  %v4782_v40 = vcombine.high %v158_v33, %v162_v34  ;;  %v210_v28 = vld [vmem:[%s7444_s1 + $0x3f0] sm:$0xff]  ;;  %v207_v29 = vld [vmem:[%s7444_s1 + $0x3d8] sm:$0xff] }
 0x10e   :  { %3489 = vmatpush1.bf16.msra.mxu0 %v4725_v47  ;;  %v171_v47 = vld [vmem:[%s7444_s1 + $0x2b8] sm:$0xff] }
 0x10f   :  { %3653 = vmatpush1.bf16.msra.mxu1 %v4727_v48  ;;  %3490 = vmatprep.subr.bf16.mxu0 %v4734_v49  ;;  %v4781_v48 = vcombine.low %v158_v33, %v162_v34  ;;  %v4783_v49 = vcombine.low %v159_v36, %v163_v37  ;;  %v4792_v15 = vcombine.high %v167_v46, %v171_v47  ;;  %v214_v34 = vld [vmem:[%s7444_s1 + $0x410] sm:$0xff]  ;;  %v215_v37 = vld [vmem:[%s7444_s1 + $0x418] sm:$0xff] }
 0x110   :  { %3654 = vmatprep.subr.bf16.mxu1 %v4736_v50  ;;  %v4790_v50 = vcombine.high %v166_v42, %v170_v45  ;;  %v218_v36 = vld [vmem:[%s7444_s1 + $0x430] sm:$0xff] }
 0x112   :  { %3491 = vmatpush1.bf16.msra.mxu0 %v4733_v55  ;;  %v179_v55 = vld [vmem:[%s7444_s1 + $0x2f8] sm:$0xff] }
 0x113   :  { %3655 = vmatpush1.bf16.msra.mxu1 %v4735_v56  ;;  %3492 = vmatprep.subr.bf16.mxu0 %v4742_v57  ;;  %v4789_v56 = vcombine.low %v166_v42, %v170_v45  ;;  %v4791_v57 = vcombine.low %v167_v46, %v171_v47  ;;  %v4800_v60 = vcombine.high %v175_v52, %v179_v55  ;;  %v222_v45 = vld [vmem:[%s7444_s1 + $0x450] sm:$0xff]  ;;  %v223_v47 = vld [vmem:[%s7444_s1 + $0x458] sm:$0xff] }
 0x114   :  { %3656 = vmatprep.subr.bf16.mxu1 %v4744_v58  ;;  %v4798_v58 = vcombine.high %v174_v23, %v178_v9  ;;  %v226_v46 = vld [vmem:[%s7444_s1 + $0x470] sm:$0xff] }
 0x116   :  { %3493 = vmatpush1.bf16.msra.mxu0 %v4741_v1  ;;  %v187_v1 = vld [vmem:[%s7444_s1 + $0x338] sm:$0xff] }
 0x117   :  { %3657 = vmatpush1.bf16.msra.mxu1 %v4743_v3  ;;  %3494 = vmatprep.subr.bf16.mxu0 %v4750_v4  ;;  %v4797_v3 = vcombine.low %v174_v23, %v178_v9  ;;  %v4799_v4 = vcombine.low %v175_v52, %v179_v55  ;;  %v4808_v6 = vcombine.high %v183_v0, %v187_v1  ;;  %v230_v9 = vld [vmem:[%s7444_s1 + $0x490] sm:$0xff]  ;;  %v231_v55 = vld [vmem:[%s7444_s1 + $0x498] sm:$0xff] }
 0x118   :  { %3658 = vmatprep.subr.bf16.mxu1 %v4752_v5  ;;  %v4806_v5 = vcombine.high %v182_v61, %v186_v62  ;;  %v234_v52 = vld [vmem:[%s7444_s1 + $0x4b0] sm:$0xff] }
 0x11a   :  { %3495 = vmatpush1.bf16.msra.mxu0 %v4749_v10  ;;  %v195_v10 = vld [vmem:[%s7444_s1 + $0x378] sm:$0xff] }
 0x11b   :  { %3659 = vmatpush1.bf16.msra.mxu1 %v4751_v12  ;;  %3496 = vmatprep.subr.bf16.mxu0 %v4758_v13  ;;  %v4805_v12 = vcombine.low %v182_v61, %v186_v62  ;;  %v4807_v13 = vcombine.low %v183_v0, %v187_v1  ;;  %v4816_v14 = vcombine.high %v191_v32, %v195_v10  ;;  %v238_v62 = vld [vmem:[%s7444_s1 + $0x4d0] sm:$0xff]  ;;  %v243_v1 = vld [vmem:[%s7444_s1 + $0x4f8] sm:$0xff] }
 0x11c   :  { %3660 = vmatprep.subr.bf16.mxu1 %v4760_v59  ;;  %v4814_v59 = vcombine.high %v190_v7, %v194_v8  ;;  %v242_v0 = vld [vmem:[%s7444_s1 + $0x4f0] sm:$0xff] }
 0x11e   :  { %3497 = vmatpush1.bf16.msra.mxu0 %v4757_v19  ;;  %v203_v19 = vld [vmem:[%s7444_s1 + $0x3b8] sm:$0xff] }
 0x11f   :  { %3661 = vmatpush1.bf16.msra.mxu1 %v4759_v20  ;;  %3498 = vmatprep.subr.bf16.mxu0 %v4766_v21  ;;  %v4813_v20 = vcombine.low %v190_v7, %v194_v8  ;;  %v4815_v21 = vcombine.low %v191_v32, %v195_v10  ;;  %v4824_v24 = vcombine.high %v199_v18, %v203_v19  ;;  %v246_v7 = vld [vmem:[%s7444_s1 + $0x510] sm:$0xff]  ;;  %v251_v32 = vld [vmem:[%s7444_s1 + $0x538] sm:$0xff] }
 0x120   :  { %3662 = vmatprep.subr.bf16.mxu1 %v4768_v22  ;;  %v4822_v22 = vcombine.high %v198_v16, %v202_v17  ;;  %v250_v8 = vld [vmem:[%s7444_s1 + $0x530] sm:$0xff]  ;;  %v4861_v10 = vcombine.low %v238_v62, %v242_v0 }
 0x122   :  { %3499 = vmatpush1.bf16.msra.mxu0 %v4765_v30  ;;  %v211_v30 = vld [vmem:[%s7444_s1 + $0x3f8] sm:$0xff] }
 0x123   :  { %3663 = vmatpush1.bf16.msra.mxu1 %v4767_v31  ;;  %3500 = vmatprep.subr.bf16.mxu0 %v4774_v63  ;;  %v4821_v31 = vcombine.low %v198_v16, %v202_v17  ;;  %v4823_v63 = vcombine.low %v199_v18, %v203_v19  ;;  %v4832_v33 = vcombine.high %v207_v29, %v211_v30  ;;  %v258_v16 = vld [vmem:[%s7444_s1 + $0x570] sm:$0xff]  ;;  %v255_v17 = vld [vmem:[%s7444_s1 + $0x558] sm:$0xff] }
 0x124   :  { %3664 = vmatprep.subr.bf16.mxu1 %v4776_v54  ;;  %v4830_v54 = vcombine.high %v206_v27, %v210_v28  ;;  %v259_v18 = vld [vmem:[%s7444_s1 + $0x578] sm:$0xff]  ;;  %v4869_v19 = vcombine.low %v246_v7, %v250_v8 }
 0x126   :  { %3501 = vmatpush1.bf16.msra.mxu0 %v4773_v38  ;;  %v219_v38 = vld [vmem:[%s7444_s1 + $0x438] sm:$0xff] }
 0x127   :  { %3665 = vmatpush1.bf16.msra.mxu1 %v4775_v39  ;;  %3502 = vmatprep.subr.bf16.mxu0 %v4782_v40  ;;  %v4829_v39 = vcombine.low %v206_v27, %v210_v28  ;;  %v4831_v40 = vcombine.low %v207_v29, %v211_v30  ;;  %v4840_v42 = vcombine.high %v215_v37, %v219_v38  ;;  %v266_v27 = vld [vmem:[%s7444_s1 + $0x5b0] sm:$0xff]  ;;  %v263_v28 = vld [vmem:[%s7444_s1 + $0x598] sm:$0xff] }
 0x128   :  { %3666 = vmatprep.subr.bf16.mxu1 %v4784_v41  ;;  %v4838_v41 = vcombine.high %v214_v34, %v218_v36  ;;  %v267_v29 = vld [vmem:[%s7444_s1 + $0x5b8] sm:$0xff] }
 0x12a   :  { %3503 = vmatpush1.bf16.msra.mxu0 %v4781_v48  ;;  %v227_v48 = vld [vmem:[%s7444_s1 + $0x478] sm:$0xff] }
 0x12b   :  { %3667 = vmatpush1.bf16.msra.mxu1 %v4783_v49  ;;  %3504 = vmatprep.subr.bf16.mxu0 %v4790_v50  ;;  %v4837_v49 = vcombine.low %v214_v34, %v218_v36  ;;  %v4839_v50 = vcombine.low %v215_v37, %v219_v38  ;;  %v4848_v23 = vcombine.high %v223_v47, %v227_v48  ;;  %v274_v34 = vld [vmem:[%s7444_s1 + $0x5f0] sm:$0xff]  ;;  %v271_v36 = vld [vmem:[%s7444_s1 + $0x5d8] sm:$0xff] }
 0x12c   :  { %3668 = vmatprep.subr.bf16.mxu1 %v4792_v15  ;;  %v4846_v15 = vcombine.high %v222_v45, %v226_v46  ;;  %v275_v37 = vld [vmem:[%s7444_s1 + $0x5f8] sm:$0xff] }
 0x12e   :  { %3505 = vmatpush1.bf16.msra.mxu0 %v4789_v56  ;;  %v235_v56 = vld [vmem:[%s7444_s1 + $0x4b8] sm:$0xff] }
 0x12f   :  { %3669 = vmatpush1.bf16.msra.mxu1 %v4791_v57  ;;  %3506 = vmatprep.subr.bf16.mxu0 %v4798_v58  ;;  %v4845_v57 = vcombine.low %v222_v45, %v226_v46  ;;  %v4847_v58 = vcombine.low %v223_v47, %v227_v48  ;;  %v4856_v61 = vcombine.high %v231_v55, %v235_v56  ;;  %v282_v45 = vld [vmem:[%s7444_s1 + $0x630] sm:$0xff]  ;;  %v279_v46 = vld [vmem:[%s7444_s1 + $0x618] sm:$0xff] }
 0x130   :  { %3670 = vmatprep.subr.bf16.mxu1 %v4800_v60  ;;  %v4854_v60 = vcombine.high %v230_v9, %v234_v52  ;;  %v283_v47 = vld [vmem:[%s7444_s1 + $0x638] sm:$0xff] }
 0x132   :  { %3507 = vmatpush1.bf16.msra.mxu0 %v4797_v3  ;;  %v4853_v3 = vcombine.low %v230_v9, %v234_v52  ;;  %v290_v9 = vld [vmem:[%s7444_s1 + $0x670] sm:$0xff]  ;;  %v287_v52 = vld [vmem:[%s7444_s1 + $0x658] sm:$0xff] }
 0x133   :  { %3671 = vmatpush1.bf16.msra.mxu1 %v4799_v4  ;;  %3508 = vmatprep.subr.bf16.mxu0 %v4806_v5  ;;  %v4855_v4 = vcombine.low %v231_v55, %v235_v56  ;;  %v4862_v5 = vcombine.high %v238_v62, %v242_v0  ;;  %v291_v55 = vld [vmem:[%s7444_s1 + $0x678] sm:$0xff]  ;;  %v298_v62 = vld [vmem:[%s7444_s1 + $0x6b0] sm:$0xff] }
 0x134   :  { %3672 = vmatprep.subr.bf16.mxu1 %v4808_v6  ;;  %v295_v0 = vld [vmem:[%s7444_s1 + $0x698] sm:$0xff] }
 0x136   :  { %3509 = vmatpush1.bf16.msra.mxu0 %v4805_v12 }
 0x137   :  { %3673 = vmatpush1.bf16.msra.mxu1 %v4807_v13  ;;  %3510 = vmatprep.subr.bf16.mxu0 %v4814_v59  ;;  %v4870_v13 = vcombine.high %v246_v7, %v250_v8  ;;  %v306_v7 = vld [vmem:[%s7444_s1 + $0x6f0] sm:$0xff]  ;;  %v303_v8 = vld [vmem:[%s7444_s1 + $0x6d8] sm:$0xff] }
 0x138   :  { %3674 = vmatprep.subr.bf16.mxu1 %v4816_v14  ;;  %v254_v14 = vld [vmem:[%s7444_s1 + $0x550] sm:$0xff] }
 0x139   :  { %v4877_v30 = vcombine.low %v254_v14, %v258_v16 }
 0x13a   :  { %3511 = vmatpush1.bf16.msra.mxu0 %v4813_v20 }
 0x13b   :  { %3675 = vmatpush1.bf16.msra.mxu1 %v4815_v21  ;;  %3512 = vmatprep.subr.bf16.mxu0 %v4822_v22  ;;  %v4878_v21 = vcombine.high %v254_v14, %v258_v16  ;;  %v4880_v22 = vcombine.high %v255_v17, %v259_v18  ;;  %v314_v14 = vld [vmem:[%s7444_s1 + $0x730] sm:$0xff]  ;;  %v311_v16 = vld [vmem:[%s7444_s1 + $0x718] sm:$0xff] }
 0x13c   :  { %3676 = vmatprep.subr.bf16.mxu1 %v4824_v24  ;;  %v262_v24 = vld [vmem:[%s7444_s1 + $0x590] sm:$0xff] }
 0x13d   :  { %v4885_v38 = vcombine.low %v262_v24, %v266_v27 }
 0x13e   :  { %3513 = vmatpush1.bf16.msra.mxu0 %v4821_v31  ;;  %v4879_v31 = vcombine.low %v255_v17, %v259_v18  ;;  %v315_v17 = vld [vmem:[%s7444_s1 + $0x738] sm:$0xff] }
 0x13f   :  { %3677 = vmatpush1.bf16.msra.mxu1 %v4823_v63  ;;  %3514 = vmatprep.subr.bf16.mxu0 %v4830_v54  ;;  %v4886_v63 = vcombine.high %v262_v24, %v266_v27  ;;  %v4888_v54 = vcombine.high %v263_v28, %v267_v29  ;;  %v322_v24 = vld [vmem:[%s7444_s1 + $0x770] sm:$0xff]  ;;  %v319_v27 = vld [vmem:[%s7444_s1 + $0x758] sm:$0xff] }
 0x140   :  { %3678 = vmatprep.subr.bf16.mxu1 %v4832_v33  ;;  %v270_v33 = vld [vmem:[%s7444_s1 + $0x5d0] sm:$0xff] }
 0x141   :  { %v4893_v48 = vcombine.low %v270_v33, %v274_v34 }
 0x142   :  { %3515 = vmatpush1.bf16.msra.mxu0 %v4829_v39  ;;  %v4887_v39 = vcombine.low %v263_v28, %v267_v29  ;;  %v323_v28 = vld [vmem:[%s7444_s1 + $0x778] sm:$0xff] }
 0x143   :  { %3679 = vmatpush1.bf16.msra.mxu1 %v4831_v40  ;;  %3525 = vmatprep.subr.bf16.mxu0 %v4838_v41  ;;  %v4894_v40 = vcombine.high %v270_v33, %v274_v34  ;;  %v4896_v41 = vcombine.high %v271_v36, %v275_v37  ;;  %v330_v33 = vld [vmem:[%s7444_s1 + $0x7b0] sm:$0xff]  ;;  %v327_v34 = vld [vmem:[%s7444_s1 + $0x798] sm:$0xff] }
 0x144   :  { %3689 = vmatprep.subr.bf16.mxu1 %v4840_v42  ;;  %v278_v42 = vld [vmem:[%s7444_s1 + $0x610] sm:$0xff] }
 0x145   :  { %3517 = vmatmul.mubr.bf16.vlgmr.msra.gmra.mrb[4].mxu0 %v5786_v25  ;;  %v4901_v56 = vcombine.low %v278_v42, %v282_v45 }
 0x146   :  { %3526 = vmatpush1.bf16.msra.mxu0 %v4837_v49  ;;  %3681 = vmatmul.mubr.bf16.vlgmr.msra.gmra.mrb[4].mxu1 %v5786_v25  ;;  %v239_v25 = vld [vmem:[%s7444_s1 + $0x4d8] sm:$0xff]  ;;  %v4895_v49 = vcombine.low %v271_v36, %v275_v37 }
 0x147   :  { %3690 = vmatpush1.bf16.msra.mxu1 %v4839_v50  ;;  %3527 = vmatprep.subr.bf16.mxu0 %v4846_v15  ;;  %v4864_v6 = vcombine.high %v239_v25, %v243_v1  ;;  %v4863_v12 = vcombine.low %v239_v25, %v243_v1  ;;  %v4902_v50 = vcombine.high %v278_v42, %v282_v45  ;;  %v299_v25 = vld [vmem:[%s7444_s1 + $0x6b8] sm:$0xff]  ;;  %v338_v42 = vld [vmem:[%s7444_s1 + $0x7f0] sm:$0xff] }
 0x148   :  { %3691 = vmatprep.subr.bf16.mxu1 %v4848_v23  ;;  %3557 = vmatprep.mubr.bf16.mxu0 %v5806_v35  ;;  %v4904_v15 = vcombine.high %v279_v46, %v283_v47  ;;  %v286_v23 = vld [vmem:[%s7444_s1 + $0x650] sm:$0xff]  ;;  %v331_v36 = vld [vmem:[%s7444_s1 + $0x7b8] sm:$0xff] }
 0x149   :  { %3721 = vmatprep.mubr.bf16.mxu1 %v5806_v35  ;;  %v247_v35 = vld [vmem:[%s7444_s1 + $0x518] sm:$0xff]  ;;  %v4909_v1 = vcombine.low %v286_v23, %v290_v9 }
 0x14a   :  { %3528 = vmatpush1.bf16.msra.mxu0 %v4845_v57  ;;  %v4872_v59 = vcombine.high %v247_v35, %v251_v32  ;;  %v4871_v20 = vcombine.low %v247_v35, %v251_v32  ;;  %v4903_v57 = vcombine.low %v279_v46, %v283_v47  ;;  %v307_v35 = vld [vmem:[%s7444_s1 + $0x6f8] sm:$0xff] }
 0x14b   :  { %3692 = vmatpush1.bf16.msra.mxu1 %v4847_v58  ;;  %3529 = vmatprep.subr.bf16.mxu0 %v4854_v60  ;;  %v4910_v58 = vcombine.high %v286_v23, %v290_v9  ;;  %v4912_v60 = vcombine.high %v287_v52, %v291_v55  ;;  %v335_v45 = vld [vmem:[%s7444_s1 + $0x7d8] sm:$0xff]  ;;  %v346_v23 = vld [vmem:[%s7444_s1 + $0x830] sm:$0xff] }
 0x14c   :  { %3693 = vmatprep.subr.bf16.mxu1 %v4856_v61  ;;  %v294_v61 = vld [vmem:[%s7444_s1 + $0x690] sm:$0xff]  ;;  %v339_v46 = vld [vmem:[%s7444_s1 + $0x7f8] sm:$0xff] }
 0x14d   :  { %v4917_v32 = vcombine.low %v294_v61, %v298_v62  ;;  %v343_v9 = vld [vmem:[%s7444_s1 + $0x818] sm:$0xff] }
 0x14e   :  { %3530 = vmatpush1.bf16.msra.mxu0 %v4853_v3  ;;  %v4911_v3 = vcombine.low %v287_v52, %v291_v55  ;;  %v347_v52 = vld [vmem:[%s7444_s1 + $0x838] sm:$0xff] }
 0x14f   :  { %3694 = vmatpush1.bf16.msra.mxu1 %v4855_v4  ;;  %3531 = vmatprep.subr.bf16.mxu0 %v4862_v5  ;;  %v4918_v4 = vcombine.high %v294_v61, %v298_v62  ;;  %v4920_v5 = vcombine.high %v295_v0, %v299_v25  ;;  %v354_v61 = vld [vmem:[%s7444_s1 + $0x870] sm:$0xff]  ;;  %v351_v62 = vld [vmem:[%s7444_s1 + $0x858] sm:$0xff] }
 0x150   :  { %3695 = vmatprep.subr.bf16.mxu1 %v4864_v6  ;;  %v302_v6 = vld [vmem:[%s7444_s1 + $0x6d0] sm:$0xff] }
 0x151   :  { %v4925_v18 = vcombine.low %v302_v6, %v306_v7 }
 0x152   :  { %3532 = vmatpush1.bf16.msra.mxu0 %v4861_v10  ;;  %v4919_v10 = vcombine.low %v295_v0, %v299_v25  ;;  %v355_v0 = vld [vmem:[%s7444_s1 + $0x878] sm:$0xff] }
 0x153   :  { %3696 = vmatpush1.bf16.msra.mxu1 %v4863_v12  ;;  %3533 = vmatprep.subr.bf16.mxu0 %v4870_v13  ;;  %v4926_v12 = vcombine.high %v302_v6, %v306_v7  ;;  %v4928_v13 = vcombine.high %v303_v8, %v307_v35  ;;  %v362_v6 = vld [vmem:[%s7444_s1 + $0x8b0] sm:$0xff]  ;;  %v359_v7 = vld [vmem:[%s7444_s1 + $0x898] sm:$0xff] }
 0x154   :  { %3697 = vmatprep.subr.bf16.mxu1 %v4872_v59  ;;  %v310_v59 = vld [vmem:[%s7444_s1 + $0x710] sm:$0xff] }
 0x155   :  { %v4933_v29 = vcombine.low %v310_v59, %v314_v14 }
 0x156   :  { %3534 = vmatpush1.bf16.msra.mxu0 %v4869_v19  ;;  %v4927_v19 = vcombine.low %v303_v8, %v307_v35  ;;  %v363_v8 = vld [vmem:[%s7444_s1 + $0x8b8] sm:$0xff] }
 0x157   :  { %3698 = vmatpush1.bf16.msra.mxu1 %v4871_v20  ;;  %3535 = vmatprep.subr.bf16.mxu0 %v4878_v21  ;;  %v4934_v20 = vcombine.high %v310_v59, %v314_v14  ;;  %v4936_v21 = vcombine.high %v311_v16, %v315_v17  ;;  %v370_v59 = vld [vmem:[%s7444_s1 + $0x8f0] sm:$0xff]  ;;  %v371_v14 = vld [vmem:[%s7444_s1 + $0x8f8] sm:$0xff] }
 0x158   :  { %3699 = vmatprep.subr.bf16.mxu1 %v4880_v22  ;;  %v318_v22 = vld [vmem:[%s7444_s1 + $0x750] sm:$0xff] }
 0x159   :  { %v4941_v37 = vcombine.low %v318_v22, %v322_v24 }
 0x15a   :  { %3536 = vmatpush1.bf16.msra.mxu0 %v4877_v30  ;;  %v4935_v30 = vcombine.low %v311_v16, %v315_v17  ;;  %v4983_v17 = vcombine.low %v359_v7, %v363_v8 }
 0x15b   :  { %3700 = vmatpush1.bf16.msra.mxu1 %v4879_v31  ;;  %3537 = vmatprep.subr.bf16.mxu0 %v4886_v63  ;;  %v4942_v31 = vcombine.high %v318_v22, %v322_v24  ;;  %v4944_v63 = vcombine.high %v319_v27, %v323_v28  ;;  %v379_v22 = vld [vmem:[%s7444_s1 + $0x938] sm:$0xff] }
 0x15c   :  { %3701 = vmatprep.subr.bf16.mxu1 %v4888_v54  ;;  %v326_v54 = vld [vmem:[%s7444_s1 + $0x790] sm:$0xff] }
 0x15d   :  { %v4949_v47 = vcombine.low %v326_v54, %v330_v33 }
 0x15e   :  { %3538 = vmatpush1.bf16.msra.mxu0 %v4885_v38  ;;  %v4943_v38 = vcombine.low %v319_v27, %v323_v28 }
 0x15f   :  { %3702 = vmatpush1.bf16.msra.mxu1 %v4887_v39  ;;  %3539 = vmatprep.subr.bf16.mxu0 %v4894_v40  ;;  %v4950_v39 = vcombine.high %v326_v54, %v330_v33  ;;  %v4952_v40 = vcombine.high %v327_v34, %v331_v36  ;;  %v387_v54 = vld [vmem:[%s7444_s1 + $0x978] sm:$0xff] }
 0x160   :  { %3703 = vmatprep.subr.bf16.mxu1 %v4896_v41  ;;  %v334_v41 = vld [vmem:[%s7444_s1 + $0x7d0] sm:$0xff] }
 0x161   :  { %v4957_v55 = vcombine.low %v334_v41, %v338_v42 }
 0x162   :  { %3540 = vmatpush1.bf16.msra.mxu0 %v4893_v48  ;;  %v4951_v48 = vcombine.low %v327_v34, %v331_v36 }
 0x163   :  { %3704 = vmatpush1.bf16.msra.mxu1 %v4895_v49  ;;  %3541 = vmatprep.subr.bf16.mxu0 %v4902_v50  ;;  %v4958_v49 = vcombine.high %v334_v41, %v338_v42  ;;  %v4960_v50 = vcombine.high %v335_v45, %v339_v46  ;;  %v395_v41 = vld [vmem:[%s7444_s1 + $0x9b8] sm:$0xff] }
 0x164   :  { %3705 = vmatprep.subr.bf16.mxu1 %v4904_v15  ;;  %v342_v15 = vld [vmem:[%s7444_s1 + $0x810] sm:$0xff] }
 0x165   :  { %v4965_v25 = vcombine.low %v342_v15, %v346_v23 }
 0x166   :  { %3542 = vmatpush1.bf16.msra.mxu0 %v4901_v56  ;;  %v4959_v56 = vcombine.low %v335_v45, %v339_v46 }
 0x167   :  { %3706 = vmatpush1.bf16.msra.mxu1 %v4903_v57  ;;  %3543 = vmatprep.subr.bf16.mxu0 %v4910_v58  ;;  %v4966_v57 = vcombine.high %v342_v15, %v346_v23  ;;  %v4968_v58 = vcombine.high %v343_v9, %v347_v52  ;;  %v403_v15 = vld [vmem:[%s7444_s1 + $0x9f8] sm:$0xff] }
 0x168   :  { %3707 = vmatprep.subr.bf16.mxu1 %v4912_v60  ;;  %v350_v60 = vld [vmem:[%s7444_s1 + $0x850] sm:$0xff] }
 0x169   :  { %v4973_v35 = vcombine.low %v350_v60, %v354_v61 }
 0x16a   :  { %3544 = vmatpush1.bf16.msra.mxu0 %v4909_v1  ;;  %v4967_v1 = vcombine.low %v343_v9, %v347_v52 }
 0x16b   :  { %3708 = vmatpush1.bf16.msra.mxu1 %v4911_v3  ;;  %3545 = vmatprep.subr.bf16.mxu0 %v4918_v4  ;;  %v4974_v3 = vcombine.high %v350_v60, %v354_v61  ;;  %v4976_v4 = vcombine.high %v351_v62, %v355_v0  ;;  %v411_v60 = vld [vmem:[%s7444_s1 + $0xa38] sm:$0xff] }
 0x16c   :  { %3709 = vmatprep.subr.bf16.mxu1 %v4920_v5  ;;  %v358_v5 = vld [vmem:[%s7444_s1 + $0x890] sm:$0xff] }
 0x16d   :  { %v4981_v16 = vcombine.low %v358_v5, %v362_v6 }
 0x16e   :  { %3546 = vmatpush1.bf16.msra.mxu0 %v4917_v32  ;;  %v4975_v32 = vcombine.low %v351_v62, %v355_v0 }
 0x16f   :  { %3710 = vmatpush1.bf16.msra.mxu1 %v4919_v10  ;;  %3547 = vmatprep.subr.bf16.mxu0 %v4926_v12  ;;  %v4982_v10 = vcombine.high %v358_v5, %v362_v6  ;;  %v4984_v12 = vcombine.high %v359_v7, %v363_v8  ;;  %v419_v5 = vld [vmem:[%s7444_s1 + $0xa78] sm:$0xff] }
 0x170   :  { %3711 = vmatprep.subr.bf16.mxu1 %v4928_v13  ;;  %v366_v13 = vld [vmem:[%s7444_s1 + $0x8d0] sm:$0xff] }
 0x171   :  { %v4989_v24 = vcombine.low %v366_v13, %v370_v59 }
 0x172   :  { %3548 = vmatpush1.bf16.msra.mxu0 %v4925_v18  ;;  %v4990_v18 = vcombine.high %v366_v13, %v370_v59  ;;  %v427_v13 = vld [vmem:[%s7444_s1 + $0xab8] sm:$0xff] }
 0x173   :  { %3712 = vmatpush1.bf16.msra.mxu1 %v4927_v19  ;;  %3549 = vmatprep.subr.bf16.mxu0 %v4934_v20  ;;  %v374_v20 = vld [vmem:[%s7444_s1 + $0x910] sm:$0xff] }
 0x174   :  { %3713 = vmatprep.subr.bf16.mxu1 %v4936_v21  ;;  %v378_v21 = vld [vmem:[%s7444_s1 + $0x930] sm:$0xff] }
 0x175   :  { %v4998_v28 = vcombine.high %v374_v20, %v378_v21  ;;  %v4997_v33 = vcombine.low %v374_v20, %v378_v21  ;;  %v435_v20 = vld [vmem:[%s7444_s1 + $0xaf8] sm:$0xff] }
 0x176   :  { %3550 = vmatpush1.bf16.msra.mxu0 %v4933_v29 }
 0x177   :  { %3714 = vmatpush1.bf16.msra.mxu1 %v4935_v30  ;;  %3551 = vmatprep.subr.bf16.mxu0 %v4942_v31  ;;  %v382_v30 = vld [vmem:[%s7444_s1 + $0x950] sm:$0xff] }
 0x178   :  { %3715 = vmatprep.subr.bf16.mxu1 %v4944_v63  ;;  %v386_v31 = vld [vmem:[%s7444_s1 + $0x970] sm:$0xff]  ;;  %v383_v63 = vld [vmem:[%s7444_s1 + $0x958] sm:$0xff] }
 0x179   :  { %v5006_v36 = vcombine.high %v382_v30, %v386_v31  ;;  %v5005_v42 = vcombine.low %v382_v30, %v386_v31  ;;  %v5007_v45 = vcombine.low %v383_v63, %v387_v54  ;;  %v443_v30 = vld [vmem:[%s7444_s1 + $0xb38] sm:$0xff] }
 0x17a   :  { %3552 = vmatpush1.bf16.msra.mxu0 %v4941_v37  ;;  %v5008_v37 = vcombine.high %v383_v63, %v387_v54 }
 0x17b   :  { %3716 = vmatpush1.bf16.msra.mxu1 %v4943_v38  ;;  %3553 = vmatprep.subr.bf16.mxu0 %v4950_v39  ;;  %v390_v38 = vld [vmem:[%s7444_s1 + $0x990] sm:$0xff] }
 0x17c   :  { %3717 = vmatprep.subr.bf16.mxu1 %v4952_v40  ;;  %v394_v39 = vld [vmem:[%s7444_s1 + $0x9b0] sm:$0xff]  ;;  %v391_v40 = vld [vmem:[%s7444_s1 + $0x998] sm:$0xff] }
 0x17d   :  { %v5014_v46 = vcombine.high %v390_v38, %v394_v39  ;;  %v5013_v23 = vcombine.low %v390_v38, %v394_v39  ;;  %v5015_v9 = vcombine.low %v391_v40, %v395_v41  ;;  %v451_v38 = vld [vmem:[%s7444_s1 + $0xb78] sm:$0xff] }
 0x17e   :  { %3554 = vmatpush1.bf16.msra.mxu0 %v4949_v47  ;;  %v5016_v47 = vcombine.high %v391_v40, %v395_v41 }
 0x17f   :  { %3718 = vmatpush1.bf16.msra.mxu1 %v4951_v48  ;;  %3555 = vmatprep.subr.bf16.mxu0 %v4958_v49  ;;  %v398_v48 = vld [vmem:[%s7444_s1 + $0x9d0] sm:$0xff] }
 0x180   :  { %3719 = vmatprep.subr.bf16.mxu1 %v4960_v50  ;;  %v402_v49 = vld [vmem:[%s7444_s1 + $0x9f0] sm:$0xff]  ;;  %v399_v50 = vld [vmem:[%s7444_s1 + $0x9d8] sm:$0xff] }
 0x181   :  { %v5022_v52 = vcombine.high %v398_v48, %v402_v49  ;;  %v5021_v61 = vcombine.low %v398_v48, %v402_v49  ;;  %v5023_v62 = vcombine.low %v399_v50, %v403_v15  ;;  %v459_v48 = vld [vmem:[%s7444_s1 + $0xbb8] sm:$0xff] }
 0x182   :  { %3556 = vmatpush1.bf16.msra.mxu0 %v4957_v55  ;;  %v5024_v55 = vcombine.high %v399_v50, %v403_v15 }
 0x183   :  { %3720 = vmatpush1.bf16.msra.mxu1 %v4959_v56  ;;  %3566 = vmatprep.subr.bf16.mxu0 %v4966_v57  ;;  %v406_v56 = vld [vmem:[%s7444_s1 + $0xa10] sm:$0xff] }
 0x184   :  { %3730 = vmatprep.subr.bf16.mxu1 %v4968_v58  ;;  %v410_v57 = vld [vmem:[%s7444_s1 + $0xa30] sm:$0xff]  ;;  %v407_v58 = vld [vmem:[%s7444_s1 + $0xa18] sm:$0xff] }
 0x185   :  { %3558 = vmatmul.mubr.bf16.vlgmr.msra.gmra.mrb[4].mxu0 %v6005_v43  ;;  %v5030_v0 = vcombine.high %v406_v56, %v410_v57  ;;  %v5029_v6 = vcombine.low %v406_v56, %v410_v57  ;;  %v5031_v7 = vcombine.low %v407_v58, %v411_v60  ;;  %v467_v56 = vld [vmem:[%s7444_s1 + $0xbf8] sm:$0xff] }
 0x186   :  { %3567 = vmatpush1.bf16.msra.mxu0 %v4965_v25  ;;  %3722 = vmatmul.mubr.bf16.vlgmr.msra.gmra.mrb[4].mxu1 %v6005_v43  ;;  %v367_v43 = vld [vmem:[%s7444_s1 + $0x8d8] sm:$0xff]  ;;  %v5032_v25 = vcombine.high %v407_v58, %v411_v60 }
 0x187   :  { %3731 = vmatpush1.bf16.msra.mxu1 %v4967_v1  ;;  %3568 = vmatprep.subr.bf16.mxu0 %v4974_v3  ;;  %v4992_v19 = vcombine.high %v367_v43, %v371_v14  ;;  %v4991_v27 = vcombine.low %v367_v43, %v371_v14  ;;  %v414_v1 = vld [vmem:[%s7444_s1 + $0xa50] sm:$0xff] }
 0x188   :  { %3732 = vmatprep.subr.bf16.mxu1 %v4976_v4  ;;  %3598 = vmatprep.mubr.bf16.mxu0 %v6013_v51  ;;  %v418_v3 = vld [vmem:[%s7444_s1 + $0xa70] sm:$0xff]  ;;  %v415_v4 = vld [vmem:[%s7444_s1 + $0xa58] sm:$0xff] }
 0x189   :  { %3762 = vmatprep.mubr.bf16.mxu1 %v6013_v51  ;;  %v375_v51 = vld [vmem:[%s7444_s1 + $0x918] sm:$0xff]  ;;  %v5038_v8 = vcombine.high %v414_v1, %v418_v3  ;;  %v5037_v59 = vcombine.low %v414_v1, %v418_v3  ;;  %v5039_v43 = vcombine.low %v415_v4, %v419_v5 }
 0x18a   :  { %3569 = vmatpush1.bf16.msra.mxu0 %v4973_v35  ;;  %v5000_v29 = vcombine.high %v375_v51, %v379_v22  ;;  %v4999_v34 = vcombine.low %v375_v51, %v379_v22  ;;  %v5040_v35 = vcombine.high %v415_v4, %v419_v5  ;;  %v475_v1 = vld [vmem:[%s7444_s1 + $0xc38] sm:$0xff] }
 0x18b   :  { %3733 = vmatpush1.bf16.msra.mxu1 %v4975_v32  ;;  %3570 = vmatprep.subr.bf16.mxu0 %v4982_v10  ;;  %v422_v32 = vld [vmem:[%s7444_s1 + $0xa90] sm:$0xff] }
 0x18c   :  { %3734 = vmatprep.subr.bf16.mxu1 %v4984_v12  ;;  %v426_v10 = vld [vmem:[%s7444_s1 + $0xab0] sm:$0xff]  ;;  %v423_v12 = vld [vmem:[%s7444_s1 + $0xa98] sm:$0xff] }
 0x18d   :  { %v5046_v14 = vcombine.high %v422_v32, %v426_v10  ;;  %v5045_v21 = vcombine.low %v422_v32, %v426_v10  ;;  %v5047_v51 = vcombine.low %v423_v12, %v427_v13  ;;  %v483_v32 = vld [vmem:[%s7444_s1 + $0xc78] sm:$0xff] }
 0x18e   :  { %3571 = vmatpush1.bf16.msra.mxu0 %v4981_v16  ;;  %v5048_v16 = vcombine.high %v423_v12, %v427_v13 }
 0x18f   :  { %3735 = vmatpush1.bf16.msra.mxu1 %v4983_v17  ;;  %3572 = vmatprep.subr.bf16.mxu0 %v4990_v18  ;;  %v430_v17 = vld [vmem:[%s7444_s1 + $0xad0] sm:$0xff] }
 0x190   :  { %3736 = vmatprep.subr.bf16.mxu1 %v4992_v19  ;;  %v434_v18 = vld [vmem:[%s7444_s1 + $0xaf0] sm:$0xff]  ;;  %v431_v19 = vld [vmem:[%s7444_s1 + $0xad8] sm:$0xff] }
 0x191   :  { %v5054_v22 = vcombine.high %v430_v17, %v434_v18  ;;  %v5053_v31 = vcombine.low %v430_v17, %v434_v18  ;;  %v5055_v63 = vcombine.low %v431_v19, %v435_v20  ;;  %v491_v17 = vld [vmem:[%s7444_s1 + $0xcb8] sm:$0xff] }
 0x192   :  { %3573 = vmatpush1.bf16.msra.mxu0 %v4989_v24  ;;  %v5056_v24 = vcombine.high %v431_v19, %v435_v20 }
 0x193   :  { %3737 = vmatpush1.bf16.msra.mxu1 %v4991_v27  ;;  %3574 = vmatprep.subr.bf16.mxu0 %v4998_v28  ;;  %v438_v27 = vld [vmem:[%s7444_s1 + $0xb10] sm:$0xff] }
 0x194   :  { %3738 = vmatprep.subr.bf16.mxu1 %v5000_v29  ;;  %v442_v28 = vld [vmem:[%s7444_s1 + $0xb30] sm:$0xff]  ;;  %v439_v29 = vld [vmem:[%s7444_s1 + $0xb18] sm:$0xff] }
 0x195   :  { %v5062_v54 = vcombine.high %v438_v27, %v442_v28  ;;  %v5061_v39 = vcombine.low %v438_v27, %v442_v28  ;;  %v5063_v40 = vcombine.low %v439_v29, %v443_v30 }
 0x196   :  { %3575 = vmatpush1.bf16.msra.mxu0 %v4997_v33  ;;  %v5064_v33 = vcombine.high %v439_v29, %v443_v30 }
 0x197   :  { %3739 = vmatpush1.bf16.msra.mxu1 %v4999_v34  ;;  %3576 = vmatprep.subr.bf16.mxu0 %v5006_v36  ;;  %v446_v34 = vld [vmem:[%s7444_s1 + $0xb50] sm:$0xff] }
 0x198   :  { %3740 = vmatprep.subr.bf16.mxu1 %v5008_v37  ;;  %v450_v36 = vld [vmem:[%s7444_s1 + $0xb70] sm:$0xff]  ;;  %v447_v37 = vld [vmem:[%s7444_s1 + $0xb58] sm:$0xff] }
 0x199   :  { %v5070_v41 = vcombine.high %v446_v34, %v450_v36  ;;  %v5069_v49 = vcombine.low %v446_v34, %v450_v36  ;;  %v5071_v50 = vcombine.low %v447_v37, %v451_v38 }
 0x19a   :  { %3577 = vmatpush1.bf16.msra.mxu0 %v5005_v42  ;;  %v5072_v42 = vcombine.high %v447_v37, %v451_v38  ;;  %v510_v38 = vld [vmem:[%s7444_s1 + $0xd50] sm:$0xff] }
 0x19b   :  { %3741 = vmatpush1.bf16.msra.mxu1 %v5007_v45  ;;  %3578 = vmatprep.subr.bf16.mxu0 %v5014_v46  ;;  %v454_v45 = vld [vmem:[%s7444_s1 + $0xb90] sm:$0xff] }
 0x19c   :  { %3742 = vmatprep.subr.bf16.mxu1 %v5016_v47  ;;  %v458_v46 = vld [vmem:[%s7444_s1 + $0xbb0] sm:$0xff]  ;;  %v455_v47 = vld [vmem:[%s7444_s1 + $0xb98] sm:$0xff] }
 0x19d   :  { %v5078_v15 = vcombine.high %v454_v45, %v458_v46  ;;  %v5077_v57 = vcombine.low %v454_v45, %v458_v46  ;;  %v5079_v58 = vcombine.low %v455_v47, %v459_v48 }
 0x19e   :  { %3579 = vmatpush1.bf16.msra.mxu0 %v5013_v23  ;;  %v5080_v23 = vcombine.high %v455_v47, %v459_v48  ;;  %v518_v48 = vld [vmem:[%s7444_s1 + $0xd90] sm:$0xff] }
 0x19f   :  { %3743 = vmatpush1.bf16.msra.mxu1 %v5015_v9  ;;  %3580 = vmatprep.subr.bf16.mxu0 %v5022_v52  ;;  %v462_v9 = vld [vmem:[%s7444_s1 + $0xbd0] sm:$0xff] }
 0x1a0   :  { %3744 = vmatprep.subr.bf16.mxu1 %v5024_v55  ;;  %v466_v52 = vld [vmem:[%s7444_s1 + $0xbf0] sm:$0xff]  ;;  %v463_v55 = vld [vmem:[%s7444_s1 + $0xbd8] sm:$0xff] }
 0x1a1   :  { %v5086_v60 = vcombine.high %v462_v9, %v466_v52  ;;  %v5085_v3 = vcombine.low %v462_v9, %v466_v52  ;;  %v5087_v4 = vcombine.low %v463_v55, %v467_v56 }
 0x1a2   :  { %3581 = vmatpush1.bf16.msra.mxu0 %v5021_v61  ;;  %v5088_v61 = vcombine.high %v463_v55, %v467_v56 }
 0x1a3   :  { %3745 = vmatpush1.bf16.msra.mxu1 %v5023_v62  ;;  %3582 = vmatprep.subr.bf16.mxu0 %v5030_v0  ;;  %v470_v62 = vld [vmem:[%s7444_s1 + $0xc10] sm:$0xff] }
 0x1a4   :  { %3746 = vmatprep.subr.bf16.mxu1 %v5032_v25  ;;  %v474_v0 = vld [vmem:[%s7444_s1 + $0xc30] sm:$0xff]  ;;  %v471_v25 = vld [vmem:[%s7444_s1 + $0xc18] sm:$0xff] }
 0x1a5   :  { %v5094_v5 = vcombine.high %v470_v62, %v474_v0  ;;  %v5093_v10 = vcombine.low %v470_v62, %v474_v0  ;;  %v5095_v12 = vcombine.low %v471_v25, %v475_v1  ;;  %v527_v62 = vld [vmem:[%s7444_s1 + $0xdd8] sm:$0xff] }
 0x1a6   :  { %3583 = vmatpush1.bf16.msra.mxu0 %v5029_v6  ;;  %v5096_v6 = vcombine.high %v471_v25, %v475_v1  ;;  %v531_v0 = vld [vmem:[%s7444_s1 + $0xdf8] sm:$0xff] }
 0x1a7   :  { %3747 = vmatpush1.bf16.msra.mxu1 %v5031_v7  ;;  %3584 = vmatprep.subr.bf16.mxu0 %v5038_v8  ;;  %v478_v7 = vld [vmem:[%s7444_s1 + $0xc50] sm:$0xff] }
 0x1a8   :  { %3748 = vmatprep.subr.bf16.mxu1 %v5040_v35  ;;  %v482_v8 = vld [vmem:[%s7444_s1 + $0xc70] sm:$0xff]  ;;  %v479_v35 = vld [vmem:[%s7444_s1 + $0xc58] sm:$0xff] }
 0x1a9   :  { %v5102_v13 = vcombine.high %v478_v7, %v482_v8  ;;  %v5101_v18 = vcombine.low %v478_v7, %v482_v8  ;;  %v5103_v19 = vcombine.low %v479_v35, %v483_v32 }
 0x1aa   :  { %3585 = vmatpush1.bf16.msra.mxu0 %v5037_v59  ;;  %v5104_v59 = vcombine.high %v479_v35, %v483_v32 }
 0x1ab   :  { %3749 = vmatpush1.bf16.msra.mxu1 %v5039_v43  ;;  %3586 = vmatprep.subr.bf16.mxu0 %v5046_v14  ;;  %v486_v43 = vld [vmem:[%s7444_s1 + $0xc90] sm:$0xff] }
 0x1ac   :  { %3750 = vmatprep.subr.bf16.mxu1 %v5048_v16  ;;  %v490_v14 = vld [vmem:[%s7444_s1 + $0xcb0] sm:$0xff]  ;;  %v487_v16 = vld [vmem:[%s7444_s1 + $0xc98] sm:$0xff] }
 0x1ad   :  { %v5110_v20 = vcombine.high %v486_v43, %v490_v14  ;;  %v5109_v27 = vcombine.low %v486_v43, %v490_v14  ;;  %v5111_v28 = vcombine.low %v487_v16, %v491_v17  ;;  %v3869_v14 = vsub.s32 0, %v5613_v44 }
 0x1ae   :  { %3587 = vmatpush1.bf16.msra.mxu0 %v5045_v21  ;;  %v5112_v21 = vcombine.high %v487_v16, %v491_v17  ;;  %v535_v16 = vld [vmem:[%s7444_s1 + $0xe18] sm:$0xff] }
 0x1af   :  { %3751 = vmatpush1.bf16.msra.mxu1 %v5047_v51  ;;  %3588 = vmatprep.subr.bf16.mxu0 %v5054_v22  ;;  %v494_v51 = vld [vmem:[%s7444_s1 + $0xcd0] sm:$0xff]  ;;  %v539_v17 = vld [vmem:[%s7444_s1 + $0xe38] sm:$0xff] }
 0x1b0   :  { %3752 = vmatprep.subr.bf16.mxu1 %v5056_v24  ;;  %v498_v22 = vld [vmem:[%s7444_s1 + $0xcf0] sm:$0xff]  ;;  %v499_v24 = vld [vmem:[%s7444_s1 + $0xcf8] sm:$0xff] }
 0x1b1   :  { %v5118_v29 = vcombine.high %v494_v51, %v498_v22 }
 0x1b2   :  { %3589 = vmatpush1.bf16.msra.mxu0 %v5053_v31  ;;  %v502_v31 = vld [vmem:[%s7444_s1 + $0xd10] sm:$0xff] }
 0x1b3   :  { %3753 = vmatpush1.bf16.msra.mxu1 %v5055_v63  ;;  %3590 = vmatprep.subr.bf16.mxu0 %v5062_v54  ;;  %v506_v63 = vld [vmem:[%s7444_s1 + $0xd30] sm:$0xff]  ;;  %v507_v54 = vld [vmem:[%s7444_s1 + $0xd38] sm:$0xff] }
 0x1b4   :  { %3754 = vmatprep.subr.bf16.mxu1 %v5064_v33  ;;  %v5117_v33 = vcombine.low %v494_v51, %v498_v22  ;;  %v5126_v36 = vcombine.high %v502_v31, %v506_v63 }
 0x1b6   :  { %3591 = vmatpush1.bf16.msra.mxu0 %v5061_v39  ;;  %v514_v39 = vld [vmem:[%s7444_s1 + $0xd70] sm:$0xff] }
 0x1b7   :  { %3755 = vmatpush1.bf16.msra.mxu1 %v5063_v40  ;;  %3592 = vmatprep.subr.bf16.mxu0 %v5070_v41  ;;  %v511_v40 = vld [vmem:[%s7444_s1 + $0xd58] sm:$0xff]  ;;  %v5134_v46 = vcombine.high %v510_v38, %v514_v39 }
 0x1b8   :  { %3756 = vmatprep.subr.bf16.mxu1 %v5072_v42  ;;  %v515_v41 = vld [vmem:[%s7444_s1 + $0xd78] sm:$0xff]  ;;  %v5125_v42 = vcombine.low %v502_v31, %v506_v63 }
 0x1b9   :  { %v5136_v47 = vcombine.high %v511_v40, %v515_v41  ;;  %v5135_v9 = vcombine.low %v511_v40, %v515_v41  ;;  %v543_v31 = vld [vmem:[%s7444_s1 + $0xe58] sm:$0xff]  ;;  %v554_v40 = vld [vmem:[%s7444_s1 + $0xeb0] sm:$0xff] }
 0x1ba   :  { %3593 = vmatpush1.bf16.msra.mxu0 %v5069_v49  ;;  %v522_v49 = vld [vmem:[%s7444_s1 + $0xdb0] sm:$0xff]  ;;  %v547_v63 = vld [vmem:[%s7444_s1 + $0xe78] sm:$0xff] }
 0x1bb   :  { %3757 = vmatpush1.bf16.msra.mxu1 %v5071_v50  ;;  %3594 = vmatprep.subr.bf16.mxu0 %v5078_v15  ;;  %v519_v50 = vld [vmem:[%s7444_s1 + $0xd98] sm:$0xff]  ;;  %v5142_v52 = vcombine.high %v518_v48, %v522_v49 }
 0x1bc   :  { %3758 = vmatprep.subr.bf16.mxu1 %v5080_v23  ;;  %v523_v15 = vld [vmem:[%s7444_s1 + $0xdb8] sm:$0xff]  ;;  %v5133_v23 = vcombine.low %v510_v38, %v514_v39  ;;  %v5168_v38 = vcombine.high %v543_v31, %v547_v63  ;;  %v550_v39 = vld [vmem:[%s7444_s1 + $0xe90] sm:$0xff] }
 0x1bd   :  { %v5144_v56 = vcombine.high %v519_v50, %v523_v15  ;;  %v5143_v8 = vcombine.low %v519_v50, %v523_v15  ;;  %v551_v41 = vld [vmem:[%s7444_s1 + $0xe98] sm:$0xff]  ;;  %v558_v15 = vld [vmem:[%s7444_s1 + $0xed0] sm:$0xff] }
 0x1be   :  { %3595 = vmatpush1.bf16.msra.mxu0 %v5077_v57  ;;  %v526_v57 = vld [vmem:[%s7444_s1 + $0xdd0] sm:$0xff] }
 0x1bf   :  { %3759 = vmatpush1.bf16.msra.mxu1 %v5079_v58  ;;  %3596 = vmatprep.subr.bf16.mxu0 %v5086_v60  ;;  %v530_v58 = vld [vmem:[%s7444_s1 + $0xdf0] sm:$0xff] }
 0x1c0   :  { %3760 = vmatprep.subr.bf16.mxu1 %v5088_v61  ;;  %v5150_v35 = vcombine.high %v526_v57, %v530_v58  ;;  %v5149_v51 = vcombine.low %v526_v57, %v530_v58  ;;  %v5173_v57 = vcombine.low %v550_v39, %v554_v40 }
 0x1c2   :  { %3597 = vmatpush1.bf16.msra.mxu0 %v5085_v3 }
 0x1c3   :  { %3761 = vmatpush1.bf16.msra.mxu1 %v5087_v4  ;;  %3607 = vmatprep.subr.bf16.mxu0 %v5094_v5  ;;  %v5141_v4 = vcombine.low %v518_v48, %v522_v49  ;;  %v5167_v48 = vcombine.low %v543_v31, %v547_v63  ;;  %v5174_v49 = vcombine.high %v550_v39, %v554_v40  ;;  %v5426_v39 = vld [vmem:[%s7446_s3 + $0x40] sm:$0xff]  }
 0x1c4   :  { %3771 = vmatprep.subr.bf16.mxu1 %v5096_v6  ;;  %v5427_v40 = vld [vmem:[%s7446_s3 + $0xc0] sm:$0xff]  }
 0x1c5   :  { %3599 = vmatmul.mubr.bf16.vlgmr.msra.gmra.mrb[4].mxu0 %v6208_v2 }
 0x1c6   :  { %3608 = vmatpush1.bf16.msra.mxu0 %v5093_v10  ;;  %3763 = vmatmul.mubr.bf16.vlgmr.msra.gmra.mrb[4].mxu1 %v6208_v2  ;;  %v495_v2 = vld [vmem:[%s7444_s1 + $0xcd8] sm:$0xff] }
 0x1c7   :  { %3772 = vmatpush1.bf16.msra.mxu1 %v5095_v12  ;;  %3609 = vmatprep.subr.bf16.mxu0 %v5102_v13  ;;  %v5120_v30 = vcombine.high %v495_v2, %v499_v24  ;;  %v5119_v34 = vcombine.low %v495_v2, %v499_v24  ;;  %v5152_v12 = vcombine.high %v527_v62, %v531_v0  ;;  %v534_v13 = vld [vmem:[%s7444_s1 + $0xe10] sm:$0xff] }
 0x1c8   :  { %3773 = vmatprep.subr.bf16.mxu1 %v5104_v59  ;;  %3639 = vmatprep.mubr.bf16.mxu0 %v6222_v11  ;;  %v538_v59 = vld [vmem:[%s7444_s1 + $0xe30] sm:$0xff]  ;;  %v5151_v2 = vcombine.low %v527_v62, %v531_v0 }
 0x1c9   :  { %3803 = vmatprep.mubr.bf16.mxu1 %v6222_v11  ;;  %v503_v11 = vld [vmem:[%s7444_s1 + $0xd18] sm:$0xff]  ;;  %v5158_v24 = vcombine.high %v534_v13, %v538_v59  ;;  %v566_v62 = vld [vmem:[%s7444_s1 + $0xf10] sm:$0xff] }
 0x1ca   :  { %3610 = vmatpush1.bf16.msra.mxu0 %v5101_v18  ;;  %v5128_v37 = vcombine.high %v503_v11, %v507_v54  ;;  %v5127_v45 = vcombine.low %v503_v11, %v507_v54  ;;  %v7104_v18 = vld [vmem:[%s7445_s2] sm:$0xff]  ;;  %v570_v0 = vld [vmem:[%s7444_s1 + $0xf30] sm:$0xff] }
 0x1cb   :  { %3774 = vmatpush1.bf16.msra.mxu1 %v5103_v19  ;;  %3611 = vmatprep.subr.bf16.mxu0 %v5110_v20  ;;  %v3873_v19 = vsub.s32 1, %v5613_v44  ;;  %v3877_v20 = vsub.s32 2, %v5613_v44 }
 0x1cc   :  { %3775 = vmatprep.subr.bf16.mxu1 %v5112_v21  ;;  %v3881_v21 = vsub.s32 3, %v5613_v44 }
 0x1cd   :  { %v3874_v11 = vrot.slane %v7104_v18, %v3873_v19  ;;  %v3878_v54 = vrot.slane %v7104_v18, %v3877_v20  ;;  %v582_v19 = vld [vmem:[%s7444_s1 + $0xf90] sm:$0xff] }
 0x1ce   :  { %3612 = vmatpush1.bf16.msra.mxu0 %v5109_v27  ;;  %v5160_v27 = vcombine.high %v535_v16, %v539_v17  ;;  %v586_v20 = vld [vmem:[%s7444_s1 + $0xfb0] sm:$0xff] }
 0x1cf   :  { %3776 = vmatpush1.bf16.msra.mxu1 %v5111_v28  ;;  %3613 = vmatprep.subr.bf16.mxu0 %v5118_v29  ;;  %v542_v28 = vld [vmem:[%s7444_s1 + $0xe50] sm:$0xff]  ;;  %v5205_v31 = vcombine.low %v582_v19, %v586_v20 }
 0x1d0   :  { %3777 = vmatprep.subr.bf16.mxu1 %v5120_v30  ;;  %v546_v29 = vld [vmem:[%s7444_s1 + $0xe70] sm:$0xff]  ;;  %v3870_v30 = vrot.slane %v7104_v18, %v3869_v14 }
 0x1d2   :  { %3614 = vmatpush1.bf16.msra.mxu0 %v5117_v33  ;;  %v3882_v33 = vrot.slane %v7104_v18, %v3881_v21 }
 0x1d3   :  { %3778 = vmatpush1.bf16.msra.mxu1 %v5119_v34  ;;  %3615 = vmatprep.subr.bf16.mxu0 %v5126_v36  ;;  %v5157_v34 = vcombine.low %v534_v13, %v538_v59  ;;  %v5159_v36 = vcombine.low %v535_v16, %v539_v17  ;;  %v5189_v59 = vcombine.low %v566_v62, %v570_v0 }
 0x1d4   :  { %3779 = vmatprep.subr.bf16.mxu1 %v5128_v37  ;;  %v5166_v37 = vcombine.high %v542_v28, %v546_v29 }
 0x1d6   :  { %3616 = vmatpush1.bf16.msra.mxu0 %v5125_v42  ;;  %v555_v42 = vld [vmem:[%s7444_s1 + $0xeb8] sm:$0xff] }
 0x1d7   :  { %3780 = vmatpush1.bf16.msra.mxu1 %v5127_v45  ;;  %3617 = vmatprep.subr.bf16.mxu0 %v5134_v46  ;;  %v3899_v45 = vcombine.low %v3870_v30, %v3874_v11  ;;  %v3900_v46 = vcombine.low %v3878_v54, %v3882_v33  ;;  %v5176_v50 = vcombine.high %v551_v41, %v555_v42  ;;  %v595_v30 = vld [vmem:[%s7444_s1 + $0xff8] sm:$0xff] }
 0x1d8   :  { %v3313_v55 = vpop.f32.mrb[0].mxu0  ;;  %3781 = vmatprep.subr.bf16.mxu1 %v5136_v47  ;;  %v5165_v47 = vcombine.low %v542_v28, %v546_v29  ;;  %v5175_v58 = vcombine.low %v551_v41, %v555_v42  ;;  %v594_v28 = vld [vmem:[%s7444_s1 + $0xff0] sm:$0xff]  ;;  %v591_v29 = vld [vmem:[%s7444_s1 + $0xfd8] sm:$0xff]  ;;  %v5428_v42 = vld [vmem:[%s7446_s3] sm:$0xff]  }
 0x1d9   :  { %v3477_v60 = vpop.f32.mrb[0].mxu1  ;;  %v3315_v61 = vpop.f32.mrb[1].mxu0  ;;  %v5216_v33 = vcombine.high %v591_v29, %v595_v30 }
 0x1da   :  { %v3820_v25 = vcombine.low %v3313_v55, %v3315_v61  ;;  %v3479_v1 = vpop.f32.mrb[1].mxu1  ;;  %v3317_v3 = vpop.f32.mrb[2].mxu0  ;;  %3618 = vmatpush1.bf16.msra.mxu0 %v5133_v23  ;;  %v562_v23 = vld [vmem:[%s7444_s1 + $0xef0] sm:$0xff]  ;;  %v3907_v55 = vrot.slane %v3899_v45, %v5628_v53 }
 0x1db   :  { %v3821_v5 = vcombine.low %v3477_v60, %v3479_v1  ;;  %v3481_v6 = vpop.f32.mrb[2].mxu1  ;;  %3782 = vmatpush1.bf16.msra.mxu1 %v5135_v9  ;;  %v3318_v7 = vpop.f32.mrb[3].mxu0  ;;  %3619 = vmatprep.subr.bf16.mxu0 %v5142_v52  ;;  %v559_v9 = vld [vmem:[%s7444_s1 + $0xed8] sm:$0xff]  ;;  %v5182_v60 = vcombine.high %v558_v15, %v562_v23 }
 0x1dc   :  { %v7083_v32 = vrot.slane %v3820_v25, %v5628_v53  ;;  %v3482_v10 = vpop.f32.mrb[3].mxu1  ;;  %3783 = vmatprep.subr.bf16.mxu1 %v5144_v56  ;;  %v563_v52 = vld [vmem:[%s7444_s1 + $0xef8] sm:$0xff]  ;;  %v3914_v56 = vrot.slane %v3900_v46, %v5628_v53  ;;  %v5190_v6 = vcombine.high %v566_v62, %v570_v0  ;;  %v5429_v46 = vld [vmem:[%s7446_s3 + $0x80] sm:$0xff]  }
 0x1dd   :  { %v7092_v43 = vrot.slane %v3821_v5, %v5628_v53  ;;  %v5184_v61 = vcombine.high %v559_v9, %v563_v52  ;;  %v567_v25 = vld [vmem:[%s7444_s1 + $0xf18] sm:$0xff]  ;;  %v5183_v5 = vcombine.low %v559_v9, %v563_v52  ;;  %v5434_v9 = vld [vmem:[%s7446_s3 + $0x50] sm:$0xff]   ;;  %v5443_v62 = vld [vmem:[%s7446_s3 + $0xe0] sm:$0xff]  }
 0x1de   :  { %3620 = vmatpush1.bf16.msra.mxu0 %v5141_v4  ;;  %v571_v1 = vld [vmem:[%s7444_s1 + $0xf38] sm:$0xff]  ;;  %v3915_v3 = vcombine.low %v3907_v55, %v3914_v56  ;;  %v5181_v4 = vcombine.low %v558_v15, %v562_v23  ;;  %v5432_v15 = vld [vmem:[%s7446_s3 + $0x8] sm:$0xff]   ;;  %v5436_v52 = vld [vmem:[%s7446_s3 + $0x10] sm:$0xff]  }
 0x1df   :  { %v3836_v22 = vcombine.low %v7083_v32, %v7092_v43  ;;  %3784 = vmatpush1.bf16.msra.mxu1 %v5143_v8  ;;  %3621 = vmatprep.subr.bf16.mxu0 %v5150_v35  ;;  %v5192_v7 = vcombine.high %v567_v25, %v571_v1  ;;  %v574_v8 = vld [vmem:[%s7444_s1 + $0xf50] sm:$0xff]  ;;  %v575_v10 = vld [vmem:[%s7444_s1 + $0xf58] sm:$0xff]  ;;  %v5191_v14 = vcombine.low %v567_v25, %v571_v1  ;;  %v5433_v23 = vld [vmem:[%s7446_s3 + $0x88] sm:$0xff]  }
 0x1e0   :  { %3785 = vmatprep.subr.bf16.mxu1 %v5152_v12  ;;  %v578_v35 = vld [vmem:[%s7444_s1 + $0xf70] sm:$0xff]  ;;  %v579_v12 = vld [vmem:[%s7444_s1 + $0xf78] sm:$0xff]  ;;  %v5444_v0 = vld [vmem:[%s7446_s3 + $0x20] sm:$0xff]  }
 0x1e1   :  { %v3935_v13 = vadd.f32 %v3915_v3, %v3836_v22  ;;  %v5198_v16 = vcombine.high %v574_v8, %v578_v35  ;;  %v5200_v17 = vcombine.high %v575_v10, %v579_v12  ;;  %v583_v32 = vld [vmem:[%s7444_s1 + $0xf98] sm:$0xff]  ;;  %v5199_v22 = vcombine.low %v575_v10, %v579_v12  ;;  %v5437_v55 = vld [vmem:[%s7446_s3 + $0x90] sm:$0xff]   ;;  %v5445_v25 = vld [vmem:[%s7446_s3 + $0xa0] sm:$0xff]  }
 0x1e2   :  { %3622 = vmatpush1.bf16.msra.mxu0 %v5149_v51  ;;  %v587_v43 = vld [vmem:[%s7444_s1 + $0xfb8] sm:$0xff]  ;;  %v5197_v51 = vcombine.low %v574_v8, %v578_v35  ;;  %v5446_v1 = vld [vmem:[%s7446_s3 + $0x68] sm:$0xff]   ;;  %v5452_v8 = vld [vmem:[%s7446_s3 + $0x30] sm:$0xff]  }
 0x1e3   :  { %3786 = vmatpush1.bf16.msra.mxu1 %v5151_v2  ;;  %3623 = vmatprep.subr.bf16.mxu0 %v5158_v24  ;;  %v3937_v21 = vmax.f32 %v3935_v13, 0.0  ;;  %v5206_v2 = vcombine.high %v582_v19, %v586_v20  ;;  %v5208_v24 = vcombine.high %v583_v32, %v587_v43  ;;  %v5207_v11 = vcombine.low %v583_v32, %v587_v43  ;;  %v5438_v56 = vld [vmem:[%s7446_s3 + $0x58] sm:$0xff]   ;;  %v5447_v3 = vld [vmem:[%s7446_s3 + $0xe8] sm:$0xff]   ;;  %v5453_v35 = vld [vmem:[%s7446_s3 + $0xb0] sm:$0xff]  }
 0x1e4   :  { %3787 = vmatprep.subr.bf16.mxu1 %v5160_v27  ;;  %v590_v27 = vld [vmem:[%s7444_s1 + $0xfd0] sm:$0xff]  ;;  %v5454_v10 = vld [vmem:[%s7446_s3 + $0x78] sm:$0xff]   ;;  %v5461_v20 = vld [vmem:[%s7446_s3 + $0x180] sm:$0xff]  }
 0x1e5   :  { %v3941_v63 = vcombine.high %v3937_v21, %v3937_v21  ;;  %v5214_v54 = vcombine.high %v590_v27, %v594_v28  ;;  %v5455_v12 = vld [vmem:[%s7446_s3 + $0xf8] sm:$0xff]   ;;  %v5462_v32 = vld [vmem:[%s7446_s3 + $0x148] sm:$0xff]  }
 0x1e6   :  { %3624 = vmatpush1.bf16.msra.mxu0 %v5157_v34  ;;  %v7205_v34 = vrot.slane %v3937_v21, %v5628_v53  ;;  %v5456_v13 = vld [vmem:[%s7446_s3 + $0x38] sm:$0xff]   ;;  %v5464_v21 = vld [vmem:[%s7446_s3 + $0x1c8] sm:$0xff]  }
 0x1e7   :  { %3788 = vmatpush1.bf16.msra.mxu1 %v5159_v36  ;;  %3625 = vmatprep.subr.bf16.mxu0 %v5166_v37  ;;  %v5213_v36 = vcombine.low %v590_v27, %v594_v28  ;;  %v7208_v37 = vrot.slane %v3941_v63, %v5628_v53  ;;  %v5467_v27 = vld [vmem:[%s7446_s3 + $0x110] sm:$0xff]   ;;  %v5473_v63 = vld [vmem:[%s7446_s3 + $0x198] sm:$0xff]  }
 0x1e8   :  { %3789 = vmatprep.subr.bf16.mxu1 %v5168_v38  ;;  %v5215_v38 = vcombine.low %v591_v29, %v595_v30  ;;  %v3956_v41 = vcombine.high %v7205_v34, %v7205_v34  ;;  %v3983_v19 = vpack.c.bf16 %v7205_v34, %v7205_v34  ;;  %v5469_v28 = vld [vmem:[%s7446_s3 + $0x190] sm:$0xff]   ;;  %v5470_v29 = vld [vmem:[%s7446_s3 + $0x158] sm:$0xff]   ;;  %v5477_v34 = vld [vmem:[%s7446_s3 + $0x1a0] sm:$0xff]  }
 0x1e9   :  { %v3957_v45 = vcombine.high %v7208_v37, %v7208_v37  ;;  %v3985_v43 = vpack.c.bf16 %v7208_v37, %v7208_v37  ;;  %v5471_v30 = vld [vmem:[%s7446_s3 + $0x118] sm:$0xff]   ;;  %v5479_v37 = vld [vmem:[%s7446_s3 + $0x128] sm:$0xff]  }
 0x1ea   :  { %3626 = vmatpush1.bf16.msra.mxu0 %v5165_v47  ;;  %v5430_v47 = vld [vmem:[%s7446_s3 + $0x48] sm:$0xff]  }
 0x1eb   :  { %3790 = vmatpush1.bf16.msra.mxu1 %v5167_v48  ;;  %3627 = vmatprep.subr.bf16.mxu0 %v5174_v49  ;;  %v3984_v48 = vpack.c.bf16 %v3956_v41, %v3956_v41  ;;  %v5431_v49 = vld [vmem:[%s7446_s3 + $0xc8] sm:$0xff]   ;;  %v5483_v41 = vld [vmem:[%s7446_s3 + $0x130] sm:$0xff]  }
 0x1ec   :  { %3791 = vmatprep.subr.bf16.mxu1 %v5176_v50  ;;  %v3986_v50 = vpack.c.bf16 %v3957_v45, %v3957_v45  ;;  %v5485_v45 = vld [vmem:[%s7446_s3 + $0x1b0] sm:$0xff]  }
 0x1ee   :  { %3628 = vmatpush1.bf16.msra.mxu0 %v5173_v57  ;;  %v5439_v57 = vld [vmem:[%s7446_s3 + $0xd8] sm:$0xff]  }
 0x1ef   :  { %3792 = vmatpush1.bf16.msra.mxu1 %v5175_v58  ;;  %3629 = vmatprep.subr.bf16.mxu0 %v5182_v60  ;;  %v5440_v58 = vld [vmem:[%s7446_s3 + $0x18] sm:$0xff]  }
 0x1f0   :  { %3793 = vmatprep.subr.bf16.mxu1 %v5184_v61  ;;  %v5441_v60 = vld [vmem:[%s7446_s3 + $0x98] sm:$0xff]   ;;  %v5442_v61 = vld [vmem:[%s7446_s3 + $0x60] sm:$0xff]  }
 0x1f2   :  { %3630 = vmatpush1.bf16.msra.mxu0 %v5181_v4  ;;  %v5448_v4 = vld [vmem:[%s7446_s3 + $0x28] sm:$0xff]  }
 0x1f3   :  { %3794 = vmatpush1.bf16.msra.mxu1 %v5183_v5  ;;  %3631 = vmatprep.subr.bf16.mxu0 %v5190_v6  ;;  %v5449_v5 = vld [vmem:[%s7446_s3 + $0xa8] sm:$0xff]   ;;  %v5450_v6 = vld [vmem:[%s7446_s3 + $0x70] sm:$0xff]  }
 0x1f4   :  { %3795 = vmatprep.subr.bf16.mxu1 %v5192_v7  ;;  %v5451_v7 = vld [vmem:[%s7446_s3 + $0xf0] sm:$0xff]  }
 0x1f6   :  { %3632 = vmatpush1.bf16.msra.mxu0 %v5189_v59  ;;  %v5457_v59 = vld [vmem:[%s7446_s3 + $0xb8] sm:$0xff]  }
 0x1f7   :  { %3796 = vmatpush1.bf16.msra.mxu1 %v5191_v14  ;;  %3633 = vmatprep.subr.bf16.mxu0 %v5198_v16  ;;  %v5458_v14 = vld [vmem:[%s7446_s3 + $0x140] sm:$0xff]  }
 0x1f8   :  { %3797 = vmatprep.subr.bf16.mxu1 %v5200_v17  ;;  %v5460_v16 = vld [vmem:[%s7446_s3 + $0x1c0] sm:$0xff]  }
 0x1f9   :  { %v5459_v17 = vld [vmem:[%s7446_s3 + $0x100] sm:$0xff]  }
 0x1fa   :  { %3634 = vmatpush1.bf16.msra.mxu0 %v5197_v51  ;;  %v5463_v51 = vld [vmem:[%s7446_s3 + $0x108] sm:$0xff]  }
 0x1fb   :  { %3798 = vmatpush1.bf16.msra.mxu1 %v5199_v22  ;;  %3635 = vmatprep.subr.bf16.mxu0 %v5206_v2  ;;  %v5465_v22 = vld [vmem:[%s7446_s3 + $0x188] sm:$0xff]   ;;  %v5466_v2 = vld [vmem:[%s7446_s3 + $0x150] sm:$0xff]  }
 0x1fc   :  { %3799 = vmatprep.subr.bf16.mxu1 %v5208_v24  ;;  %v5468_v24 = vld [vmem:[%s7446_s3 + $0x1d0] sm:$0xff]  }
 0x1fe   :  { %3636 = vmatpush1.bf16.msra.mxu0 %v5205_v31  ;;  %v5472_v31 = vld [vmem:[%s7446_s3 + $0x1d8] sm:$0xff]  }
 0x1ff   :  { %3800 = vmatpush1.bf16.msra.mxu1 %v5207_v11  ;;  %3637 = vmatprep.subr.bf16.mxu0 %v5214_v54  ;;  %v5474_v11 = vld [vmem:[%s7446_s3 + $0x160] sm:$0xff]  }
 0x200   :  { %3801 = vmatprep.subr.bf16.mxu1 %v5216_v33  ;;  %v5475_v54 = vld [vmem:[%s7446_s3 + $0x120] sm:$0xff]  }
 0x201   :  { %v5476_v33 = vld [vmem:[%s7446_s3 + $0x1e0] sm:$0xff]  }
 0x202   :  { %3638 = vmatpush1.bf16.msra.mxu0 %v5213_v36  ;;  %v5478_v36 = vld [vmem:[%s7446_s3 + $0x168] sm:$0xff]  }
 0x203   :  { %3802 = vmatpush1.bf16.msra.mxu1 %v5215_v38  ;;  %5282 = vmatprep.subr.bf16.mxu0 %v5426_v39  ;;  %v5480_v38 = vld [vmem:[%s7446_s3 + $0x1e8] sm:$0xff]  }
 0x204   :  { %5304 = vmatprep.subr.bf16.mxu1 %v5427_v40  ;;  %v5481_v39 = vld [vmem:[%s7446_s3 + $0x1a8] sm:$0xff]   ;;  %v5482_v40 = vld [vmem:[%s7446_s3 + $0x170] sm:$0xff]  }
 0x205   :  { %3640 = vmatmul.mubr.bf16.vlgmr.msra.gmra.mrb[4].mxu0 %v6410_v26 }
 0x206   :  { %3804 = vmatmul.mubr.bf16.vlgmr.msra.gmra.mrb[4].mxu1 %v6410_v26  ;;  %5283 = vmatpush3.bf16.msra.mxu0 %v5428_v42  ;;  %v5435_v26 = vld [vmem:[%s7446_s3 + $0xd0] sm:$0xff]  }
 0x207   :  { %4542 = vmatprep.mubr.bf16.mxu0 %v3984_v48  ;;  %5305 = vmatpush3.bf16.msra.mxu1 %v5429_v46  ;;  %v5484_v42 = vld [vmem:[%s7446_s3 + $0x1f0] sm:$0xff]   ;;  %v5486_v46 = vld [vmem:[%s7446_s3 + $0x178] sm:$0xff]  }
 0x208   :  { %4582 = vmatprep.mubr.bf16.mxu1 %v3986_v50  ;;  %5284 = vmatprep.subr.bf16.mxu0 %v5430_v47  ;;  %v5488_v47 = vld [vmem:[%s7446_s3 + $0x1f8] sm:$0xff]   ;;  %v3885_v50 = vsub.s32 4, %v5613_v44 }
 0x209   :  { %5306 = vmatprep.subr.bf16.mxu1 %v5431_v49  ;;  %v5487_v48 = vld [vmem:[%s7446_s3 + $0x138] sm:$0xff]  }
 0x20a   :  { %5285 = vmatpush3.bf16.msra.mxu0 %v5432_v15  ;;  %v5489_v49 = vld [vmem:[%s7446_s3 + $0x1b8] sm:$0xff]   ;;  %v3889_v15 = vsub.s32 5, %v5613_v44 }
 0x20b   :  { %5307 = vmatpush3.bf16.msra.mxu1 %v5433_v23  ;;  %5286 = vmatprep.subr.bf16.mxu0 %v5434_v9  ;;  %v3893_v23 = vsub.s32 6, %v5613_v44  ;;  %v3897_v9 = vsub.s32 7, %v5613_v44 }
 0x20c   :  { %5308 = vmatprep.subr.bf16.mxu1 %v5435_v26  ;;  %v3886_v26 = vrot.slane %v7104_v18, %v3885_v50 }
 0x20e   :  { %5287 = vmatpush3.bf16.msra.mxu0 %v5436_v52  ;;  %v3890_v52 = vrot.slane %v7104_v18, %v3889_v15 }
 0x20f   :  { %5309 = vmatpush3.bf16.msra.mxu1 %v5437_v55  ;;  %5288 = vmatprep.subr.bf16.mxu0 %v5438_v56  ;;  %v3894_v55 = vrot.slane %v7104_v18, %v3893_v23  ;;  %v3898_v56 = vrot.slane %v7104_v18, %v3897_v9 }
 0x210   :  { %5310 = vmatprep.subr.bf16.mxu1 %v5439_v57  ;;  %v3916_v57 = vcombine.low %v3886_v26, %v3890_v52 }
 0x212   :  { %5289 = vmatpush3.bf16.msra.mxu0 %v5440_v58  ;;  %v3917_v58 = vcombine.low %v3894_v55, %v3898_v56 }
 0x213   :  { %5311 = vmatpush3.bf16.msra.mxu1 %v5441_v60  ;;  %5290 = vmatprep.subr.bf16.mxu0 %v5442_v61 }
 0x214   :  { %5312 = vmatprep.subr.bf16.mxu1 %v5443_v62 }
 0x216   :  { %5291 = vmatpush3.bf16.msra.mxu0 %v5444_v0  ;;  %v3924_v0 = vrot.slane %v3916_v57, %v5628_v53 }
 0x217   :  { %5313 = vmatpush3.bf16.msra.mxu1 %v5445_v25  ;;  %5292 = vmatprep.subr.bf16.mxu0 %v5446_v1  ;;  %v3931_v25 = vrot.slane %v3917_v58, %v5628_v53 }
 0x218   :  { %5314 = vmatprep.subr.bf16.mxu1 %v5447_v3 }
 0x21a   :  { %5293 = vmatpush3.bf16.msra.mxu0 %v5448_v4 }
 0x21b   :  { %5315 = vmatpush3.bf16.msra.mxu1 %v5449_v5  ;;  %5294 = vmatprep.subr.bf16.mxu0 %v5450_v6 }
 0x21c   :  { %5316 = vmatprep.subr.bf16.mxu1 %v5451_v7 }
 0x21e   :  { %5295 = vmatpush3.bf16.msra.mxu0 %v5452_v8 }
 0x21f   :  { %5317 = vmatpush3.bf16.msra.mxu1 %v5453_v35  ;;  %5296 = vmatprep.subr.bf16.mxu0 %v5454_v10  ;;  %v3932_v35 = vcombine.low %v3924_v0, %v3931_v25 }
 0x220   :  { %5318 = vmatprep.subr.bf16.mxu1 %v5455_v12 }
 0x222   :  { %5297 = vmatpush3.bf16.msra.mxu0 %v5456_v13 }
 0x223   :  { %5319 = vmatpush3.bf16.msra.mxu1 %v5457_v59  ;;  %5326 = vmatprep.subr.bf16.mxu0 %v5458_v14 }
 0x224   :  { %5348 = vmatprep.subr.bf16.mxu1 %v5460_v16 }
 0x225   :  { %4543 = vmatmul.mubr.bf16.vlgmr.msra.gmra.mrb[8].mxu0 %v3983_v19 }
 0x226   :  { %4583 = vmatmul.mubr.bf16.vlgmr.msra.gmra.mrb[8].mxu1 %v3985_v43  ;;  %5327 = vmatpush3.bf16.msra.mxu0 %v5459_v17 }
 0x227   :  { %5349 = vmatpush3.bf16.msra.mxu1 %v5461_v20  ;;  %5328 = vmatprep.subr.bf16.mxu0 %v5462_v32 }
 0x228   :  { %5350 = vmatprep.subr.bf16.mxu1 %v5464_v21 }
 0x22a   :  { %5329 = vmatpush3.bf16.msra.mxu0 %v5463_v51 }
 0x22b   :  { %5351 = vmatpush3.bf16.msra.mxu1 %v5465_v22  ;;  %5330 = vmatprep.subr.bf16.mxu0 %v5466_v2  ;;  %v5217_v2 = vld [vmem:[%s7447_s4] ss:$0 sm:$0xff] }
 0x22c   :  { %5352 = vmatprep.subr.bf16.mxu1 %v5468_v24 }
 0x22e   :  { %5331 = vmatpush3.bf16.msra.mxu0 %v5467_v27 }
 0x22f   :  { %5353 = vmatpush3.bf16.msra.mxu1 %v5469_v28  ;;  %5332 = vmatprep.subr.bf16.mxu0 %v5470_v29 }
 0x230   :  { %5354 = vmatprep.subr.bf16.mxu1 %v5472_v31 }
 0x232   :  { %5333 = vmatpush3.bf16.msra.mxu0 %v5471_v30 }
 0x233   :  { %5355 = vmatpush3.bf16.msra.mxu1 %v5473_v63  ;;  %5334 = vmatprep.subr.bf16.mxu0 %v5474_v11 }
 0x234   :  { %5356 = vmatprep.subr.bf16.mxu1 %v5476_v33  ;;  %v5515_v33 = vmov 5  }
 0x235   :  { %5423 = vset.pattern.permute.xlu0 %v5515_v33 }
 0x236   :  { %5335 = vmatpush3.bf16.msra.mxu0 %v5475_v54 }
 0x237   :  { %5357 = vmatpush3.bf16.msra.mxu1 %v5477_v34  ;;  %5336 = vmatprep.subr.bf16.mxu0 %v5478_v36 }
 0x238   :  { %5358 = vmatprep.subr.bf16.mxu1 %v5480_v38 }
 0x23a   :  { %5337 = vmatpush3.bf16.msra.mxu0 %v5479_v37 }
 0x23b   :  { %5359 = vmatpush3.bf16.msra.mxu1 %v5481_v39  ;;  %5338 = vmatprep.subr.bf16.mxu0 %v5482_v40 }
 0x23c   :  { %5360 = vmatprep.subr.bf16.mxu1 %v5484_v42 }
 0x23e   :  { %5339 = vmatpush3.bf16.msra.mxu0 %v5483_v41 }
 0x23f   :  { %5340 = vmatprep.subr.bf16.mxu0 %v5486_v46  ;;  %5361 = vmatpush3.bf16.msra.mxu1 %v5485_v45 }
 0x240   :  { %5362 = vmatprep.subr.bf16.mxu1 %v5488_v47 }
 0x242   :  { %5341 = vmatpush3.bf16.msra.mxu0 %v5487_v48 }
 0x243   :  { %5363 = vmatpush3.bf16.msra.mxu1 %v5489_v49 }
 0x2d8   :  { %v3641_v60 = vpop.f32.mrb[4].mxu0 }
 0x2d9   :  { %v3805_v61 = vpop.f32.mrb[4].mxu1  ;;  %v3643_v62 = vpop.f32.mrb[5].mxu0 }
 0x2da   :  { %v3837_v1 = vcombine.low %v3641_v60, %v3643_v62  ;;  %v3807_v3 = vpop.f32.mrb[5].mxu1  ;;  %v3645_v44 = vpop.f32.mrb[6].mxu0 }
 0x2db   :  { %v3838_v4 = vcombine.low %v3805_v61, %v3807_v3  ;;  %v3809_v5 = vpop.f32.mrb[6].mxu1  ;;  %v3646_v6 = vpop.f32.mrb[7].mxu0 }
 0x2dc   :  { %v3845_v7 = vrot.slane %v3837_v1, %v5628_v53  ;;  %v3810_v8 = vpop.f32.mrb[7].mxu1 }
 0x2dd   :  { %v3852_v18 = vrot.slane %v3838_v4, %v5628_v53 }
 0x2df   :  { %v3853_v10 = vcombine.low %v3845_v7, %v3852_v18 }
 0x2e1   :  { %v3936_v12 = vadd.f32 %v3932_v35, %v3853_v10 }
 0x2e3   :  { %v3938_v13 = vmax.f32 %v3936_v12, 0.0 }
 0x2e5   :  { %v3965_v59 = vrot.slane %v3938_v13, %v5628_v53  ;;  %v3958_v14 = vcombine.high %v3938_v13, %v3938_v13 }
 0x2e7   :  { %v3973_v16 = vcombine.high %v3965_v59, %v3965_v59  ;;  %v3972_v17 = vrot.slane %v3958_v14, %v5628_v53  ;;  %v3987_v32 = vpack.c.bf16 %v3965_v59, %v3965_v59 }
 0x2e9   :  { %v3988_v19 = vpack.c.bf16 %v3973_v16, %v3973_v16  ;;  %v3974_v20 = vcombine.high %v3972_v17, %v3972_v17  ;;  %v3989_v21 = vpack.c.bf16 %v3972_v17, %v3972_v17 }
 0x2eb   :  { %4622 = vmatprep.mubr.bf16.mxu0 %v3988_v19  ;;  %v3990_v43 = vpack.c.bf16 %v3974_v20, %v3974_v20 }
 0x2ec   :  { %4623 = vmatmul.mubr.bf16.vlgmr.msra.gmra.mrb[12].mxu0 %v3987_v32 }
 0x2ed   :  { %4662 = vmatprep.mubr.bf16.mxu1 %v3990_v43 }
 0x2ee   :  { %4663 = vmatmul.mubr.bf16.vlgmr.msra.gmra.mrb[12].mxu1 %v3989_v21 }
 0x2f8   :  { %v5298_v51 = vpop.f32.mrb[8].mxu0 }
 0x2f9   :  { %v5320_v22 = vpop.f32.mrb[8].mxu1  ;;  %v5299_v24 = vpop.f32.mrb[9].mxu0 }
 0x2fa   :  { %v5300_v27 = vadd.f32 %v5299_v24, %v5298_v51  ;;  %v5321_v28 = vpop.f32.mrb[9].mxu1  ;;  %v5301_v29 = vpop.f32.mrb[10].mxu0 }
 0x2fb   :  { %v5322_v53 = vadd.f32 %v5321_v28, %v5320_v22  ;;  %v5323_v30 = vpop.f32.mrb[10].mxu1  ;;  %v5302_v31 = vpop.f32.mrb[11].mxu0 }
 0x2fc   :  { %v4545_v63 = vadd.f32 %v5300_v27, %v5217_v2  ;;  %v5324_v11 = vpop.f32.mrb[11].mxu1 }
 0x2fe   :  { %v4585_v54 = vadd.f32 %v5322_v53, %v4545_v63 }
 0x3bf   :  { %v5342_v34 = vpop.f32.mrb[12].mxu0 }
 0x3c0   :  { %v5343_v36 = vpop.f32.mrb[13].mxu0 }
 0x3c1   :  { %v5344_v37 = vadd.f32 %v5343_v36, %v5342_v34  ;;  %v5345_v38 = vpop.f32.mrb[14].mxu0  ;;  %v5364_v39 = vpop.f32.mrb[12].mxu1 }
 0x3c2   :  { %v5346_v40 = vpop.f32.mrb[15].mxu0  ;;  %v5365_v41 = vpop.f32.mrb[13].mxu1 }
 0x3c3   :  { %v4625_v42 = vadd.f32 %v5344_v37, %v4585_v54  ;;  %v5366_v45 = vadd.f32 %v5365_v41, %v5364_v39  ;;  %v5367_v46 = vpop.f32.mrb[14].mxu1 }
 0x3c4   :  { %v5368_v47 = vpop.f32.mrb[15].mxu1 }
 0x3c5   :  { %v4665_v48 = vadd.f32 %v5366_v45, %v4625_v42 }
 0x3c7   :  { %v4671_v49 = vsel %vm4670_vm0, %v4665_v48, 0.0 }
 0x3c8   :  { %4672 = vadd.xlane.f32.xlu0 %v4671_v49 }
 0x3de   :  { %4684 = vperm.xlu0 %5423, %v4665_v48  }
 0x455   :  { %v4673_v50 = vpop.xlane.xlu0 %4672 }
 0x456   :  { %v4674_v15 = vrot.slane %v4673_v50, 4 }
 0x458   :  { %v4675_v23 = vadd.f32 %v4674_v15, %v4673_v50 }
 0x45a   :  { %v4676_v9 = vrot.slane %v4675_v23, 2 }
 0x45c   :  { %v4677_v26 = vadd.f32 %v4676_v9, %v4675_v23 }
 0x45d   :  { %v4685_v56 = vpop.permute.xlu0 %4684 }
 0x45e   :  { %v4678_v52 = vrot.slane %v4677_v26, 1  ;;  %v4687_v57 = vadd.f32 %v4685_v56, %v4665_v48 }
 0x460   :  { %v4679_v55 = vadd.f32 %v4678_v52, %v4677_v26 }
 0x462   :  { %5418 = vpush %v4679_v55 }
 0x493   :  { %s5419_s4 = spop %5418 }
 0x494   :  { %s4681_s6 = smul.f32 0.1, %s5419_s4 }
 0x496   :  { %v4688_v58 = vstv %s4681_s6 }
 0x497   :  { %v4689_v60 = vsub.f32 %v4687_v57, %v4688_v58 }
 0x499   :  { %4690 = vst.msk [vmem:[#allocation3] sm:$0x3] %vm4670_vm0, %v4689_v60 }
 0x49a   :  { %5501 = shalt.err (!%p5498_p4)
}
 0x49b   :  { %s5502_s11 = scalar_lea.hbm %s7448_s5, 32 }
 0x49c   :  { %p5503_p5 = scmp.ne.s32.totalorder %s7448_s5, %s5502_s11  ;;  %p5506_p6 = scmp.lt.u32.totalorder %s5502_s11, %s7448_s5 }
 0x49e   :  { %p5508_p7 = pnand %p5506_p6, %p5503_p5 }
 0x4a0   :  { %5511 = shalt.err (!%p5508_p7)
}
 0x4a1   :  { %4700 = dma.vmem_to_hbm [thread:$0]  %s4698_s8, 32, %s7448_s5, [#allocation4]  }
 0x4a2   :  { %5512 = dma.done.wait [#allocation4], 32  }
 0x4a3   :  { %5513 = vsyncadd [#allocation4], 4294967264 }
 0x4a4   :  { %4704 = vsyncpa [#allocation4], 1 }

</bundles_post_ra>
